<compile_context>
chip_gen: v6e
topology: v6e:2x2x1
jax: 0.10.0
libtpu: 0.0.40
codegen_flags: <defaults>
</compile_context>

<pallas_src>
import functools

import jax
import jax.numpy as jnp
from jax import lax
from jax.experimental import pallas as pl
from jax.experimental.pallas import tpu as pltpu

ACT_DTYPE = jnp.bfloat16          # inter-kernel activation storage / MXU input dtype
BN_EPS = 1e-5
# Explicit VMEM budget: above the default scoped limits (16/32 MiB) but safely
# below every generation's physical VMEM (128/128/64 MiB).
VMEM_LIMIT_BYTES = 48 * 1024 * 1024
TILE_M = 256                      # token tile for the patch-embed matmul


def _round_up(x, m):
    return ((x + m - 1) // m) * m


def _cparams():
    return pltpu.CompilerParams(dimension_semantics=("parallel",),
                                vmem_limit_bytes=VMEM_LIMIT_BYTES)


# -----------------------------------------------------------------------------
# In-kernel math helpers (f32)
# -----------------------------------------------------------------------------
# float32 rational erf approximation (same polynomial XLA / Eigen use) so that
# nn.GELU()'s exact erf-based gelu is reproduced without an erf primitive.
_ERF_ALPHA = (-2.72614225801306e-10, 2.77068142495902e-08, -2.10102402082508e-06,
              -5.69250639462346e-05, -7.34990630326855e-04, -2.95459980854025e-03,
              -1.60960333262415e-02)
_ERF_BETA = (-1.45660718464996e-05, -2.13374055278905e-04, -1.68282697438203e-03,
             -7.37332916720468e-03, -1.42647390514189e-02)


def _erf_f32(x):
    x = jnp.clip(x, -4.0, 4.0)
    x2 = x * x
    a = _ERF_ALPHA[0] * x2 + _ERF_ALPHA[1]
    for c in _ERF_ALPHA[2:]:
        a = a * x2 + c
    b = _ERF_BETA[0] * x2 + _ERF_BETA[1]
    for c in _ERF_BETA[2:]:
        b = b * x2 + c
    # divide -> EUP approximate reciprocal (separate VLIW slot, effectively free)
    return x * a * pl.reciprocal(b, approx=True)


def _gelu_exact(x):
    return 0.5 * x * (1.0 + _erf_f32(x * 0.7071067811865476))


# -----------------------------------------------------------------------------
# Pallas kernels
# -----------------------------------------------------------------------------
def _matmul_bias_kernel(x_ref, w_ref, b_ref, o_ref):
    # patch_embed conv (k=p, s=p) as patchified matmul: o = x @ w + b
    y = jnp.dot(x_ref[...], w_ref[...],
                preferred_element_type=jnp.float32) + b_ref[...]
    o_ref[...] = y.astype(o_ref.dtype)


def _shift_mlp_kernel(x_ref, w1_ref, b1_ref, w2_ref, b2_ref, sc_ref, sh_ref,
                      o_ref, *, width, apply_shift):
    # One SpatialShiftMLP block + eval-BatchNorm + GELU, fused, for one batch
    # element.  x_ref: (T, C) tokens in row-major (H*W) order, T = H * width.
    x = x_ref[...].astype(jnp.float32)
    T, C = x.shape

    if apply_shift:
        # torch SpatialShiftMLP C>=2 branch, expressed on row-major tokens.
        cs = max(1, C // 4)
        ch = lax.broadcasted_iota(jnp.int32, (T, C), 1)
        if width > 1:
            col = lax.broadcasted_iota(jnp.int32, (T, C), 0) % width
            right = jnp.where(col == 0, x,
                              jnp.concatenate([x[:1], x[:-1]], axis=0))
            left = jnp.where(col == width - 1, x,
                             jnp.concatenate([x[1:], x[-1:]], axis=0))
        else:
            right, left = x, x
        if width < T:
            down = jnp.concatenate([x[:width], x[:-width]], axis=0)
            up = jnp.concatenate([x[width:], x[-width:]], axis=0)
        else:
            down, up = x, x
        xs = jnp.where(ch < cs, right, x)
        if C >= 2:
            xs = jnp.where((ch >= cs) & (ch < 2 * cs), left, xs)
        if C >= 3:
            xs = jnp.where((ch >= 2 * cs) & (ch < 3 * cs), down, xs)
        if C >= 4:
            xs = jnp.where(ch >= 3 * cs, up, xs)
    else:
        xs = x

    # fc1 -> GELU -> (Dropout p=0) -> fc2 -> (Dropout p=0), bf16 MXU / f32 acc
    h = jnp.dot(xs.astype(jnp.bfloat16), w1_ref[...],
                preferred_element_type=jnp.float32) + b1_ref[...]
    h = _gelu_exact(h)
    y = jnp.dot(h.astype(jnp.bfloat16), w2_ref[...],
                preferred_element_type=jnp.float32) + b2_ref[...]
    # fused epilogue: eval-mode BatchNorm2d (scale/shift) + GELU
    y = _gelu_exact(y * sc_ref[...] + sh_ref[...])
    o_ref[...] = y.astype(o_ref.dtype)


def _downsample_kernel(x00_ref, x01_ref, x10_ref, x11_ref,
                       w_ref, b_ref, sc_ref, sh_ref, o_ref, *, Ho, Wo):
    # Conv2d(k=3, s=2, p=1) + eval-BN + GELU, fused, for one batch element.
    # Inputs are the 4 parity-decimated views of the padded NHWC activation,
    # each (Ho+1, Wo+1, C); the 9 taps are accumulated as 9 MXU matmuls.
    parts = (x00_ref[...].astype(jnp.float32), x01_ref[...].astype(jnp.float32),
             x10_ref[...].astype(jnp.float32), x11_ref[...].astype(jnp.float32))
    C = parts[0].shape[-1]
    Cout = o_ref.shape[-1]
    acc = jnp.zeros((Ho * Wo, Cout), jnp.float32)
    for kh in range(3):
        for kw in range(3):
            src = parts[2 * (kh % 2) + (kw % 2)]
            dh, dw = kh // 2, kw // 2
            tap = src[dh:dh + Ho, dw:dw + Wo, :].reshape(Ho * Wo, C)
            acc = acc + jnp.dot(tap.astype(jnp.bfloat16), w_ref[3 * kh + kw],
                                preferred_element_type=jnp.float32)
    y = acc + b_ref[...]
    y = _gelu_exact(y * sc_ref[...] + sh_ref[...])
    o_ref[...] = y.astype(o_ref.dtype)


def _pool_head_kernel(x_ref, w_ref, b_ref, o_ref):
    # AdaptiveAvgPool2d(1) + Flatten + Linear head, one batch element per step.
    xb = x_ref[...].astype(jnp.float32)                  # (T, C)
    pooled = jnp.mean(xb, axis=0, keepdims=True)         # (1, C)
    y = jnp.dot(pooled, w_ref[...],
                preferred_element_type=jnp.float32) + b_ref[...]
    o_ref[...] = y.astype(o_ref.dtype)


# -----------------------------------------------------------------------------
# Pallas wrappers
# -----------------------------------------------------------------------------
def matmul_bias(x, w, b, *, out_dtype=ACT_DTYPE):
    # Token-tiled, pipelined matmul + bias (patch_embed). M axis is 'parallel'.
    M, K = x.shape
    N = w.shape[1]
    if M <= TILE_M:
        Mp = _round_up(M, 8)
        tm = Mp
    else:
        Mp = _round_up(M, TILE_M)
        tm = TILE_M
    if Mp != M:
        x = jnp.pad(x, ((0, Mp - M), (0, 0)))
    out = pl.pallas_call(
        _matmul_bias_kernel,
        out_shape=jax.ShapeDtypeStruct((Mp, N), out_dtype),
        grid=(Mp // tm,),
        in_specs=[
            pl.BlockSpec((tm, K), lambda i: (i, 0)),
            pl.BlockSpec((K, N), lambda i: (0, 0)),
            pl.BlockSpec((1, N), lambda i: (0, 0)),
        ],
        out_specs=pl.BlockSpec((tm, N), lambda i: (i, 0)),
        compiler_params=_cparams(),
    )(x, w, b.reshape(1, N))
    return out[:M]


def shift_mlp_block(x_tok, width, w1, b1, w2, b2, scale, shift, *, apply_shift=True):
    # x_tok: (B, T, C) tokens; one batch element per grid step (parallel).
    B, T, C = x_tok.shape
    Ch = w1.shape[1]
    Co = w2.shape[1]
    kern = functools.partial(_shift_mlp_kernel, width=width, apply_shift=apply_shift)
    return pl.pallas_call(
        kern,
        out_shape=jax.ShapeDtypeStruct((B, T, Co), ACT_DTYPE),
        grid=(B,),
        in_specs=[
            pl.BlockSpec((None, T, C), lambda b: (b, 0, 0)),
            pl.BlockSpec((C, Ch), lambda b: (0, 0)),
            pl.BlockSpec((1, Ch), lambda b: (0, 0)),
            pl.BlockSpec((Ch, Co), lambda b: (0, 0)),
            pl.BlockSpec((1, Co), lambda b: (0, 0)),
            pl.BlockSpec((1, Co), lambda b: (0, 0)),
            pl.BlockSpec((1, Co), lambda b: (0, 0)),
        ],
        out_specs=pl.BlockSpec((None, T, Co), lambda b: (b, 0, 0)),
        compiler_params=_cparams(),
    )(x_tok, w1, b1.reshape(1, Ch), w2, b2.reshape(1, Co),
      scale.reshape(1, Co), shift.reshape(1, Co))


def downsample_block(x_tok, H, W, w9, b, scale, shift):
    # Conv2d(k=3, s=2, p=1) + BN + GELU.  XLA only produces 4 parity-decimated
    # views (~1x the activation, not 9x im2col); the kernel does the rest.
    B, T, C = x_tok.shape
    Co = w9.shape[-1]
    Ho, Wo = (H + 1) // 2, (W + 1) // 2
    x = x_tok.reshape(B, H, W, C)
    xp = jnp.pad(x, ((0, 0), (1, 1), (1, 1), (0, 0)))

    def parity(ph, pw):
        g = xp[:, ph::2, pw::2, :][:, :Ho + 1, :Wo + 1, :]
        pad_h = Ho + 1 - g.shape[1]
        pad_w = Wo + 1 - g.shape[2]
        if pad_h or pad_w:
            g = jnp.pad(g, ((0, 0), (0, pad_h), (0, pad_w), (0, 0)))
        return g

    x00, x01, x10, x11 = parity(0, 0), parity(0, 1), parity(1, 0), parity(1, 1)
    kern = functools.partial(_downsample_kernel, Ho=Ho, Wo=Wo)
    xspec = pl.BlockSpec((None, Ho + 1, Wo + 1, C), lambda bi: (bi, 0, 0, 0))
    out = pl.pallas_call(
        kern,
        out_shape=jax.ShapeDtypeStruct((B, Ho * Wo, Co), ACT_DTYPE),
        grid=(B,),
        in_specs=[xspec, xspec, xspec, xspec,
                  pl.BlockSpec((9, C, Co), lambda bi: (0, 0, 0)),
                  pl.BlockSpec((1, Co), lambda bi: (0, 0)),
                  pl.BlockSpec((1, Co), lambda bi: (0, 0)),
                  pl.BlockSpec((1, Co), lambda bi: (0, 0))],
        out_specs=pl.BlockSpec((None, Ho * Wo, Co), lambda bi: (bi, 0, 0)),
        compiler_params=_cparams(),
    )(x00, x01, x10, x11, w9, b.reshape(1, Co),
      scale.reshape(1, Co), shift.reshape(1, Co))
    return out, Ho, Wo


def pool_head(x_tok, w, b):
    B, T, C = x_tok.shape
    N = w.shape[1]
    out = pl.pallas_call(
        _pool_head_kernel,
        out_shape=jax.ShapeDtypeStruct((B, 1, N), jnp.float32),
        grid=(B,),
        in_specs=[pl.BlockSpec((None, T, C), lambda bi: (bi, 0, 0)),
                  pl.BlockSpec((C, N), lambda bi: (0, 0)),
                  pl.BlockSpec((1, N), lambda bi: (0, 0))],
        out_specs=pl.BlockSpec((None, 1, N), lambda bi: (bi, 0, 0)),
        compiler_params=_cparams(),
    )(x_tok, w, b.reshape(1, N))
    return out.reshape(B, N)


# -----------------------------------------------------------------------------
# XLA-side glue for the (unused in this model) C==1 shift branch
# -----------------------------------------------------------------------------
def spatial_shift_c1(x):
    # Torch C==1 branch; sequential in-place slice writes reading the ORIGINAL
    # tensor, replicated in the same order (NHWC layout).
    B, H, W, C = x.shape
    h_mid, w_mid = H // 2, W // 2
    xs = x
    xs = xs.at[:, :h_mid, :-1, :].set(x[:, :h_mid, 1:, :])
    xs = xs.at[:, :h_mid, 1:, :].set(x[:, :h_mid, :-1, :])
    xs = xs.at[:, :-1, :w_mid, :].set(x[:, 1:, :w_mid, :])
    xs = xs.at[:, 1:, w_mid:, :].set(x[:, :-1, w_mid:, :])
    return xs


# -----------------------------------------------------------------------------
# Parameters (deterministic synthetic init, shapes per SketchMLP_S2.__init__)
# -----------------------------------------------------------------------------
def init_params(key, *, in_chans, num_classes, embed_dim, depths, mlp_ratio, patch_size):
    def nxt():
        nonlocal key
        key, sub = jax.random.split(key)
        return sub

    def rnd(shape, s=0.05):
        return s * jax.random.normal(nxt(), shape, jnp.float32)

    params = {}
    # patch_embed Conv2d(in_chans, embed_dim, k=p, s=p)  -> matmul form
    w = rnd((embed_dim, in_chans, patch_size, patch_size))
    params["patch_w"] = w.transpose(1, 2, 3, 0).reshape(
        in_chans * patch_size * patch_size, embed_dim)
    params["patch_b"] = rnd((embed_dim,))

    stages = []
    current = embed_dim
    for i, depth in enumerate(depths):
        blocks = []
        for j in range(depth):
            out_dim = current * 2 if (j == depth - 1 and i < len(depths) - 1) else current
            hidden = int(current * mlp_ratio)
            blocks.append({
                "w1": rnd((current, hidden)),
                "b1": rnd((hidden,)),
                "w2": rnd((hidden, out_dim)),
                "b2": rnd((out_dim,)),
                "bn_gamma": 1.0 + rnd((out_dim,)),
                "bn_beta": rnd((out_dim,)),
            })
            if j == depth - 1 and i < len(depths) - 1:
                current = out_dim
        stage = {"blocks": blocks}
        if i < len(depths) - 1:
            cw = rnd((current, current, 3, 3))
            stage["down"] = {
                "w": cw.transpose(2, 3, 1, 0).reshape(9, current, current),
                "b": rnd((current,)),
                "bn_gamma": 1.0 + rnd((current,)),
                "bn_beta": rnd((current,)),
            }
        stages.append(stage)
    params["stages"] = stages
    params["head_w"] = rnd((current, num_classes))
    params["head_b"] = rnd((num_classes,))
    return params, current


def _bn_fold(gamma, beta):
    # eval-mode BN with running_mean=0, running_var=1
    scale = gamma / jnp.sqrt(1.0 + BN_EPS)
    return scale, beta


# -----------------------------------------------------------------------------
# Forward pass
# -----------------------------------------------------------------------------
def sketch_mlp_forward(params, x_nchw, *, patch_size):
    B, Cin, H, W = x_nchw.shape
    x = jnp.transpose(x_nchw, (0, 2, 3, 1))                 # NCHW -> NHWC

    # --- patch_embed: Conv2d(k=p, s=p) as patchify + tiled Pallas matmul ---
    p = patch_size
    Hp, Wp = H // p, W // p
    xp = x.reshape(B, Hp, p, Wp, p, Cin).transpose(0, 1, 3, 5, 2, 4)
    xp = xp.reshape(B * Hp * Wp, Cin * p * p).astype(jnp.bfloat16)
    tok = matmul_bias(xp, params["patch_w"].astype(jnp.bfloat16), params["patch_b"])
    x_tok = tok.reshape(B, Hp * Wp, -1)                     # (B, T, C) bf16 tokens
    Hc, Wc = Hp, Wp
    # (self.norm1 is defined but unused in the reference forward -> skipped)

    for stage in params["stages"]:
        for blk in stage["blocks"]:
            C = x_tok.shape[-1]
            scale, shift = _bn_fold(blk["bn_gamma"], blk["bn_beta"])
            if C == 1:
                # rare branch of the reference; shift done in XLA, MLP fused.
                xs = spatial_shift_c1(x_tok.reshape(B, Hc, Wc, C))
                x_in = xs.reshape(B, Hc * Wc, C)
                apply_shift = False
            else:
                x_in = x_tok
                apply_shift = True
            x_tok = shift_mlp_block(
                x_in, Wc,
                blk["w1"].astype(jnp.bfloat16), blk["b1"],
                blk["w2"].astype(jnp.bfloat16), blk["b2"],
                scale, shift, apply_shift=apply_shift)
        if "down" in stage:
            dp = stage["down"]
            scale, shift = _bn_fold(dp["bn_gamma"], dp["bn_beta"])
            x_tok, Hc, Wc = downsample_block(
                x_tok, Hc, Wc, dp["w"].astype(jnp.bfloat16), dp["b"], scale, shift)

    # --- avgpool + flatten + head (fused Pallas kernel, parallel over batch) ---
    return pool_head(x_tok, params["head_w"], params["head_b"])


# -----------------------------------------------------------------------------
# Main
# -----------------------------------------------------------------------------
if __name__ == "__main__":
    # Small config consistent with the module's constructor knobs.
    img_size, patch_size, in_chans = 16, 4, 1
    num_classes, embed_dim = 10, 8
    depths, mlp_ratio = [2, 2], 2.0
    B = 2
    assert img_size % patch_size == 0

    key = jax.random.PRNGKey(0)
    pkey, xkey = jax.random.split(key)
    params, final_dim = init_params(pkey, in_chans=in_chans, num_classes=num_classes,
                                    embed_dim=embed_dim, depths=depths,
                                    mlp_ratio=mlp_ratio, patch_size=patch_size)

    x = jax.random.normal(xkey, (B, in_chans, img_size, img_size), jnp.float32)

    fwd = jax.jit(functools.partial(sketch_mlp_forward, patch_size=patch_size))
    out = fwd(params, x)
    jax.block_until_ready(out)
    assert out.shape == (B, num_classes), out.shape
    assert out.dtype == jnp.float32
    print("KERNEL_OK")
</pallas_src>

<mosaic_0001>
module attributes {stable_mosaic.version = 11 : i64} {
  func.func @_matmul_bias_kernel(%arg0: i32, %arg1: memref<32x16xbf16, #tpu.memory_space<vmem>>, %arg2: memref<16x8xbf16, #tpu.memory_space<vmem>>, %arg3: memref<1x8xf32, #tpu.memory_space<vmem>>, %arg4: memref<32x8xbf16, #tpu.memory_space<vmem>>) attributes {dimension_semantics = [#tpu.dimension_semantics<parallel>], iteration_bounds = array<i64: 1>, scalar_prefetch = 0 : i64, scratch_operands = 0 : i64, tpu.core_type = #tpu.core_type<tc>, window_params = [{transform_indices = @transform_0, window_bounds = array<i64: 32, 16>}, {pipeline_mode = #tpu.pipeline_mode<synchronous>, transform_indices = @transform_1, window_bounds = array<i64: 16, 8>}, {pipeline_mode = #tpu.pipeline_mode<synchronous>, transform_indices = @transform_2, window_bounds = array<i64: 1, 8>}, {transform_indices = @transform_3, window_bounds = array<i64: 32, 8>}]} {
    %c0 = arith.constant 0 : index
    %c0_0 = arith.constant 0 : index
    %0 = vector.load %arg1[%c0, %c0_0] : memref<32x16xbf16, #tpu.memory_space<vmem>>, vector<32x16xbf16>
    %c0_1 = arith.constant 0 : index
    %c0_2 = arith.constant 0 : index
    %1 = vector.load %arg2[%c0_1, %c0_2] : memref<16x8xbf16, #tpu.memory_space<vmem>>, vector<16x8xbf16>
    %cst = arith.constant dense<0.000000e+00> : vector<32x8xf32>
    %2 = tpu.matmul %0, %1, %cst {dimension_numbers = #tpu.dot_dimension_numbers<[1], [0], [0], [1], [0, 0, 1, 1], [], []>} : vector<32x16xbf16>, vector<16x8xbf16>, vector<32x8xf32> -> vector<32x8xf32>
    %c0_3 = arith.constant 0 : index
    %c0_4 = arith.constant 0 : index
    %3 = vector.load %arg3[%c0_3, %c0_4] : memref<1x8xf32, #tpu.memory_space<vmem>>, vector<1x8xf32>
    %4 = vector.broadcast %3 : vector<1x8xf32> to vector<32x8xf32>
    %5 = arith.addf %2, %4 : vector<32x8xf32>
    %6 = arith.truncf %5 : vector<32x8xf32> to vector<32x8xbf16>
    %c0_5 = arith.constant 0 : index
    %c0_6 = arith.constant 0 : index
    %7 = vector.load %arg4[%c0_5, %c0_6] : memref<32x8xbf16, #tpu.memory_space<vmem>>, vector<32x8xbf16>
    tpu.vector_store %arg4[%c0_5, %c0_6], %6 {strides = array<i32>} : memref<32x8xbf16, #tpu.memory_space<vmem>>, vector<32x8xbf16>,
    return
  }
  func.func @transform_0(%arg0: i32) -> (i32, i32) {
    %c0_i32 = arith.constant 0 : i32
    %c0_i32_0 = arith.constant 0 : i32
    return %arg0, %c0_i32 : i32, i32
  }
  func.func @transform_1(%arg0: i32) -> (i32, i32) {
    %c0_i32 = arith.constant 0 : i32
    %c0_i32_0 = arith.constant 0 : i32
    %c0_i32_1 = arith.constant 0 : i32
    return %c0_i32, %c0_i32_0 : i32, i32
  }
  func.func @transform_2(%arg0: i32) -> (i32, i32) {
    %c0_i32 = arith.constant 0 : i32
    %c0_i32_0 = arith.constant 0 : i32
    %c0_i32_1 = arith.constant 0 : i32
    return %c0_i32, %c0_i32_0 : i32, i32
  }
  func.func @transform_3(%arg0: i32) -> (i32, i32) {
    %c0_i32 = arith.constant 0 : i32
    %c0_i32_0 = arith.constant 0 : i32
    return %arg0, %c0_i32 : i32, i32
  }
}

module attributes {stable_mosaic.version = 11 : i64} {
  func.func @_shift_mlp_kernel(%arg0: i32, %arg1: memref<1x16x8xbf16, #tpu.memory_space<vmem>>, %arg2: memref<8x16xbf16, #tpu.memory_space<vmem>>, %arg3: memref<1x16xf32, #tpu.memory_space<vmem>>, %arg4: memref<16x8xbf16, #tpu.memory_space<vmem>>, %arg5: memref<1x8xf32, #tpu.memory_space<vmem>>, %arg6: memref<1x8xf32, #tpu.memory_space<vmem>>, %arg7: memref<1x8xf32, #tpu.memory_space<vmem>>, %arg8: memref<1x16x8xbf16, #tpu.memory_space<vmem>>) attributes {dimension_semantics = [#tpu.dimension_semantics<parallel>], iteration_bounds = array<i64: 2>, scalar_prefetch = 0 : i64, scratch_operands = 0 : i64, tpu.core_type = #tpu.core_type<tc>, window_params = [{transform_indices = @transform_0, window_bounds = array<i64: 1, 16, 8>}, {pipeline_mode = #tpu.pipeline_mode<synchronous>, transform_indices = @transform_1, window_bounds = array<i64: 8, 16>}, {pipeline_mode = #tpu.pipeline_mode<synchronous>, transform_indices = @transform_2, window_bounds = array<i64: 1, 16>}, {pipeline_mode = #tpu.pipeline_mode<synchronous>, transform_indices = @transform_3, window_bounds = array<i64: 16, 8>}, {pipeline_mode = #tpu.pipeline_mode<synchronous>, transform_indices = @transform_4, window_bounds = array<i64: 1, 8>}, {pipeline_mode = #tpu.pipeline_mode<synchronous>, transform_indices = @transform_5, window_bounds = array<i64: 1, 8>}, {pipeline_mode = #tpu.pipeline_mode<synchronous>, transform_indices = @transform_6, window_bounds = array<i64: 1, 8>}, {transform_indices = @transform_7, window_bounds = array<i64: 1, 16, 8>}]} {
    %c0 = arith.constant 0 : index
    %c0_0 = arith.constant 0 : index
    %c0_1 = arith.constant 0 : index
    %0 = vector.load %arg1[%c0, %c0_0, %c0_1] : memref<1x16x8xbf16, #tpu.memory_space<vmem>>, vector<1x16x8xbf16>
    %1 = vector.shape_cast %0 : vector<1x16x8xbf16> to vector<16x8xbf16>
    %2 = arith.extf %1 : vector<16x8xbf16> to vector<16x8xf32>
    %3 = tpu.iota {dimensions = array<i32: 1>} : vector<16x8xi32>
    %4 = tpu.iota {dimensions = array<i32: 0>} : vector<16x8xi32>
    %c4_i32 = arith.constant 4 : i32
    %c0_i32 = arith.constant 0 : i32
    %5 = arith.cmpi eq, %c4_i32, %c0_i32 : i32
    %c1_i32 = arith.constant 1 : i32
    %6 = arith.select %5, %c1_i32, %c4_i32 : i32
    %7 = vector.broadcast %6 : i32 to vector<16x8xi32>
    %8 = arith.remsi %4, %7 : vector<16x8xi32>
    %c0_i32_2 = arith.constant 0 : i32
    %9 = vector.broadcast %c0_i32_2 : i32 to vector<16x8xi32>
    %10 = arith.cmpi ne, %8, %9 : vector<16x8xi32>
    %c0_i32_3 = arith.constant 0 : i32
    %11 = vector.broadcast %c0_i32_3 : i32 to vector<16x8xi32>
    %12 = arith.cmpi slt, %8, %11 : vector<16x8xi32>
    %c0_i32_4 = arith.constant 0 : i32
    %13 = arith.cmpi slt, %6, %c0_i32_4 : i32
    %14 = vector.broadcast %13 : i1 to vector<16x8xi1>
    %15 = vector.broadcast %14 : vector<16x8xi1> to vector<16x8xi1>
    %16 = arith.xori %12, %15 : vector<16x8xi1>
    %17 = arith.andi %16, %10 : vector<16x8xi1>
    %18 = vector.broadcast %6 : i32 to vector<16x8xi32>
    %19 = arith.addi %8, %18 : vector<16x8xi32>
    %20 = arith.select %17, %19, %8 : vector<16x8xi1>, vector<16x8xi32>
    %c0_i32_5 = arith.constant 0 : i32
    %21 = vector.broadcast %c0_i32_5 : i32 to vector<16x8xi32>
    %22 = arith.cmpi eq, %20, %21 : vector<16x8xi32>
    %23 = vector.extract_strided_slice %2 {offsets = [0, 0], sizes = [1, 8], strides = [1, 1]} : vector<16x8xf32> to vector<1x8xf32>
    %24 = vector.extract_strided_slice %2 {offsets = [0, 0], sizes = [15, 8], strides = [1, 1]} : vector<16x8xf32> to vector<15x8xf32>
    %25 = tpu.concatenate %23, %24 in 0 : vector<1x8xf32>, vector<15x8xf32> -> vector<16x8xf32>
    %26 = arith.select %22, %2, %25 : vector<16x8xi1>, vector<16x8xf32>
    %c3_i32 = arith.constant 3 : i32
    %27 = vector.broadcast %c3_i32 : i32 to vector<16x8xi32>
    %28 = arith.cmpi eq, %20, %27 : vector<16x8xi32>
    %29 = vector.extract_strided_slice %2 {offsets = [1, 0], sizes = [15, 8], strides = [1, 1]} : vector<16x8xf32> to vector<15x8xf32>
    %30 = vector.extract_strided_slice %2 {offsets = [15, 0], sizes = [1, 8], strides = [1, 1]} : vector<16x8xf32> to vector<1x8xf32>
    %31 = tpu.concatenate %29, %30 in 0 : vector<15x8xf32>, vector<1x8xf32> -> vector<16x8xf32>
    %32 = arith.select %28, %2, %31 : vector<16x8xi1>, vector<16x8xf32>
    %33 = vector.extract_strided_slice %2 {offsets = [0, 0], sizes = [4, 8], strides = [1, 1]} : vector<16x8xf32> to vector<4x8xf32>
    %34 = vector.extract_strided_slice %2 {offsets = [0, 0], sizes = [12, 8], strides = [1, 1]} : vector<16x8xf32> to vector<12x8xf32>
    %35 = tpu.concatenate %33, %34 in 0 : vector<4x8xf32>, vector<12x8xf32> -> vector<16x8xf32>
    %36 = vector.extract_strided_slice %2 {offsets = [4, 0], sizes = [12, 8], strides = [1, 1]} : vector<16x8xf32> to vector<12x8xf32>
    %37 = vector.extract_strided_slice %2 {offsets = [12, 0], sizes = [4, 8], strides = [1, 1]} : vector<16x8xf32> to vector<4x8xf32>
    %38 = tpu.concatenate %36, %37 in 0 : vector<12x8xf32>, vector<4x8xf32> -> vector<16x8xf32>
    %c2_i32 = arith.constant 2 : i32
    %39 = vector.broadcast %c2_i32 : i32 to vector<16x8xi32>
    %40 = arith.cmpi slt, %3, %39 : vector<16x8xi32>
    %41 = arith.select %40, %26, %2 : vector<16x8xi1>, vector<16x8xf32>
    %c2_i32_6 = arith.constant 2 : i32
    %42 = vector.broadcast %c2_i32_6 : i32 to vector<16x8xi32>
    %43 = arith.cmpi sge, %3, %42 : vector<16x8xi32>
    %c4_i32_7 = arith.constant 4 : i32
    %44 = vector.broadcast %c4_i32_7 : i32 to vector<16x8xi32>
    %45 = arith.cmpi slt, %3, %44 : vector<16x8xi32>
    %46 = arith.andi %43, %45 : vector<16x8xi1>
    %47 = arith.select %46, %32, %41 : vector<16x8xi1>, vector<16x8xf32>
    %c4_i32_8 = arith.constant 4 : i32
    %48 = vector.broadcast %c4_i32_8 : i32 to vector<16x8xi32>
    %49 = arith.cmpi sge, %3, %48 : vector<16x8xi32>
    %c6_i32 = arith.constant 6 : i32
    %50 = vector.broadcast %c6_i32 : i32 to vector<16x8xi32>
    %51 = arith.cmpi slt, %3, %50 : vector<16x8xi32>
    %52 = arith.andi %49, %51 : vector<16x8xi1>
    %53 = arith.select %52, %35, %47 : vector<16x8xi1>, vector<16x8xf32>
    %c6_i32_9 = arith.constant 6 : i32
    %54 = vector.broadcast %c6_i32_9 : i32 to vector<16x8xi32>
    %55 = arith.cmpi sge, %3, %54 : vector<16x8xi32>
    %56 = arith.select %55, %38, %53 : vector<16x8xi1>, vector<16x8xf32>
    %57 = arith.truncf %56 : vector<16x8xf32> to vector<16x8xbf16>
    %c0_10 = arith.constant 0 : index
    %c0_11 = arith.constant 0 : index
    %58 = vector.load %arg2[%c0_10, %c0_11] : memref<8x16xbf16, #tpu.memory_space<vmem>>, vector<8x16xbf16>
    %cst = arith.constant dense<0.000000e+00> : vector<16x16xf32>
    %59 = tpu.matmul %57, %58, %cst {dimension_numbers = #tpu.dot_dimension_numbers<[1], [0], [0], [1], [0, 0, 1, 1], [], []>} : vector<16x8xbf16>, vector<8x16xbf16>, vector<16x16xf32> -> vector<16x16xf32>
    %c0_12 = arith.constant 0 : index
    %c0_13 = arith.constant 0 : index
    %60 = vector.load %arg3[%c0_12, %c0_13] : memref<1x16xf32, #tpu.memory_space<vmem>>, vector<1x16xf32>
    %61 = vector.broadcast %60 : vector<1x16xf32> to vector<16x16xf32>
    %62 = arith.addf %59, %61 : vector<16x16xf32>
    %cst_14 = arith.constant 5.000000e-01 : f32
    %63 = vector.broadcast %cst_14 : f32 to vector<16x16xf32>
    %64 = arith.mulf %63, %62 : vector<16x16xf32>
    %cst_15 = arith.constant 0.707106769 : f32
    %65 = vector.broadcast %cst_15 : f32 to vector<16x16xf32>
    %66 = arith.mulf %62, %65 : vector<16x16xf32>
    %cst_16 = arith.constant -4.000000e+00 : f32
    %cst_17 = arith.constant 4.000000e+00 : f32
    %67 = vector.broadcast %cst_16 : f32 to vector<16x16xf32>
    %68 = arith.maximumf %67, %66 : vector<16x16xf32>
    %69 = vector.broadcast %cst_17 : f32 to vector<16x16xf32>
    %70 = arith.minimumf %69, %68 : vector<16x16xf32>
    %71 = arith.mulf %70, %70 : vector<16x16xf32>
    %cst_18 = arith.constant -2.72614237E-10 : f32
    %72 = vector.broadcast %cst_18 : f32 to vector<16x16xf32>
    %73 = arith.mulf %72, %71 : vector<16x16xf32>
    %cst_19 = arith.constant 2.77068146E-8 : f32
    %74 = vector.broadcast %cst_19 : f32 to vector<16x16xf32>
    %75 = arith.addf %73, %74 : vector<16x16xf32>
    %76 = arith.mulf %75, %71 : vector<16x16xf32>
    %cst_20 = arith.constant -2.10102394E-6 : f32
    %77 = vector.broadcast %cst_20 : f32 to vector<16x16xf32>
    %78 = arith.addf %76, %77 : vector<16x16xf32>
    %79 = arith.mulf %78, %71 : vector<16x16xf32>
    %cst_21 = arith.constant -5.69250624E-5 : f32
    %80 = vector.broadcast %cst_21 : f32 to vector<16x16xf32>
    %81 = arith.addf %79, %80 : vector<16x16xf32>
    %82 = arith.mulf %81, %71 : vector<16x16xf32>
    %cst_22 = arith.constant -7.34990637E-4 : f32
    %83 = vector.broadcast %cst_22 : f32 to vector<16x16xf32>
    %84 = arith.addf %82, %83 : vector<16x16xf32>
    %85 = arith.mulf %84, %71 : vector<16x16xf32>
    %cst_23 = arith.constant -2.954600e-03 : f32
    %86 = vector.broadcast %cst_23 : f32 to vector<16x16xf32>
    %87 = arith.addf %85, %86 : vector<16x16xf32>
    %88 = arith.mulf %87, %71 : vector<16x16xf32>
    %cst_24 = arith.constant -0.0160960332 : f32
    %89 = vector.broadcast %cst_24 : f32 to vector<16x16xf32>
    %90 = arith.addf %88, %89 : vector<16x16xf32>
    %cst_25 = arith.constant -1.45660715E-5 : f32
    %91 = vector.broadcast %cst_25 : f32 to vector<16x16xf32>
    %92 = arith.mulf %91, %71 : vector<16x16xf32>
    %cst_26 = arith.constant -2.13374049E-4 : f32
    %93 = vector.broadcast %cst_26 : f32 to vector<16x16xf32>
    %94 = arith.addf %92, %93 : vector<16x16xf32>
    %95 = arith.mulf %94, %71 : vector<16x16xf32>
    %cst_27 = arith.constant -0.00168282702 : f32
    %96 = vector.broadcast %cst_27 : f32 to vector<16x16xf32>
    %97 = arith.addf %95, %96 : vector<16x16xf32>
    %98 = arith.mulf %97, %71 : vector<16x16xf32>
    %cst_28 = arith.constant -0.00737332925 : f32
    %99 = vector.broadcast %cst_28 : f32 to vector<16x16xf32>
    %100 = arith.addf %98, %99 : vector<16x16xf32>
    %101 = arith.mulf %100, %71 : vector<16x16xf32>
    %cst_29 = arith.constant -0.0142647391 : f32
    %102 = vector.broadcast %cst_29 : f32 to vector<16x16xf32>
    %103 = arith.addf %101, %102 : vector<16x16xf32>
    %104 = arith.mulf %70, %90 : vector<16x16xf32>
    %105 = tpu.reciprocal %103 {approx = true} : vector<16x16xf32> -> vector<16x16xf32>
    %106 = arith.mulf %104, %105 : vector<16x16xf32>
    %cst_30 = arith.constant 1.000000e+00 : f32
    %107 = vector.broadcast %cst_30 : f32 to vector<16x16xf32>
    %108 = arith.addf %107, %106 : vector<16x16xf32>
    %109 = arith.mulf %64, %108 : vector<16x16xf32>
    %110 = arith.truncf %109 : vector<16x16xf32> to vector<16x16xbf16>
    %c0_31 = arith.constant 0 : index
    %c0_32 = arith.constant 0 : index
    %111 = vector.load %arg4[%c0_31, %c0_32] : memref<16x8xbf16, #tpu.memory_space<vmem>>, vector<16x8xbf16>
    %cst_33 = arith.constant dense<0.000000e+00> : vector<16x8xf32>
    %112 = tpu.matmul %110, %111, %cst_33 {dimension_numbers = #tpu.dot_dimension_numbers<[1], [0], [0], [1], [0, 0, 1, 1], [], []>} : vector<16x16xbf16>, vector<16x8xbf16>, vector<16x8xf32> -> vector<16x8xf32>
    %c0_34 = arith.constant 0 : index
    %c0_35 = arith.constant 0 : index
    %113 = vector.load %arg5[%c0_34, %c0_35] : memref<1x8xf32, #tpu.memory_space<vmem>>, vector<1x8xf32>
    %114 = vector.broadcast %113 : vector<1x8xf32> to vector<16x8xf32>
    %115 = arith.addf %112, %114 : vector<16x8xf32>
    %c0_36 = arith.constant 0 : index
    %c0_37 = arith.constant 0 : index
    %116 = vector.load %arg6[%c0_36, %c0_37] : memref<1x8xf32, #tpu.memory_space<vmem>>, vector<1x8xf32>
    %117 = vector.broadcast %116 : vector<1x8xf32> to vector<16x8xf32>
    %118 = arith.mulf %115, %117 : vector<16x8xf32>
    %c0_38 = arith.constant 0 : index
    %c0_39 = arith.constant 0 : index
    %119 = vector.load %arg7[%c0_38, %c0_39] : memref<1x8xf32, #tpu.memory_space<vmem>>, vector<1x8xf32>
    %120 = vector.broadcast %119 : vector<1x8xf32> to vector<16x8xf32>
    %121 = arith.addf %118, %120 : vector<16x8xf32>
    %cst_40 = arith.constant 5.000000e-01 : f32
    %122 = vector.broadcast %cst_40 : f32 to vector<16x8xf32>
    %123 = arith.mulf %122, %121 : vector<16x8xf32>
    %cst_41 = arith.constant 0.707106769 : f32
    %124 = vector.broadcast %cst_41 : f32 to vector<16x8xf32>
    %125 = arith.mulf %121, %124 : vector<16x8xf32>
    %cst_42 = arith.constant -4.000000e+00 : f32
    %cst_43 = arith.constant 4.000000e+00 : f32
    %126 = vector.broadcast %cst_42 : f32 to vector<16x8xf32>
    %127 = arith.maximumf %126, %125 : vector<16x8xf32>
    %128 = vector.broadcast %cst_43 : f32 to vector<16x8xf32>
    %129 = arith.minimumf %128, %127 : vector<16x8xf32>
    %130 = arith.mulf %129, %129 : vector<16x8xf32>
    %cst_44 = arith.constant -2.72614237E-10 : f32
    %131 = vector.broadcast %cst_44 : f32 to vector<16x8xf32>
    %132 = arith.mulf %131, %130 : vector<16x8xf32>
    %cst_45 = arith.constant 2.77068146E-8 : f32
    %133 = vector.broadcast %cst_45 : f32 to vector<16x8xf32>
    %134 = arith.addf %132, %133 : vector<16x8xf32>
    %135 = arith.mulf %134, %130 : vector<16x8xf32>
    %cst_46 = arith.constant -2.10102394E-6 : f32
    %136 = vector.broadcast %cst_46 : f32 to vector<16x8xf32>
    %137 = arith.addf %135, %136 : vector<16x8xf32>
    %138 = arith.mulf %137, %130 : vector<16x8xf32>
    %cst_47 = arith.constant -5.69250624E-5 : f32
    %139 = vector.broadcast %cst_47 : f32 to vector<16x8xf32>
    %140 = arith.addf %138, %139 : vector<16x8xf32>
    %141 = arith.mulf %140, %130 : vector<16x8xf32>
    %cst_48 = arith.constant -7.34990637E-4 : f32
    %142 = vector.broadcast %cst_48 : f32 to vector<16x8xf32>
    %143 = arith.addf %141, %142 : vector<16x8xf32>
    %144 = arith.mulf %143, %130 : vector<16x8xf32>
    %cst_49 = arith.constant -2.954600e-03 : f32
    %145 = vector.broadcast %cst_49 : f32 to vector<16x8xf32>
    %146 = arith.addf %144, %145 : vector<16x8xf32>
    %147 = arith.mulf %146, %130 : vector<16x8xf32>
    %cst_50 = arith.constant -0.0160960332 : f32
    %148 = vector.broadcast %cst_50 : f32 to vector<16x8xf32>
    %149 = arith.addf %147, %148 : vector<16x8xf32>
    %cst_51 = arith.constant -1.45660715E-5 : f32
    %150 = vector.broadcast %cst_51 : f32 to vector<16x8xf32>
    %151 = arith.mulf %150, %130 : vector<16x8xf32>
    %cst_52 = arith.constant -2.13374049E-4 : f32
    %152 = vector.broadcast %cst_52 : f32 to vector<16x8xf32>
    %153 = arith.addf %151, %152 : vector<16x8xf32>
    %154 = arith.mulf %153, %130 : vector<16x8xf32>
    %cst_53 = arith.constant -0.00168282702 : f32
    %155 = vector.broadcast %cst_53 : f32 to vector<16x8xf32>
    %156 = arith.addf %154, %155 : vector<16x8xf32>
    %157 = arith.mulf %156, %130 : vector<16x8xf32>
    %cst_54 = arith.constant -0.00737332925 : f32
    %158 = vector.broadcast %cst_54 : f32 to vector<16x8xf32>
    %159 = arith.addf %157, %158 : vector<16x8xf32>
    %160 = arith.mulf %159, %130 : vector<16x8xf32>
    %cst_55 = arith.constant -0.0142647391 : f32
    %161 = vector.broadcast %cst_55 : f32 to vector<16x8xf32>
    %162 = arith.addf %160, %161 : vector<16x8xf32>
    %163 = arith.mulf %129, %149 : vector<16x8xf32>
    %164 = tpu.reciprocal %162 {approx = true} : vector<16x8xf32> -> vector<16x8xf32>
    %165 = arith.mulf %163, %164 : vector<16x8xf32>
    %cst_56 = arith.constant 1.000000e+00 : f32
    %166 = vector.broadcast %cst_56 : f32 to vector<16x8xf32>
    %167 = arith.addf %166, %165 : vector<16x8xf32>
    %168 = arith.mulf %123, %167 : vector<16x8xf32>
    %169 = arith.truncf %168 : vector<16x8xf32> to vector<16x8xbf16>
    %c0_57 = arith.constant 0 : index
    %c0_58 = arith.constant 0 : index
    %c0_59 = arith.constant 0 : index
    %170 = vector.load %arg8[%c0_57, %c0_58, %c0_59] : memref<1x16x8xbf16, #tpu.memory_space<vmem>>, vector<1x16x8xbf16>
    %171 = vector.shape_cast %170 : vector<1x16x8xbf16> to vector<16x8xbf16>
    %172 = vector.shape_cast %169 : vector<16x8xbf16> to vector<1x16x8xbf16>
    tpu.vector_store %arg8[%c0_57, %c0_58, %c0_59], %172 {strides = array<i32>} : memref<1x16x8xbf16, #tpu.memory_space<vmem>>, vector<1x16x8xbf16>,
    return
  }
  func.func @transform_0(%arg0: i32) -> (i32, i32, i32) {
    %c0_i32 = arith.constant 0 : i32
    %c0_i32_0 = arith.constant 0 : i32
    %c0_i32_1 = arith.constant 0 : i32
    return %arg0, %c0_i32, %c0_i32_0 : i32, i32, i32
  }
  func.func @transform_1(%arg0: i32) -> (i32, i32) {
    %c0_i32 = arith.constant 0 : i32
    %c0_i32_0 = arith.constant 0 : i32
    %c0_i32_1 = arith.constant 0 : i32
    return %c0_i32, %c0_i32_0 : i32, i32
  }
  func.func @transform_2(%arg0: i32) -> (i32, i32) {
    %c0_i32 = arith.constant 0 : i32
    %c0_i32_0 = arith.constant 0 : i32
    %c0_i32_1 = arith.constant 0 : i32
    return %c0_i32, %c0_i32_0 : i32, i32
  }
  func.func @transform_3(%arg0: i32) -> (i32, i32) {
    %c0_i32 = arith.constant 0 : i32
    %c0_i32_0 = arith.constant 0 : i32
    %c0_i32_1 = arith.constant 0 : i32
    return %c0_i32, %c0_i32_0 : i32, i32
  }
  func.func @transform_4(%arg0: i32) -> (i32, i32) {
    %c0_i32 = arith.constant 0 : i32
    %c0_i32_0 = arith.constant 0 : i32
    %c0_i32_1 = arith.constant 0 : i32
    return %c0_i32, %c0_i32_0 : i32, i32
  }
  func.func @transform_5(%arg0: i32) -> (i32, i32) {
    %c0_i32 = arith.constant 0 : i32
    %c0_i32_0 = arith.constant 0 : i32
    %c0_i32_1 = arith.constant 0 : i32
    return %c0_i32, %c0_i32_0 : i32, i32
  }
  func.func @transform_6(%arg0: i32) -> (i32, i32) {
    %c0_i32 = arith.constant 0 : i32
    %c0_i32_0 = arith.constant 0 : i32
    %c0_i32_1 = arith.constant 0 : i32
    return %c0_i32, %c0_i32_0 : i32, i32
  }
  func.func @transform_7(%arg0: i32) -> (i32, i32, i32) {
    %c0_i32 = arith.constant 0 : i32
    %c0_i32_0 = arith.constant 0 : i32
    %c0_i32_1 = arith.constant 0 : i32
    return %arg0, %c0_i32, %c0_i32_0 : i32, i32, i32
  }
}

module attributes {stable_mosaic.version = 11 : i64} {
  func.func @_shift_mlp_kernel(%arg0: i32, %arg1: memref<1x16x8xbf16, #tpu.memory_space<vmem>>, %arg2: memref<8x16xbf16, #tpu.memory_space<vmem>>, %arg3: memref<1x16xf32, #tpu.memory_space<vmem>>, %arg4: memref<16x16xbf16, #tpu.memory_space<vmem>>, %arg5: memref<1x16xf32, #tpu.memory_space<vmem>>, %arg6: memref<1x16xf32, #tpu.memory_space<vmem>>, %arg7: memref<1x16xf32, #tpu.memory_space<vmem>>, %arg8: memref<1x16x16xbf16, #tpu.memory_space<vmem>>) attributes {dimension_semantics = [#tpu.dimension_semantics<parallel>], iteration_bounds = array<i64: 2>, scalar_prefetch = 0 : i64, scratch_operands = 0 : i64, tpu.core_type = #tpu.core_type<tc>, window_params = [{transform_indices = @transform_0, window_bounds = array<i64: 1, 16, 8>}, {pipeline_mode = #tpu.pipeline_mode<synchronous>, transform_indices = @transform_1, window_bounds = array<i64: 8, 16>}, {pipeline_mode = #tpu.pipeline_mode<synchronous>, transform_indices = @transform_2, window_bounds = array<i64: 1, 16>}, {pipeline_mode = #tpu.pipeline_mode<synchronous>, transform_indices = @transform_3, window_bounds = array<i64: 16, 16>}, {pipeline_mode = #tpu.pipeline_mode<synchronous>, transform_indices = @transform_4, window_bounds = array<i64: 1, 16>}, {pipeline_mode = #tpu.pipeline_mode<synchronous>, transform_indices = @transform_5, window_bounds = array<i64: 1, 16>}, {pipeline_mode = #tpu.pipeline_mode<synchronous>, transform_indices = @transform_6, window_bounds = array<i64: 1, 16>}, {transform_indices = @transform_7, window_bounds = array<i64: 1, 16, 16>}]} {
    %c0 = arith.constant 0 : index
    %c0_0 = arith.constant 0 : index
    %c0_1 = arith.constant 0 : index
    %0 = vector.load %arg1[%c0, %c0_0, %c0_1] : memref<1x16x8xbf16, #tpu.memory_space<vmem>>, vector<1x16x8xbf16>
    %1 = vector.shape_cast %0 : vector<1x16x8xbf16> to vector<16x8xbf16>
    %2 = arith.extf %1 : vector<16x8xbf16> to vector<16x8xf32>
    %3 = tpu.iota {dimensions = array<i32: 1>} : vector<16x8xi32>
    %4 = tpu.iota {dimensions = array<i32: 0>} : vector<16x8xi32>
    %c4_i32 = arith.constant 4 : i32
    %c0_i32 = arith.constant 0 : i32
    %5 = arith.cmpi eq, %c4_i32, %c0_i32 : i32
    %c1_i32 = arith.constant 1 : i32
    %6 = arith.select %5, %c1_i32, %c4_i32 : i32
    %7 = vector.broadcast %6 : i32 to vector<16x8xi32>
    %8 = arith.remsi %4, %7 : vector<16x8xi32>
    %c0_i32_2 = arith.constant 0 : i32
    %9 = vector.broadcast %c0_i32_2 : i32 to vector<16x8xi32>
    %10 = arith.cmpi ne, %8, %9 : vector<16x8xi32>
    %c0_i32_3 = arith.constant 0 : i32
    %11 = vector.broadcast %c0_i32_3 : i32 to vector<16x8xi32>
    %12 = arith.cmpi slt, %8, %11 : vector<16x8xi32>
    %c0_i32_4 = arith.constant 0 : i32
    %13 = arith.cmpi slt, %6, %c0_i32_4 : i32
    %14 = vector.broadcast %13 : i1 to vector<16x8xi1>
    %15 = vector.broadcast %14 : vector<16x8xi1> to vector<16x8xi1>
    %16 = arith.xori %12, %15 : vector<16x8xi1>
    %17 = arith.andi %16, %10 : vector<16x8xi1>
    %18 = vector.broadcast %6 : i32 to vector<16x8xi32>
    %19 = arith.addi %8, %18 : vector<16x8xi32>
    %20 = arith.select %17, %19, %8 : vector<16x8xi1>, vector<16x8xi32>
    %c0_i32_5 = arith.constant 0 : i32
    %21 = vector.broadcast %c0_i32_5 : i32 to vector<16x8xi32>
    %22 = arith.cmpi eq, %20, %21 : vector<16x8xi32>
    %23 = vector.extract_strided_slice %2 {offsets = [0, 0], sizes = [1, 8], strides = [1, 1]} : vector<16x8xf32> to vector<1x8xf32>
    %24 = vector.extract_strided_slice %2 {offsets = [0, 0], sizes = [15, 8], strides = [1, 1]} : vector<16x8xf32> to vector<15x8xf32>
    %25 = tpu.concatenate %23, %24 in 0 : vector<1x8xf32>, vector<15x8xf32> -> vector<16x8xf32>
    %26 = arith.select %22, %2, %25 : vector<16x8xi1>, vector<16x8xf32>
    %c3_i32 = arith.constant 3 : i32
    %27 = vector.broadcast %c3_i32 : i32 to vector<16x8xi32>
    %28 = arith.cmpi eq, %20, %27 : vector<16x8xi32>
    %29 = vector.extract_strided_slice %2 {offsets = [1, 0], sizes = [15, 8], strides = [1, 1]} : vector<16x8xf32> to vector<15x8xf32>
    %30 = vector.extract_strided_slice %2 {offsets = [15, 0], sizes = [1, 8], strides = [1, 1]} : vector<16x8xf32> to vector<1x8xf32>
    %31 = tpu.concatenate %29, %30 in 0 : vector<15x8xf32>, vector<1x8xf32> -> vector<16x8xf32>
    %32 = arith.select %28, %2, %31 : vector<16x8xi1>, vector<16x8xf32>
    %33 = vector.extract_strided_slice %2 {offsets = [0, 0], sizes = [4, 8], strides = [1, 1]} : vector<16x8xf32> to vector<4x8xf32>
    %34 = vector.extract_strided_slice %2 {offsets = [0, 0], sizes = [12, 8], strides = [1, 1]} : vector<16x8xf32> to vector<12x8xf32>
    %35 = tpu.concatenate %33, %34 in 0 : vector<4x8xf32>, vector<12x8xf32> -> vector<16x8xf32>
    %36 = vector.extract_strided_slice %2 {offsets = [4, 0], sizes = [12, 8], strides = [1, 1]} : vector<16x8xf32> to vector<12x8xf32>
    %37 = vector.extract_strided_slice %2 {offsets = [12, 0], sizes = [4, 8], strides = [1, 1]} : vector<16x8xf32> to vector<4x8xf32>
    %38 = tpu.concatenate %36, %37 in 0 : vector<12x8xf32>, vector<4x8xf32> -> vector<16x8xf32>
    %c2_i32 = arith.constant 2 : i32
    %39 = vector.broadcast %c2_i32 : i32 to vector<16x8xi32>
    %40 = arith.cmpi slt, %3, %39 : vector<16x8xi32>
    %41 = arith.select %40, %26, %2 : vector<16x8xi1>, vector<16x8xf32>
    %c2_i32_6 = arith.constant 2 : i32
    %42 = vector.broadcast %c2_i32_6 : i32 to vector<16x8xi32>
    %43 = arith.cmpi sge, %3, %42 : vector<16x8xi32>
    %c4_i32_7 = arith.constant 4 : i32
    %44 = vector.broadcast %c4_i32_7 : i32 to vector<16x8xi32>
    %45 = arith.cmpi slt, %3, %44 : vector<16x8xi32>
    %46 = arith.andi %43, %45 : vector<16x8xi1>
    %47 = arith.select %46, %32, %41 : vector<16x8xi1>, vector<16x8xf32>
    %c4_i32_8 = arith.constant 4 : i32
    %48 = vector.broadcast %c4_i32_8 : i32 to vector<16x8xi32>
    %49 = arith.cmpi sge, %3, %48 : vector<16x8xi32>
    %c6_i32 = arith.constant 6 : i32
    %50 = vector.broadcast %c6_i32 : i32 to vector<16x8xi32>
    %51 = arith.cmpi slt, %3, %50 : vector<16x8xi32>
    %52 = arith.andi %49, %51 : vector<16x8xi1>
    %53 = arith.select %52, %35, %47 : vector<16x8xi1>, vector<16x8xf32>
    %c6_i32_9 = arith.constant 6 : i32
    %54 = vector.broadcast %c6_i32_9 : i32 to vector<16x8xi32>
    %55 = arith.cmpi sge, %3, %54 : vector<16x8xi32>
    %56 = arith.select %55, %38, %53 : vector<16x8xi1>, vector<16x8xf32>
    %57 = arith.truncf %56 : vector<16x8xf32> to vector<16x8xbf16>
    %c0_10 = arith.constant 0 : index
    %c0_11 = arith.constant 0 : index
    %58 = vector.load %arg2[%c0_10, %c0_11] : memref<8x16xbf16, #tpu.memory_space<vmem>>, vector<8x16xbf16>
    %cst = arith.constant dense<0.000000e+00> : vector<16x16xf32>
    %59 = tpu.matmul %57, %58, %cst {dimension_numbers = #tpu.dot_dimension_numbers<[1], [0], [0], [1], [0, 0, 1, 1], [], []>} : vector<16x8xbf16>, vector<8x16xbf16>, vector<16x16xf32> -> vector<16x16xf32>
    %c0_12 = arith.constant 0 : index
    %c0_13 = arith.constant 0 : index
    %60 = vector.load %arg3[%c0_12, %c0_13] : memref<1x16xf32, #tpu.memory_space<vmem>>, vector<1x16xf32>
    %61 = vector.broadcast %60 : vector<1x16xf32> to vector<16x16xf32>
    %62 = arith.addf %59, %61 : vector<16x16xf32>
    %cst_14 = arith.constant 5.000000e-01 : f32
    %63 = vector.broadcast %cst_14 : f32 to vector<16x16xf32>
    %64 = arith.mulf %63, %62 : vector<16x16xf32>
    %cst_15 = arith.constant 0.707106769 : f32
    %65 = vector.broadcast %cst_15 : f32 to vector<16x16xf32>
    %66 = arith.mulf %62, %65 : vector<16x16xf32>
    %cst_16 = arith.constant -4.000000e+00 : f32
    %cst_17 = arith.constant 4.000000e+00 : f32
    %67 = vector.broadcast %cst_16 : f32 to vector<16x16xf32>
    %68 = arith.maximumf %67, %66 : vector<16x16xf32>
    %69 = vector.broadcast %cst_17 : f32 to vector<16x16xf32>
    %70 = arith.minimumf %69, %68 : vector<16x16xf32>
    %71 = arith.mulf %70, %70 : vector<16x16xf32>
    %cst_18 = arith.constant -2.72614237E-10 : f32
    %72 = vector.broadcast %cst_18 : f32 to vector<16x16xf32>
    %73 = arith.mulf %72, %71 : vector<16x16xf32>
    %cst_19 = arith.constant 2.77068146E-8 : f32
    %74 = vector.broadcast %cst_19 : f32 to vector<16x16xf32>
    %75 = arith.addf %73, %74 : vector<16x16xf32>
    %76 = arith.mulf %75, %71 : vector<16x16xf32>
    %cst_20 = arith.constant -2.10102394E-6 : f32
    %77 = vector.broadcast %cst_20 : f32 to vector<16x16xf32>
    %78 = arith.addf %76, %77 : vector<16x16xf32>
    %79 = arith.mulf %78, %71 : vector<16x16xf32>
    %cst_21 = arith.constant -5.69250624E-5 : f32
    %80 = vector.broadcast %cst_21 : f32 to vector<16x16xf32>
    %81 = arith.addf %79, %80 : vector<16x16xf32>
    %82 = arith.mulf %81, %71 : vector<16x16xf32>
    %cst_22 = arith.constant -7.34990637E-4 : f32
    %83 = vector.broadcast %cst_22 : f32 to vector<16x16xf32>
    %84 = arith.addf %82, %83 : vector<16x16xf32>
    %85 = arith.mulf %84, %71 : vector<16x16xf32>
    %cst_23 = arith.constant -2.954600e-03 : f32
    %86 = vector.broadcast %cst_23 : f32 to vector<16x16xf32>
    %87 = arith.addf %85, %86 : vector<16x16xf32>
    %88 = arith.mulf %87, %71 : vector<16x16xf32>
    %cst_24 = arith.constant -0.0160960332 : f32
    %89 = vector.broadcast %cst_24 : f32 to vector<16x16xf32>
    %90 = arith.addf %88, %89 : vector<16x16xf32>
    %cst_25 = arith.constant -1.45660715E-5 : f32
    %91 = vector.broadcast %cst_25 : f32 to vector<16x16xf32>
    %92 = arith.mulf %91, %71 : vector<16x16xf32>
    %cst_26 = arith.constant -2.13374049E-4 : f32
    %93 = vector.broadcast %cst_26 : f32 to vector<16x16xf32>
    %94 = arith.addf %92, %93 : vector<16x16xf32>
    %95 = arith.mulf %94, %71 : vector<16x16xf32>
    %cst_27 = arith.constant -0.00168282702 : f32
    %96 = vector.broadcast %cst_27 : f32 to vector<16x16xf32>
    %97 = arith.addf %95, %96 : vector<16x16xf32>
    %98 = arith.mulf %97, %71 : vector<16x16xf32>
    %cst_28 = arith.constant -0.00737332925 : f32
    %99 = vector.broadcast %cst_28 : f32 to vector<16x16xf32>
    %100 = arith.addf %98, %99 : vector<16x16xf32>
    %101 = arith.mulf %100, %71 : vector<16x16xf32>
    %cst_29 = arith.constant -0.0142647391 : f32
    %102 = vector.broadcast %cst_29 : f32 to vector<16x16xf32>
    %103 = arith.addf %101, %102 : vector<16x16xf32>
    %104 = arith.mulf %70, %90 : vector<16x16xf32>
    %105 = tpu.reciprocal %103 {approx = true} : vector<16x16xf32> -> vector<16x16xf32>
    %106 = arith.mulf %104, %105 : vector<16x16xf32>
    %cst_30 = arith.constant 1.000000e+00 : f32
    %107 = vector.broadcast %cst_30 : f32 to vector<16x16xf32>
    %108 = arith.addf %107, %106 : vector<16x16xf32>
    %109 = arith.mulf %64, %108 : vector<16x16xf32>
    %110 = arith.truncf %109 : vector<16x16xf32> to vector<16x16xbf16>
    %c0_31 = arith.constant 0 : index
    %c0_32 = arith.constant 0 : index
    %111 = vector.load %arg4[%c0_31, %c0_32] : memref<16x16xbf16, #tpu.memory_space<vmem>>, vector<16x16xbf16>
    %cst_33 = arith.constant dense<0.000000e+00> : vector<16x16xf32>
    %112 = tpu.matmul %110, %111, %cst_33 {dimension_numbers = #tpu.dot_dimension_numbers<[1], [0], [0], [1], [0, 0, 1, 1], [], []>} : vector<16x16xbf16>, vector<16x16xbf16>, vector<16x16xf32> -> vector<16x16xf32>
    %c0_34 = arith.constant 0 : index
    %c0_35 = arith.constant 0 : index
    %113 = vector.load %arg5[%c0_34, %c0_35] : memref<1x16xf32, #tpu.memory_space<vmem>>, vector<1x16xf32>
    %114 = vector.broadcast %113 : vector<1x16xf32> to vector<16x16xf32>
    %115 = arith.addf %112, %114 : vector<16x16xf32>
    %c0_36 = arith.constant 0 : index
    %c0_37 = arith.constant 0 : index
    %116 = vector.load %arg6[%c0_36, %c0_37] : memref<1x16xf32, #tpu.memory_space<vmem>>, vector<1x16xf32>
    %117 = vector.broadcast %116 : vector<1x16xf32> to vector<16x16xf32>
    %118 = arith.mulf %115, %117 : vector<16x16xf32>
    %c0_38 = arith.constant 0 : index
    %c0_39 = arith.constant 0 : index
    %119 = vector.load %arg7[%c0_38, %c0_39] : memref<1x16xf32, #tpu.memory_space<vmem>>, vector<1x16xf32>
    %120 = vector.broadcast %119 : vector<1x16xf32> to vector<16x16xf32>
    %121 = arith.addf %118, %120 : vector<16x16xf32>
    %cst_40 = arith.constant 5.000000e-01 : f32
    %122 = vector.broadcast %cst_40 : f32 to vector<16x16xf32>
    %123 = arith.mulf %122, %121 : vector<16x16xf32>
    %cst_41 = arith.constant 0.707106769 : f32
    %124 = vector.broadcast %cst_41 : f32 to vector<16x16xf32>
    %125 = arith.mulf %121, %124 : vector<16x16xf32>
    %cst_42 = arith.constant -4.000000e+00 : f32
    %cst_43 = arith.constant 4.000000e+00 : f32
    %126 = vector.broadcast %cst_42 : f32 to vector<16x16xf32>
    %127 = arith.maximumf %126, %125 : vector<16x16xf32>
    %128 = vector.broadcast %cst_43 : f32 to vector<16x16xf32>
    %129 = arith.minimumf %128, %127 : vector<16x16xf32>
    %130 = arith.mulf %129, %129 : vector<16x16xf32>
    %cst_44 = arith.constant -2.72614237E-10 : f32
    %131 = vector.broadcast %cst_44 : f32 to vector<16x16xf32>
    %132 = arith.mulf %131, %130 : vector<16x16xf32>
    %cst_45 = arith.constant 2.77068146E-8 : f32
    %133 = vector.broadcast %cst_45 : f32 to vector<16x16xf32>
    %134 = arith.addf %132, %133 : vector<16x16xf32>
    %135 = arith.mulf %134, %130 : vector<16x16xf32>
    %cst_46 = arith.constant -2.10102394E-6 : f32
    %136 = vector.broadcast %cst_46 : f32 to vector<16x16xf32>
    %137 = arith.addf %135, %136 : vector<16x16xf32>
    %138 = arith.mulf %137, %130 : vector<16x16xf32>
    %cst_47 = arith.constant -5.69250624E-5 : f32
    %139 = vector.broadcast %cst_47 : f32 to vector<16x16xf32>
    %140 = arith.addf %138, %139 : vector<16x16xf32>
    %141 = arith.mulf %140, %130 : vector<16x16xf32>
    %cst_48 = arith.constant -7.34990637E-4 : f32
    %142 = vector.broadcast %cst_48 : f32 to vector<16x16xf32>
    %143 = arith.addf %141, %142 : vector<16x16xf32>
    %144 = arith.mulf %143, %130 : vector<16x16xf32>
    %cst_49 = arith.constant -2.954600e-03 : f32
    %145 = vector.broadcast %cst_49 : f32 to vector<16x16xf32>
    %146 = arith.addf %144, %145 : vector<16x16xf32>
    %147 = arith.mulf %146, %130 : vector<16x16xf32>
    %cst_50 = arith.constant -0.0160960332 : f32
    %148 = vector.broadcast %cst_50 : f32 to vector<16x16xf32>
    %149 = arith.addf %147, %148 : vector<16x16xf32>
    %cst_51 = arith.constant -1.45660715E-5 : f32
    %150 = vector.broadcast %cst_51 : f32 to vector<16x16xf32>
    %151 = arith.mulf %150, %130 : vector<16x16xf32>
    %cst_52 = arith.constant -2.13374049E-4 : f32
    %152 = vector.broadcast %cst_52 : f32 to vector<16x16xf32>
    %153 = arith.addf %151, %152 : vector<16x16xf32>
    %154 = arith.mulf %153, %130 : vector<16x16xf32>
    %cst_53 = arith.constant -0.00168282702 : f32
    %155 = vector.broadcast %cst_53 : f32 to vector<16x16xf32>
    %156 = arith.addf %154, %155 : vector<16x16xf32>
    %157 = arith.mulf %156, %130 : vector<16x16xf32>
    %cst_54 = arith.constant -0.00737332925 : f32
    %158 = vector.broadcast %cst_54 : f32 to vector<16x16xf32>
    %159 = arith.addf %157, %158 : vector<16x16xf32>
    %160 = arith.mulf %159, %130 : vector<16x16xf32>
    %cst_55 = arith.constant -0.0142647391 : f32
    %161 = vector.broadcast %cst_55 : f32 to vector<16x16xf32>
    %162 = arith.addf %160, %161 : vector<16x16xf32>
    %163 = arith.mulf %129, %149 : vector<16x16xf32>
    %164 = tpu.reciprocal %162 {approx = true} : vector<16x16xf32> -> vector<16x16xf32>
    %165 = arith.mulf %163, %164 : vector<16x16xf32>
    %cst_56 = arith.constant 1.000000e+00 : f32
    %166 = vector.broadcast %cst_56 : f32 to vector<16x16xf32>
    %167 = arith.addf %166, %165 : vector<16x16xf32>
    %168 = arith.mulf %123, %167 : vector<16x16xf32>
    %169 = arith.truncf %168 : vector<16x16xf32> to vector<16x16xbf16>
    %c0_57 = arith.constant 0 : index
    %c0_58 = arith.constant 0 : index
    %c0_59 = arith.constant 0 : index
    %170 = vector.load %arg8[%c0_57, %c0_58, %c0_59] : memref<1x16x16xbf16, #tpu.memory_space<vmem>>, vector<1x16x16xbf16>
    %171 = vector.shape_cast %170 : vector<1x16x16xbf16> to vector<16x16xbf16>
    %172 = vector.shape_cast %169 : vector<16x16xbf16> to vector<1x16x16xbf16>
    tpu.vector_store %arg8[%c0_57, %c0_58, %c0_59], %172 {strides = array<i32>} : memref<1x16x16xbf16, #tpu.memory_space<vmem>>, vector<1x16x16xbf16>,
    return
  }
  func.func @transform_0(%arg0: i32) -> (i32, i32, i32) {
    %c0_i32 = arith.constant 0 : i32
    %c0_i32_0 = arith.constant 0 : i32
    %c0_i32_1 = arith.constant 0 : i32
    return %arg0, %c0_i32, %c0_i32_0 : i32, i32, i32
  }
  func.func @transform_1(%arg0: i32) -> (i32, i32) {
    %c0_i32 = arith.constant 0 : i32
    %c0_i32_0 = arith.constant 0 : i32
    %c0_i32_1 = arith.constant 0 : i32
    return %c0_i32, %c0_i32_0 : i32, i32
  }
  func.func @transform_2(%arg0: i32) -> (i32, i32) {
    %c0_i32 = arith.constant 0 : i32
    %c0_i32_0 = arith.constant 0 : i32
    %c0_i32_1 = arith.constant 0 : i32
    return %c0_i32, %c0_i32_0 : i32, i32
  }
  func.func @transform_3(%arg0: i32) -> (i32, i32) {
    %c0_i32 = arith.constant 0 : i32
    %c0_i32_0 = arith.constant 0 : i32
    %c0_i32_1 = arith.constant 0 : i32
    return %c0_i32, %c0_i32_0 : i32, i32
  }
  func.func @transform_4(%arg0: i32) -> (i32, i32) {
    %c0_i32 = arith.constant 0 : i32
    %c0_i32_0 = arith.constant 0 : i32
    %c0_i32_1 = arith.constant 0 : i32
    return %c0_i32, %c0_i32_0 : i32, i32
  }
  func.func @transform_5(%arg0: i32) -> (i32, i32) {
    %c0_i32 = arith.constant 0 : i32
    %c0_i32_0 = arith.constant 0 : i32
    %c0_i32_1 = arith.constant 0 : i32
    return %c0_i32, %c0_i32_0 : i32, i32
  }
  func.func @transform_6(%arg0: i32) -> (i32, i32) {
    %c0_i32 = arith.constant 0 : i32
    %c0_i32_0 = arith.constant 0 : i32
    %c0_i32_1 = arith.constant 0 : i32
    return %c0_i32, %c0_i32_0 : i32, i32
  }
  func.func @transform_7(%arg0: i32) -> (i32, i32, i32) {
    %c0_i32 = arith.constant 0 : i32
    %c0_i32_0 = arith.constant 0 : i32
    %c0_i32_1 = arith.constant 0 : i32
    return %arg0, %c0_i32, %c0_i32_0 : i32, i32, i32
  }
}

module attributes {stable_mosaic.version = 11 : i64} {
  func.func @_downsample_kernel(%arg0: i32, %arg1: memref<1x3x3x16xbf16, #tpu.memory_space<vmem>>, %arg2: memref<1x3x3x16xbf16, #tpu.memory_space<vmem>>, %arg3: memref<1x3x3x16xbf16, #tpu.memory_space<vmem>>, %arg4: memref<1x3x3x16xbf16, #tpu.memory_space<vmem>>, %arg5: memref<9x16x16xbf16, #tpu.memory_space<vmem>>, %arg6: memref<1x16xf32, #tpu.memory_space<vmem>>, %arg7: memref<1x16xf32, #tpu.memory_space<vmem>>, %arg8: memref<1x16xf32, #tpu.memory_space<vmem>>, %arg9: memref<1x4x16xbf16, #tpu.memory_space<vmem>>) attributes {dimension_semantics = [#tpu.dimension_semantics<parallel>], iteration_bounds = array<i64: 2>, scalar_prefetch = 0 : i64, scratch_operands = 0 : i64, tpu.core_type = #tpu.core_type<tc>, window_params = [{transform_indices = @transform_0, window_bounds = array<i64: 1, 3, 3, 16>}, {transform_indices = @transform_1, window_bounds = array<i64: 1, 3, 3, 16>}, {transform_indices = @transform_2, window_bounds = array<i64: 1, 3, 3, 16>}, {transform_indices = @transform_3, window_bounds = array<i64: 1, 3, 3, 16>}, {pipeline_mode = #tpu.pipeline_mode<synchronous>, transform_indices = @transform_4, window_bounds = array<i64: 9, 16, 16>}, {pipeline_mode = #tpu.pipeline_mode<synchronous>, transform_indices = @transform_5, window_bounds = array<i64: 1, 16>}, {pipeline_mode = #tpu.pipeline_mode<synchronous>, transform_indices = @transform_6, window_bounds = array<i64: 1, 16>}, {pipeline_mode = #tpu.pipeline_mode<synchronous>, transform_indices = @transform_7, window_bounds = array<i64: 1, 16>}, {transform_indices = @transform_8, window_bounds = array<i64: 1, 4, 16>}]} {
    %c0 = arith.constant 0 : index
    %c0_0 = arith.constant 0 : index
    %c0_1 = arith.constant 0 : index
    %c0_2 = arith.constant 0 : index
    %0 = vector.load %arg1[%c0, %c0_0, %c0_1, %c0_2] : memref<1x3x3x16xbf16, #tpu.memory_space<vmem>>, vector<1x3x3x16xbf16>
    %1 = vector.shape_cast %0 : vector<1x3x3x16xbf16> to vector<3x3x16xbf16>
    %2 = arith.extf %1 : vector<3x3x16xbf16> to vector<3x3x16xf32>
    %c0_3 = arith.constant 0 : index
    %c0_4 = arith.constant 0 : index
    %c0_5 = arith.constant 0 : index
    %c0_6 = arith.constant 0 : index
    %3 = vector.load %arg2[%c0_3, %c0_4, %c0_5, %c0_6] : memref<1x3x3x16xbf16, #tpu.memory_space<vmem>>, vector<1x3x3x16xbf16>
    %4 = vector.shape_cast %3 : vector<1x3x3x16xbf16> to vector<3x3x16xbf16>
    %5 = arith.extf %4 : vector<3x3x16xbf16> to vector<3x3x16xf32>
    %c0_7 = arith.constant 0 : index
    %c0_8 = arith.constant 0 : index
    %c0_9 = arith.constant 0 : index
    %c0_10 = arith.constant 0 : index
    %6 = vector.load %arg3[%c0_7, %c0_8, %c0_9, %c0_10] : memref<1x3x3x16xbf16, #tpu.memory_space<vmem>>, vector<1x3x3x16xbf16>
    %7 = vector.shape_cast %6 : vector<1x3x3x16xbf16> to vector<3x3x16xbf16>
    %8 = arith.extf %7 : vector<3x3x16xbf16> to vector<3x3x16xf32>
    %c0_11 = arith.constant 0 : index
    %c0_12 = arith.constant 0 : index
    %c0_13 = arith.constant 0 : index
    %c0_14 = arith.constant 0 : index
    %9 = vector.load %arg4[%c0_11, %c0_12, %c0_13, %c0_14] : memref<1x3x3x16xbf16, #tpu.memory_space<vmem>>, vector<1x3x3x16xbf16>
    %10 = vector.shape_cast %9 : vector<1x3x3x16xbf16> to vector<3x3x16xbf16>
    %11 = arith.extf %10 : vector<3x3x16xbf16> to vector<3x3x16xf32>
    %cst = arith.constant 0.000000e+00 : f32
    %12 = vector.broadcast %cst : f32 to vector<4x16xf32>
    %13 = vector.extract_strided_slice %2 {offsets = [0, 0, 0], sizes = [2, 2, 16], strides = [1, 1, 1]} : vector<3x3x16xf32> to vector<2x2x16xf32>
    %14 = vector.shape_cast %13 : vector<2x2x16xf32> to vector<4x16xf32>
    %15 = arith.truncf %14 : vector<4x16xf32> to vector<4x16xbf16>
    %c0_15 = arith.constant 0 : index
    %c0_16 = arith.constant 0 : index
    %c0_17 = arith.constant 0 : index
    %16 = vector.load %arg5[%c0_15, %c0_16, %c0_17] : memref<9x16x16xbf16, #tpu.memory_space<vmem>>, vector<1x16x16xbf16>
    %17 = vector.shape_cast %16 : vector<1x16x16xbf16> to vector<16x16xbf16>
    %cst_18 = arith.constant dense<0.000000e+00> : vector<4x16xf32>
    %18 = tpu.matmul %15, %17, %cst_18 {dimension_numbers = #tpu.dot_dimension_numbers<[1], [0], [0], [1], [0, 0, 1, 1], [], []>} : vector<4x16xbf16>, vector<16x16xbf16>, vector<4x16xf32> -> vector<4x16xf32>
    %19 = arith.addf %12, %18 : vector<4x16xf32>
    %20 = vector.extract_strided_slice %5 {offsets = [0, 0, 0], sizes = [2, 2, 16], strides = [1, 1, 1]} : vector<3x3x16xf32> to vector<2x2x16xf32>
    %21 = vector.shape_cast %20 : vector<2x2x16xf32> to vector<4x16xf32>
    %22 = arith.truncf %21 : vector<4x16xf32> to vector<4x16xbf16>
    %c1 = arith.constant 1 : index
    %c0_19 = arith.constant 0 : index
    %c0_20 = arith.constant 0 : index
    %23 = vector.load %arg5[%c1, %c0_19, %c0_20] : memref<9x16x16xbf16, #tpu.memory_space<vmem>>, vector<1x16x16xbf16>
    %24 = vector.shape_cast %23 : vector<1x16x16xbf16> to vector<16x16xbf16>
    %cst_21 = arith.constant dense<0.000000e+00> : vector<4x16xf32>
    %25 = tpu.matmul %22, %24, %cst_21 {dimension_numbers = #tpu.dot_dimension_numbers<[1], [0], [0], [1], [0, 0, 1, 1], [], []>} : vector<4x16xbf16>, vector<16x16xbf16>, vector<4x16xf32> -> vector<4x16xf32>
    %26 = arith.addf %19, %25 : vector<4x16xf32>
    %27 = vector.extract_strided_slice %2 {offsets = [0, 1, 0], sizes = [2, 2, 16], strides = [1, 1, 1]} : vector<3x3x16xf32> to vector<2x2x16xf32>
    %28 = vector.shape_cast %27 : vector<2x2x16xf32> to vector<4x16xf32>
    %29 = arith.truncf %28 : vector<4x16xf32> to vector<4x16xbf16>
    %c2 = arith.constant 2 : index
    %c0_22 = arith.constant 0 : index
    %c0_23 = arith.constant 0 : index
    %30 = vector.load %arg5[%c2, %c0_22, %c0_23] : memref<9x16x16xbf16, #tpu.memory_space<vmem>>, vector<1x16x16xbf16>
    %31 = vector.shape_cast %30 : vector<1x16x16xbf16> to vector<16x16xbf16>
    %cst_24 = arith.constant dense<0.000000e+00> : vector<4x16xf32>
    %32 = tpu.matmul %29, %31, %cst_24 {dimension_numbers = #tpu.dot_dimension_numbers<[1], [0], [0], [1], [0, 0, 1, 1], [], []>} : vector<4x16xbf16>, vector<16x16xbf16>, vector<4x16xf32> -> vector<4x16xf32>
    %33 = arith.addf %26, %32 : vector<4x16xf32>
    %34 = vector.extract_strided_slice %8 {offsets = [0, 0, 0], sizes = [2, 2, 16], strides = [1, 1, 1]} : vector<3x3x16xf32> to vector<2x2x16xf32>
    %35 = vector.shape_cast %34 : vector<2x2x16xf32> to vector<4x16xf32>
    %36 = arith.truncf %35 : vector<4x16xf32> to vector<4x16xbf16>
    %c3 = arith.constant 3 : index
    %c0_25 = arith.constant 0 : index
    %c0_26 = arith.constant 0 : index
    %37 = vector.load %arg5[%c3, %c0_25, %c0_26] : memref<9x16x16xbf16, #tpu.memory_space<vmem>>, vector<1x16x16xbf16>
    %38 = vector.shape_cast %37 : vector<1x16x16xbf16> to vector<16x16xbf16>
    %cst_27 = arith.constant dense<0.000000e+00> : vector<4x16xf32>
    %39 = tpu.matmul %36, %38, %cst_27 {dimension_numbers = #tpu.dot_dimension_numbers<[1], [0], [0], [1], [0, 0, 1, 1], [], []>} : vector<4x16xbf16>, vector<16x16xbf16>, vector<4x16xf32> -> vector<4x16xf32>
    %40 = arith.addf %33, %39 : vector<4x16xf32>
    %41 = vector.extract_strided_slice %11 {offsets = [0, 0, 0], sizes = [2, 2, 16], strides = [1, 1, 1]} : vector<3x3x16xf32> to vector<2x2x16xf32>
    %42 = vector.shape_cast %41 : vector<2x2x16xf32> to vector<4x16xf32>
    %43 = arith.truncf %42 : vector<4x16xf32> to vector<4x16xbf16>
    %c4 = arith.constant 4 : index
    %c0_28 = arith.constant 0 : index
    %c0_29 = arith.constant 0 : index
    %44 = vector.load %arg5[%c4, %c0_28, %c0_29] : memref<9x16x16xbf16, #tpu.memory_space<vmem>>, vector<1x16x16xbf16>
    %45 = vector.shape_cast %44 : vector<1x16x16xbf16> to vector<16x16xbf16>
    %cst_30 = arith.constant dense<0.000000e+00> : vector<4x16xf32>
    %46 = tpu.matmul %43, %45, %cst_30 {dimension_numbers = #tpu.dot_dimension_numbers<[1], [0], [0], [1], [0, 0, 1, 1], [], []>} : vector<4x16xbf16>, vector<16x16xbf16>, vector<4x16xf32> -> vector<4x16xf32>
    %47 = arith.addf %40, %46 : vector<4x16xf32>
    %48 = vector.extract_strided_slice %8 {offsets = [0, 1, 0], sizes = [2, 2, 16], strides = [1, 1, 1]} : vector<3x3x16xf32> to vector<2x2x16xf32>
    %49 = vector.shape_cast %48 : vector<2x2x16xf32> to vector<4x16xf32>
    %50 = arith.truncf %49 : vector<4x16xf32> to vector<4x16xbf16>
    %c5 = arith.constant 5 : index
    %c0_31 = arith.constant 0 : index
    %c0_32 = arith.constant 0 : index
    %51 = vector.load %arg5[%c5, %c0_31, %c0_32] : memref<9x16x16xbf16, #tpu.memory_space<vmem>>, vector<1x16x16xbf16>
    %52 = vector.shape_cast %51 : vector<1x16x16xbf16> to vector<16x16xbf16>
    %cst_33 = arith.constant dense<0.000000e+00> : vector<4x16xf32>
    %53 = tpu.matmul %50, %52, %cst_33 {dimension_numbers = #tpu.dot_dimension_numbers<[1], [0], [0], [1], [0, 0, 1, 1], [], []>} : vector<4x16xbf16>, vector<16x16xbf16>, vector<4x16xf32> -> vector<4x16xf32>
    %54 = arith.addf %47, %53 : vector<4x16xf32>
    %55 = vector.extract_strided_slice %2 {offsets = [1, 0, 0], sizes = [2, 2, 16], strides = [1, 1, 1]} : vector<3x3x16xf32> to vector<2x2x16xf32>
    %56 = vector.shape_cast %55 : vector<2x2x16xf32> to vector<4x16xf32>
    %57 = arith.truncf %56 : vector<4x16xf32> to vector<4x16xbf16>
    %c6 = arith.constant 6 : index
    %c0_34 = arith.constant 0 : index
    %c0_35 = arith.constant 0 : index
    %58 = vector.load %arg5[%c6, %c0_34, %c0_35] : memref<9x16x16xbf16, #tpu.memory_space<vmem>>, vector<1x16x16xbf16>
    %59 = vector.shape_cast %58 : vector<1x16x16xbf16> to vector<16x16xbf16>
    %cst_36 = arith.constant dense<0.000000e+00> : vector<4x16xf32>
    %60 = tpu.matmul %57, %59, %cst_36 {dimension_numbers = #tpu.dot_dimension_numbers<[1], [0], [0], [1], [0, 0, 1, 1], [], []>} : vector<4x16xbf16>, vector<16x16xbf16>, vector<4x16xf32> -> vector<4x16xf32>
    %61 = arith.addf %54, %60 : vector<4x16xf32>
    %62 = vector.extract_strided_slice %5 {offsets = [1, 0, 0], sizes = [2, 2, 16], strides = [1, 1, 1]} : vector<3x3x16xf32> to vector<2x2x16xf32>
    %63 = vector.shape_cast %62 : vector<2x2x16xf32> to vector<4x16xf32>
    %64 = arith.truncf %63 : vector<4x16xf32> to vector<4x16xbf16>
    %c7 = arith.constant 7 : index
    %c0_37 = arith.constant 0 : index
    %c0_38 = arith.constant 0 : index
    %65 = vector.load %arg5[%c7, %c0_37, %c0_38] : memref<9x16x16xbf16, #tpu.memory_space<vmem>>, vector<1x16x16xbf16>
    %66 = vector.shape_cast %65 : vector<1x16x16xbf16> to vector<16x16xbf16>
    %cst_39 = arith.constant dense<0.000000e+00> : vector<4x16xf32>
    %67 = tpu.matmul %64, %66, %cst_39 {dimension_numbers = #tpu.dot_dimension_numbers<[1], [0], [0], [1], [0, 0, 1, 1], [], []>} : vector<4x16xbf16>, vector<16x16xbf16>, vector<4x16xf32> -> vector<4x16xf32>
    %68 = arith.addf %61, %67 : vector<4x16xf32>
    %69 = vector.extract_strided_slice %2 {offsets = [1, 1, 0], sizes = [2, 2, 16], strides = [1, 1, 1]} : vector<3x3x16xf32> to vector<2x2x16xf32>
    %70 = vector.shape_cast %69 : vector<2x2x16xf32> to vector<4x16xf32>
    %71 = arith.truncf %70 : vector<4x16xf32> to vector<4x16xbf16>
    %c8 = arith.constant 8 : index
    %c0_40 = arith.constant 0 : index
    %c0_41 = arith.constant 0 : index
    %72 = vector.load %arg5[%c8, %c0_40, %c0_41] : memref<9x16x16xbf16, #tpu.memory_space<vmem>>, vector<1x16x16xbf16>
    %73 = vector.shape_cast %72 : vector<1x16x16xbf16> to vector<16x16xbf16>
    %cst_42 = arith.constant dense<0.000000e+00> : vector<4x16xf32>
    %74 = tpu.matmul %71, %73, %cst_42 {dimension_numbers = #tpu.dot_dimension_numbers<[1], [0], [0], [1], [0, 0, 1, 1], [], []>} : vector<4x16xbf16>, vector<16x16xbf16>, vector<4x16xf32> -> vector<4x16xf32>
    %75 = arith.addf %68, %74 : vector<4x16xf32>
    %c0_43 = arith.constant 0 : index
    %c0_44 = arith.constant 0 : index
    %76 = vector.load %arg6[%c0_43, %c0_44] : memref<1x16xf32, #tpu.memory_space<vmem>>, vector<1x16xf32>
    %77 = vector.broadcast %76 : vector<1x16xf32> to vector<4x16xf32>
    %78 = arith.addf %75, %77 : vector<4x16xf32>
    %c0_45 = arith.constant 0 : index
    %c0_46 = arith.constant 0 : index
    %79 = vector.load %arg7[%c0_45, %c0_46] : memref<1x16xf32, #tpu.memory_space<vmem>>, vector<1x16xf32>
    %80 = vector.broadcast %79 : vector<1x16xf32> to vector<4x16xf32>
    %81 = arith.mulf %78, %80 : vector<4x16xf32>
    %c0_47 = arith.constant 0 : index
    %c0_48 = arith.constant 0 : index
    %82 = vector.load %arg8[%c0_47, %c0_48] : memref<1x16xf32, #tpu.memory_space<vmem>>, vector<1x16xf32>
    %83 = vector.broadcast %82 : vector<1x16xf32> to vector<4x16xf32>
    %84 = arith.addf %81, %83 : vector<4x16xf32>
    %cst_49 = arith.constant 5.000000e-01 : f32
    %85 = vector.broadcast %cst_49 : f32 to vector<4x16xf32>
    %86 = arith.mulf %85, %84 : vector<4x16xf32>
    %cst_50 = arith.constant 0.707106769 : f32
    %87 = vector.broadcast %cst_50 : f32 to vector<4x16xf32>
    %88 = arith.mulf %84, %87 : vector<4x16xf32>
    %cst_51 = arith.constant -4.000000e+00 : f32
    %cst_52 = arith.constant 4.000000e+00 : f32
    %89 = vector.broadcast %cst_51 : f32 to vector<4x16xf32>
    %90 = arith.maximumf %89, %88 : vector<4x16xf32>
    %91 = vector.broadcast %cst_52 : f32 to vector<4x16xf32>
    %92 = arith.minimumf %91, %90 : vector<4x16xf32>
    %93 = arith.mulf %92, %92 : vector<4x16xf32>
    %cst_53 = arith.constant -2.72614237E-10 : f32
    %94 = vector.broadcast %cst_53 : f32 to vector<4x16xf32>
    %95 = arith.mulf %94, %93 : vector<4x16xf32>
    %cst_54 = arith.constant 2.77068146E-8 : f32
    %96 = vector.broadcast %cst_54 : f32 to vector<4x16xf32>
    %97 = arith.addf %95, %96 : vector<4x16xf32>
    %98 = arith.mulf %97, %93 : vector<4x16xf32>
    %cst_55 = arith.constant -2.10102394E-6 : f32
    %99 = vector.broadcast %cst_55 : f32 to vector<4x16xf32>
    %100 = arith.addf %98, %99 : vector<4x16xf32>
    %101 = arith.mulf %100, %93 : vector<4x16xf32>
    %cst_56 = arith.constant -5.69250624E-5 : f32
    %102 = vector.broadcast %cst_56 : f32 to vector<4x16xf32>
    %103 = arith.addf %101, %102 : vector<4x16xf32>
    %104 = arith.mulf %103, %93 : vector<4x16xf32>
    %cst_57 = arith.constant -7.34990637E-4 : f32
    %105 = vector.broadcast %cst_57 : f32 to vector<4x16xf32>
    %106 = arith.addf %104, %105 : vector<4x16xf32>
    %107 = arith.mulf %106, %93 : vector<4x16xf32>
    %cst_58 = arith.constant -2.954600e-03 : f32
    %108 = vector.broadcast %cst_58 : f32 to vector<4x16xf32>
    %109 = arith.addf %107, %108 : vector<4x16xf32>
    %110 = arith.mulf %109, %93 : vector<4x16xf32>
    %cst_59 = arith.constant -0.0160960332 : f32
    %111 = vector.broadcast %cst_59 : f32 to vector<4x16xf32>
    %112 = arith.addf %110, %111 : vector<4x16xf32>
    %cst_60 = arith.constant -1.45660715E-5 : f32
    %113 = vector.broadcast %cst_60 : f32 to vector<4x16xf32>
    %114 = arith.mulf %113, %93 : vector<4x16xf32>
    %cst_61 = arith.constant -2.13374049E-4 : f32
    %115 = vector.broadcast %cst_61 : f32 to vector<4x16xf32>
    %116 = arith.addf %114, %115 : vector<4x16xf32>
    %117 = arith.mulf %116, %93 : vector<4x16xf32>
    %cst_62 = arith.constant -0.00168282702 : f32
    %118 = vector.broadcast %cst_62 : f32 to vector<4x16xf32>
    %119 = arith.addf %117, %118 : vector<4x16xf32>
    %120 = arith.mulf %119, %93 : vector<4x16xf32>
    %cst_63 = arith.constant -0.00737332925 : f32
    %121 = vector.broadcast %cst_63 : f32 to vector<4x16xf32>
    %122 = arith.addf %120, %121 : vector<4x16xf32>
    %123 = arith.mulf %122, %93 : vector<4x16xf32>
    %cst_64 = arith.constant -0.0142647391 : f32
    %124 = vector.broadcast %cst_64 : f32 to vector<4x16xf32>
    %125 = arith.addf %123, %124 : vector<4x16xf32>
    %126 = arith.mulf %92, %112 : vector<4x16xf32>
    %127 = tpu.reciprocal %125 {approx = true} : vector<4x16xf32> -> vector<4x16xf32>
    %128 = arith.mulf %126, %127 : vector<4x16xf32>
    %cst_65 = arith.constant 1.000000e+00 : f32
    %129 = vector.broadcast %cst_65 : f32 to vector<4x16xf32>
    %130 = arith.addf %129, %128 : vector<4x16xf32>
    %131 = arith.mulf %86, %130 : vector<4x16xf32>
    %132 = arith.truncf %131 : vector<4x16xf32> to vector<4x16xbf16>
    %c0_66 = arith.constant 0 : index
    %c0_67 = arith.constant 0 : index
    %c0_68 = arith.constant 0 : index
    %133 = vector.load %arg9[%c0_66, %c0_67, %c0_68] : memref<1x4x16xbf16, #tpu.memory_space<vmem>>, vector<1x4x16xbf16>
    %134 = vector.shape_cast %133 : vector<1x4x16xbf16> to vector<4x16xbf16>
    %135 = vector.shape_cast %132 : vector<4x16xbf16> to vector<1x4x16xbf16>
    tpu.vector_store %arg9[%c0_66, %c0_67, %c0_68], %135 {strides = array<i32>} : memref<1x4x16xbf16, #tpu.memory_space<vmem>>, vector<1x4x16xbf16>,
    return
  }
  func.func @transform_0(%arg0: i32) -> (i32, i32, i32, i32) {
    %c0_i32 = arith.constant 0 : i32
    %c0_i32_0 = arith.constant 0 : i32
    %c0_i32_1 = arith.constant 0 : i32
    %c0_i32_2 = arith.constant 0 : i32
    return %arg0, %c0_i32, %c0_i32_0, %c0_i32_1 : i32, i32, i32, i32
  }
  func.func @transform_1(%arg0: i32) -> (i32, i32, i32, i32) {
    %c0_i32 = arith.constant 0 : i32
    %c0_i32_0 = arith.constant 0 : i32
    %c0_i32_1 = arith.constant 0 : i32
    %c0_i32_2 = arith.constant 0 : i32
    return %arg0, %c0_i32, %c0_i32_0, %c0_i32_1 : i32, i32, i32, i32
  }
  func.func @transform_2(%arg0: i32) -> (i32, i32, i32, i32) {
    %c0_i32 = arith.constant 0 : i32
    %c0_i32_0 = arith.constant 0 : i32
    %c0_i32_1 = arith.constant 0 : i32
    %c0_i32_2 = arith.constant 0 : i32
    return %arg0, %c0_i32, %c0_i32_0, %c0_i32_1 : i32, i32, i32, i32
  }
  func.func @transform_3(%arg0: i32) -> (i32, i32, i32, i32) {
    %c0_i32 = arith.constant 0 : i32
    %c0_i32_0 = arith.constant 0 : i32
    %c0_i32_1 = arith.constant 0 : i32
    %c0_i32_2 = arith.constant 0 : i32
    return %arg0, %c0_i32, %c0_i32_0, %c0_i32_1 : i32, i32, i32, i32
  }
  func.func @transform_4(%arg0: i32) -> (i32, i32, i32) {
    %c0_i32 = arith.constant 0 : i32
    %c0_i32_0 = arith.constant 0 : i32
    %c0_i32_1 = arith.constant 0 : i32
    %c0_i32_2 = arith.constant 0 : i32
    return %c0_i32, %c0_i32_0, %c0_i32_1 : i32, i32, i32
  }
  func.func @transform_5(%arg0: i32) -> (i32, i32) {
    %c0_i32 = arith.constant 0 : i32
    %c0_i32_0 = arith.constant 0 : i32
    %c0_i32_1 = arith.constant 0 : i32
    return %c0_i32, %c0_i32_0 : i32, i32
  }
  func.func @transform_6(%arg0: i32) -> (i32, i32) {
    %c0_i32 = arith.constant 0 : i32
    %c0_i32_0 = arith.constant 0 : i32
    %c0_i32_1 = arith.constant 0 : i32
    return %c0_i32, %c0_i32_0 : i32, i32
  }
  func.func @transform_7(%arg0: i32) -> (i32, i32) {
    %c0_i32 = arith.constant 0 : i32
    %c0_i32_0 = arith.constant 0 : i32
    %c0_i32_1 = arith.constant 0 : i32
    return %c0_i32, %c0_i32_0 : i32, i32
  }
  func.func @transform_8(%arg0: i32) -> (i32, i32, i32) {
    %c0_i32 = arith.constant 0 : i32
    %c0_i32_0 = arith.constant 0 : i32
    %c0_i32_1 = arith.constant 0 : i32
    return %arg0, %c0_i32, %c0_i32_0 : i32, i32, i32
  }
}

module attributes {stable_mosaic.version = 11 : i64} {
  func.func @_pool_head_kernel(%arg0: i32, %arg1: memref<1x4x16xbf16, #tpu.memory_space<vmem>>, %arg2: memref<16x10xf32, #tpu.memory_space<vmem>>, %arg3: memref<1x10xf32, #tpu.memory_space<vmem>>, %arg4: memref<1x1x10xf32, #tpu.memory_space<vmem>>) attributes {dimension_semantics = [#tpu.dimension_semantics<parallel>], iteration_bounds = array<i64: 2>, scalar_prefetch = 0 : i64, scratch_operands = 0 : i64, tpu.core_type = #tpu.core_type<tc>, window_params = [{transform_indices = @transform_0, window_bounds = array<i64: 1, 4, 16>}, {pipeline_mode = #tpu.pipeline_mode<synchronous>, transform_indices = @transform_1, window_bounds = array<i64: 16, 10>}, {pipeline_mode = #tpu.pipeline_mode<synchronous>, transform_indices = @transform_2, window_bounds = array<i64: 1, 10>}, {transform_indices = @transform_3, window_bounds = array<i64: 1, 1, 10>}]} {
    %c0 = arith.constant 0 : index
    %c0_0 = arith.constant 0 : index
    %c0_1 = arith.constant 0 : index
    %0 = vector.load %arg1[%c0, %c0_0, %c0_1] : memref<1x4x16xbf16, #tpu.memory_space<vmem>>, vector<1x4x16xbf16>
    %1 = vector.shape_cast %0 : vector<1x4x16xbf16> to vector<4x16xbf16>
    %2 = arith.extf %1 : vector<4x16xbf16> to vector<4x16xf32>
    %cst = arith.constant dense<0.000000e+00> : vector<16xf32>
    %3 = vector.multi_reduction <add>, %2, %cst [0] : vector<4x16xf32> to vector<16xf32>
    %4 = vector.shape_cast %3 : vector<16xf32> to vector<1x16xf32>
    %cst_2 = arith.constant 4.000000e+00 : f32
    %5 = vector.broadcast %cst_2 : f32 to vector<1x16xf32>
    %6 = arith.divf %4, %5 : vector<1x16xf32>
    %c0_3 = arith.constant 0 : index
    %c0_4 = arith.constant 0 : index
    %7 = vector.load %arg2[%c0_3, %c0_4] : memref<16x10xf32, #tpu.memory_space<vmem>>, vector<16x10xf32>
    %cst_5 = arith.constant dense<0.000000e+00> : vector<1x10xf32>
    %8 = tpu.matmul %6, %7, %cst_5 {dimension_numbers = #tpu.dot_dimension_numbers<[1], [0], [0], [1], [0, 0, 1, 1], [], []>} : vector<1x16xf32>, vector<16x10xf32>, vector<1x10xf32> -> vector<1x10xf32>
    %c0_6 = arith.constant 0 : index
    %c0_7 = arith.constant 0 : index
    %9 = vector.load %arg3[%c0_6, %c0_7] : memref<1x10xf32, #tpu.memory_space<vmem>>, vector<1x10xf32>
    %10 = arith.addf %8, %9 : vector<1x10xf32>
    %c0_8 = arith.constant 0 : index
    %c0_9 = arith.constant 0 : index
    %c0_10 = arith.constant 0 : index
    %11 = vector.load %arg4[%c0_8, %c0_9, %c0_10] : memref<1x1x10xf32, #tpu.memory_space<vmem>>, vector<1x1x10xf32>
    %12 = vector.shape_cast %11 : vector<1x1x10xf32> to vector<1x10xf32>
    %13 = vector.shape_cast %10 : vector<1x10xf32> to vector<1x1x10xf32>
    tpu.vector_store %arg4[%c0_8, %c0_9, %c0_10], %13 {strides = array<i32>} : memref<1x1x10xf32, #tpu.memory_space<vmem>>, vector<1x1x10xf32>,
    return
  }
  func.func @transform_0(%arg0: i32) -> (i32, i32, i32) {
    %c0_i32 = arith.constant 0 : i32
    %c0_i32_0 = arith.constant 0 : i32
    %c0_i32_1 = arith.constant 0 : i32
    return %arg0, %c0_i32, %c0_i32_0 : i32, i32, i32
  }
  func.func @transform_1(%arg0: i32) -> (i32, i32) {
    %c0_i32 = arith.constant 0 : i32
    %c0_i32_0 = arith.constant 0 : i32
    %c0_i32_1 = arith.constant 0 : i32
    return %c0_i32, %c0_i32_0 : i32, i32
  }
  func.func @transform_2(%arg0: i32) -> (i32, i32) {
    %c0_i32 = arith.constant 0 : i32
    %c0_i32_0 = arith.constant 0 : i32
    %c0_i32_1 = arith.constant 0 : i32
    return %c0_i32, %c0_i32_0 : i32, i32
  }
  func.func @transform_3(%arg0: i32) -> (i32, i32, i32) {
    %c0_i32 = arith.constant 0 : i32
    %c0_i32_0 = arith.constant 0 : i32
    %c0_i32_1 = arith.constant 0 : i32
    return %arg0, %c0_i32, %c0_i32_0 : i32, i32, i32
  }
}

module attributes {stable_mosaic.version = 11 : i64} {
  func.func @_shift_mlp_kernel(%arg0: i32, %arg1: memref<1x4x16xbf16, #tpu.memory_space<vmem>>, %arg2: memref<16x32xbf16, #tpu.memory_space<vmem>>, %arg3: memref<1x32xf32, #tpu.memory_space<vmem>>, %arg4: memref<32x16xbf16, #tpu.memory_space<vmem>>, %arg5: memref<1x16xf32, #tpu.memory_space<vmem>>, %arg6: memref<1x16xf32, #tpu.memory_space<vmem>>, %arg7: memref<1x16xf32, #tpu.memory_space<vmem>>, %arg8: memref<1x4x16xbf16, #tpu.memory_space<vmem>>) attributes {dimension_semantics = [#tpu.dimension_semantics<parallel>], iteration_bounds = array<i64: 2>, scalar_prefetch = 0 : i64, scratch_operands = 0 : i64, tpu.core_type = #tpu.core_type<tc>, window_params = [{transform_indices = @transform_0, window_bounds = array<i64: 1, 4, 16>}, {pipeline_mode = #tpu.pipeline_mode<synchronous>, transform_indices = @transform_1, window_bounds = array<i64: 16, 32>}, {pipeline_mode = #tpu.pipeline_mode<synchronous>, transform_indices = @transform_2, window_bounds = array<i64: 1, 32>}, {pipeline_mode = #tpu.pipeline_mode<synchronous>, transform_indices = @transform_3, window_bounds = array<i64: 32, 16>}, {pipeline_mode = #tpu.pipeline_mode<synchronous>, transform_indices = @transform_4, window_bounds = array<i64: 1, 16>}, {pipeline_mode = #tpu.pipeline_mode<synchronous>, transform_indices = @transform_5, window_bounds = array<i64: 1, 16>}, {pipeline_mode = #tpu.pipeline_mode<synchronous>, transform_indices = @transform_6, window_bounds = array<i64: 1, 16>}, {transform_indices = @transform_7, window_bounds = array<i64: 1, 4, 16>}]} {
    %c0 = arith.constant 0 : index
    %c0_0 = arith.constant 0 : index
    %c0_1 = arith.constant 0 : index
    %0 = vector.load %arg1[%c0, %c0_0, %c0_1] : memref<1x4x16xbf16, #tpu.memory_space<vmem>>, vector<1x4x16xbf16>
    %1 = vector.shape_cast %0 : vector<1x4x16xbf16> to vector<4x16xbf16>
    %2 = arith.extf %1 : vector<4x16xbf16> to vector<4x16xf32>
    %3 = tpu.iota {dimensions = array<i32: 1>} : vector<4x16xi32>
    %4 = tpu.iota {dimensions = array<i32: 0>} : vector<4x16xi32>
    %c2_i32 = arith.constant 2 : i32
    %c0_i32 = arith.constant 0 : i32
    %5 = arith.cmpi eq, %c2_i32, %c0_i32 : i32
    %c1_i32 = arith.constant 1 : i32
    %6 = arith.select %5, %c1_i32, %c2_i32 : i32
    %7 = vector.broadcast %6 : i32 to vector<4x16xi32>
    %8 = arith.remsi %4, %7 : vector<4x16xi32>
    %c0_i32_2 = arith.constant 0 : i32
    %9 = vector.broadcast %c0_i32_2 : i32 to vector<4x16xi32>
    %10 = arith.cmpi ne, %8, %9 : vector<4x16xi32>
    %c0_i32_3 = arith.constant 0 : i32
    %11 = vector.broadcast %c0_i32_3 : i32 to vector<4x16xi32>
    %12 = arith.cmpi slt, %8, %11 : vector<4x16xi32>
    %c0_i32_4 = arith.constant 0 : i32
    %13 = arith.cmpi slt, %6, %c0_i32_4 : i32
    %14 = vector.broadcast %13 : i1 to vector<4x16xi1>
    %15 = vector.broadcast %14 : vector<4x16xi1> to vector<4x16xi1>
    %16 = arith.xori %12, %15 : vector<4x16xi1>
    %17 = arith.andi %16, %10 : vector<4x16xi1>
    %18 = vector.broadcast %6 : i32 to vector<4x16xi32>
    %19 = arith.addi %8, %18 : vector<4x16xi32>
    %20 = arith.select %17, %19, %8 : vector<4x16xi1>, vector<4x16xi32>
    %c0_i32_5 = arith.constant 0 : i32
    %21 = vector.broadcast %c0_i32_5 : i32 to vector<4x16xi32>
    %22 = arith.cmpi eq, %20, %21 : vector<4x16xi32>
    %23 = vector.extract_strided_slice %2 {offsets = [0, 0], sizes = [1, 16], strides = [1, 1]} : vector<4x16xf32> to vector<1x16xf32>
    %24 = vector.extract_strided_slice %2 {offsets = [0, 0], sizes = [3, 16], strides = [1, 1]} : vector<4x16xf32> to vector<3x16xf32>
    %25 = tpu.concatenate %23, %24 in 0 : vector<1x16xf32>, vector<3x16xf32> -> vector<4x16xf32>
    %26 = arith.select %22, %2, %25 : vector<4x16xi1>, vector<4x16xf32>
    %c1_i32_6 = arith.constant 1 : i32
    %27 = vector.broadcast %c1_i32_6 : i32 to vector<4x16xi32>
    %28 = arith.cmpi eq, %20, %27 : vector<4x16xi32>
    %29 = vector.extract_strided_slice %2 {offsets = [1, 0], sizes = [3, 16], strides = [1, 1]} : vector<4x16xf32> to vector<3x16xf32>
    %30 = vector.extract_strided_slice %2 {offsets = [3, 0], sizes = [1, 16], strides = [1, 1]} : vector<4x16xf32> to vector<1x16xf32>
    %31 = tpu.concatenate %29, %30 in 0 : vector<3x16xf32>, vector<1x16xf32> -> vector<4x16xf32>
    %32 = arith.select %28, %2, %31 : vector<4x16xi1>, vector<4x16xf32>
    %33 = vector.extract_strided_slice %2 {offsets = [0, 0], sizes = [2, 16], strides = [1, 1]} : vector<4x16xf32> to vector<2x16xf32>
    %34 = vector.extract_strided_slice %2 {offsets = [0, 0], sizes = [2, 16], strides = [1, 1]} : vector<4x16xf32> to vector<2x16xf32>
    %35 = tpu.concatenate %33, %34 in 0 : vector<2x16xf32>, vector<2x16xf32> -> vector<4x16xf32>
    %36 = vector.extract_strided_slice %2 {offsets = [2, 0], sizes = [2, 16], strides = [1, 1]} : vector<4x16xf32> to vector<2x16xf32>
    %37 = vector.extract_strided_slice %2 {offsets = [2, 0], sizes = [2, 16], strides = [1, 1]} : vector<4x16xf32> to vector<2x16xf32>
    %38 = tpu.concatenate %36, %37 in 0 : vector<2x16xf32>, vector<2x16xf32> -> vector<4x16xf32>
    %c4_i32 = arith.constant 4 : i32
    %39 = vector.broadcast %c4_i32 : i32 to vector<4x16xi32>
    %40 = arith.cmpi slt, %3, %39 : vector<4x16xi32>
    %41 = arith.select %40, %26, %2 : vector<4x16xi1>, vector<4x16xf32>
    %c4_i32_7 = arith.constant 4 : i32
    %42 = vector.broadcast %c4_i32_7 : i32 to vector<4x16xi32>
    %43 = arith.cmpi sge, %3, %42 : vector<4x16xi32>
    %c8_i32 = arith.constant 8 : i32
    %44 = vector.broadcast %c8_i32 : i32 to vector<4x16xi32>
    %45 = arith.cmpi slt, %3, %44 : vector<4x16xi32>
    %46 = arith.andi %43, %45 : vector<4x16xi1>
    %47 = arith.select %46, %32, %41 : vector<4x16xi1>, vector<4x16xf32>
    %c8_i32_8 = arith.constant 8 : i32
    %48 = vector.broadcast %c8_i32_8 : i32 to vector<4x16xi32>
    %49 = arith.cmpi sge, %3, %48 : vector<4x16xi32>
    %c12_i32 = arith.constant 12 : i32
    %50 = vector.broadcast %c12_i32 : i32 to vector<4x16xi32>
    %51 = arith.cmpi slt, %3, %50 : vector<4x16xi32>
    %52 = arith.andi %49, %51 : vector<4x16xi1>
    %53 = arith.select %52, %35, %47 : vector<4x16xi1>, vector<4x16xf32>
    %c12_i32_9 = arith.constant 12 : i32
    %54 = vector.broadcast %c12_i32_9 : i32 to vector<4x16xi32>
    %55 = arith.cmpi sge, %3, %54 : vector<4x16xi32>
    %56 = arith.select %55, %38, %53 : vector<4x16xi1>, vector<4x16xf32>
    %57 = arith.truncf %56 : vector<4x16xf32> to vector<4x16xbf16>
    %c0_10 = arith.constant 0 : index
    %c0_11 = arith.constant 0 : index
    %58 = vector.load %arg2[%c0_10, %c0_11] : memref<16x32xbf16, #tpu.memory_space<vmem>>, vector<16x32xbf16>
    %cst = arith.constant dense<0.000000e+00> : vector<4x32xf32>
    %59 = tpu.matmul %57, %58, %cst {dimension_numbers = #tpu.dot_dimension_numbers<[1], [0], [0], [1], [0, 0, 1, 1], [], []>} : vector<4x16xbf16>, vector<16x32xbf16>, vector<4x32xf32> -> vector<4x32xf32>
    %c0_12 = arith.constant 0 : index
    %c0_13 = arith.constant 0 : index
    %60 = vector.load %arg3[%c0_12, %c0_13] : memref<1x32xf32, #tpu.memory_space<vmem>>, vector<1x32xf32>
    %61 = vector.broadcast %60 : vector<1x32xf32> to vector<4x32xf32>
    %62 = arith.addf %59, %61 : vector<4x32xf32>
    %cst_14 = arith.constant 5.000000e-01 : f32
    %63 = vector.broadcast %cst_14 : f32 to vector<4x32xf32>
    %64 = arith.mulf %63, %62 : vector<4x32xf32>
    %cst_15 = arith.constant 0.707106769 : f32
    %65 = vector.broadcast %cst_15 : f32 to vector<4x32xf32>
    %66 = arith.mulf %62, %65 : vector<4x32xf32>
    %cst_16 = arith.constant -4.000000e+00 : f32
    %cst_17 = arith.constant 4.000000e+00 : f32
    %67 = vector.broadcast %cst_16 : f32 to vector<4x32xf32>
    %68 = arith.maximumf %67, %66 : vector<4x32xf32>
    %69 = vector.broadcast %cst_17 : f32 to vector<4x32xf32>
    %70 = arith.minimumf %69, %68 : vector<4x32xf32>
    %71 = arith.mulf %70, %70 : vector<4x32xf32>
    %cst_18 = arith.constant -2.72614237E-10 : f32
    %72 = vector.broadcast %cst_18 : f32 to vector<4x32xf32>
    %73 = arith.mulf %72, %71 : vector<4x32xf32>
    %cst_19 = arith.constant 2.77068146E-8 : f32
    %74 = vector.broadcast %cst_19 : f32 to vector<4x32xf32>
    %75 = arith.addf %73, %74 : vector<4x32xf32>
    %76 = arith.mulf %75, %71 : vector<4x32xf32>
    %cst_20 = arith.constant -2.10102394E-6 : f32
    %77 = vector.broadcast %cst_20 : f32 to vector<4x32xf32>
    %78 = arith.addf %76, %77 : vector<4x32xf32>
    %79 = arith.mulf %78, %71 : vector<4x32xf32>
    %cst_21 = arith.constant -5.69250624E-5 : f32
    %80 = vector.broadcast %cst_21 : f32 to vector<4x32xf32>
    %81 = arith.addf %79, %80 : vector<4x32xf32>
    %82 = arith.mulf %81, %71 : vector<4x32xf32>
    %cst_22 = arith.constant -7.34990637E-4 : f32
    %83 = vector.broadcast %cst_22 : f32 to vector<4x32xf32>
    %84 = arith.addf %82, %83 : vector<4x32xf32>
    %85 = arith.mulf %84, %71 : vector<4x32xf32>
    %cst_23 = arith.constant -2.954600e-03 : f32
    %86 = vector.broadcast %cst_23 : f32 to vector<4x32xf32>
    %87 = arith.addf %85, %86 : vector<4x32xf32>
    %88 = arith.mulf %87, %71 : vector<4x32xf32>
    %cst_24 = arith.constant -0.0160960332 : f32
    %89 = vector.broadcast %cst_24 : f32 to vector<4x32xf32>
    %90 = arith.addf %88, %89 : vector<4x32xf32>
    %cst_25 = arith.constant -1.45660715E-5 : f32
    %91 = vector.broadcast %cst_25 : f32 to vector<4x32xf32>
    %92 = arith.mulf %91, %71 : vector<4x32xf32>
    %cst_26 = arith.constant -2.13374049E-4 : f32
    %93 = vector.broadcast %cst_26 : f32 to vector<4x32xf32>
    %94 = arith.addf %92, %93 : vector<4x32xf32>
    %95 = arith.mulf %94, %71 : vector<4x32xf32>
    %cst_27 = arith.constant -0.00168282702 : f32
    %96 = vector.broadcast %cst_27 : f32 to vector<4x32xf32>
    %97 = arith.addf %95, %96 : vector<4x32xf32>
    %98 = arith.mulf %97, %71 : vector<4x32xf32>
    %cst_28 = arith.constant -0.00737332925 : f32
    %99 = vector.broadcast %cst_28 : f32 to vector<4x32xf32>
    %100 = arith.addf %98, %99 : vector<4x32xf32>
    %101 = arith.mulf %100, %71 : vector<4x32xf32>
    %cst_29 = arith.constant -0.0142647391 : f32
    %102 = vector.broadcast %cst_29 : f32 to vector<4x32xf32>
    %103 = arith.addf %101, %102 : vector<4x32xf32>
    %104 = arith.mulf %70, %90 : vector<4x32xf32>
    %105 = tpu.reciprocal %103 {approx = true} : vector<4x32xf32> -> vector<4x32xf32>
    %106 = arith.mulf %104, %105 : vector<4x32xf32>
    %cst_30 = arith.constant 1.000000e+00 : f32
    %107 = vector.broadcast %cst_30 : f32 to vector<4x32xf32>
    %108 = arith.addf %107, %106 : vector<4x32xf32>
    %109 = arith.mulf %64, %108 : vector<4x32xf32>
    %110 = arith.truncf %109 : vector<4x32xf32> to vector<4x32xbf16>
    %c0_31 = arith.constant 0 : index
    %c0_32 = arith.constant 0 : index
    %111 = vector.load %arg4[%c0_31, %c0_32] : memref<32x16xbf16, #tpu.memory_space<vmem>>, vector<32x16xbf16>
    %cst_33 = arith.constant dense<0.000000e+00> : vector<4x16xf32>
    %112 = tpu.matmul %110, %111, %cst_33 {dimension_numbers = #tpu.dot_dimension_numbers<[1], [0], [0], [1], [0, 0, 1, 1], [], []>} : vector<4x32xbf16>, vector<32x16xbf16>, vector<4x16xf32> -> vector<4x16xf32>
    %c0_34 = arith.constant 0 : index
    %c0_35 = arith.constant 0 : index
    %113 = vector.load %arg5[%c0_34, %c0_35] : memref<1x16xf32, #tpu.memory_space<vmem>>, vector<1x16xf32>
    %114 = vector.broadcast %113 : vector<1x16xf32> to vector<4x16xf32>
    %115 = arith.addf %112, %114 : vector<4x16xf32>
    %c0_36 = arith.constant 0 : index
    %c0_37 = arith.constant 0 : index
    %116 = vector.load %arg6[%c0_36, %c0_37] : memref<1x16xf32, #tpu.memory_space<vmem>>, vector<1x16xf32>
    %117 = vector.broadcast %116 : vector<1x16xf32> to vector<4x16xf32>
    %118 = arith.mulf %115, %117 : vector<4x16xf32>
    %c0_38 = arith.constant 0 : index
    %c0_39 = arith.constant 0 : index
    %119 = vector.load %arg7[%c0_38, %c0_39] : memref<1x16xf32, #tpu.memory_space<vmem>>, vector<1x16xf32>
    %120 = vector.broadcast %119 : vector<1x16xf32> to vector<4x16xf32>
    %121 = arith.addf %118, %120 : vector<4x16xf32>
    %cst_40 = arith.constant 5.000000e-01 : f32
    %122 = vector.broadcast %cst_40 : f32 to vector<4x16xf32>
    %123 = arith.mulf %122, %121 : vector<4x16xf32>
    %cst_41 = arith.constant 0.707106769 : f32
    %124 = vector.broadcast %cst_41 : f32 to vector<4x16xf32>
    %125 = arith.mulf %121, %124 : vector<4x16xf32>
    %cst_42 = arith.constant -4.000000e+00 : f32
    %cst_43 = arith.constant 4.000000e+00 : f32
    %126 = vector.broadcast %cst_42 : f32 to vector<4x16xf32>
    %127 = arith.maximumf %126, %125 : vector<4x16xf32>
    %128 = vector.broadcast %cst_43 : f32 to vector<4x16xf32>
    %129 = arith.minimumf %128, %127 : vector<4x16xf32>
    %130 = arith.mulf %129, %129 : vector<4x16xf32>
    %cst_44 = arith.constant -2.72614237E-10 : f32
    %131 = vector.broadcast %cst_44 : f32 to vector<4x16xf32>
    %132 = arith.mulf %131, %130 : vector<4x16xf32>
    %cst_45 = arith.constant 2.77068146E-8 : f32
    %133 = vector.broadcast %cst_45 : f32 to vector<4x16xf32>
    %134 = arith.addf %132, %133 : vector<4x16xf32>
    %135 = arith.mulf %134, %130 : vector<4x16xf32>
    %cst_46 = arith.constant -2.10102394E-6 : f32
    %136 = vector.broadcast %cst_46 : f32 to vector<4x16xf32>
    %137 = arith.addf %135, %136 : vector<4x16xf32>
    %138 = arith.mulf %137, %130 : vector<4x16xf32>
    %cst_47 = arith.constant -5.69250624E-5 : f32
    %139 = vector.broadcast %cst_47 : f32 to vector<4x16xf32>
    %140 = arith.addf %138, %139 : vector<4x16xf32>
    %141 = arith.mulf %140, %130 : vector<4x16xf32>
    %cst_48 = arith.constant -7.34990637E-4 : f32
    %142 = vector.broadcast %cst_48 : f32 to vector<4x16xf32>
    %143 = arith.addf %141, %142 : vector<4x16xf32>
    %144 = arith.mulf %143, %130 : vector<4x16xf32>
    %cst_49 = arith.constant -2.954600e-03 : f32
    %145 = vector.broadcast %cst_49 : f32 to vector<4x16xf32>
    %146 = arith.addf %144, %145 : vector<4x16xf32>
    %147 = arith.mulf %146, %130 : vector<4x16xf32>
    %cst_50 = arith.constant -0.0160960332 : f32
    %148 = vector.broadcast %cst_50 : f32 to vector<4x16xf32>
    %149 = arith.addf %147, %148 : vector<4x16xf32>
    %cst_51 = arith.constant -1.45660715E-5 : f32
    %150 = vector.broadcast %cst_51 : f32 to vector<4x16xf32>
    %151 = arith.mulf %150, %130 : vector<4x16xf32>
    %cst_52 = arith.constant -2.13374049E-4 : f32
    %152 = vector.broadcast %cst_52 : f32 to vector<4x16xf32>
    %153 = arith.addf %151, %152 : vector<4x16xf32>
    %154 = arith.mulf %153, %130 : vector<4x16xf32>
    %cst_53 = arith.constant -0.00168282702 : f32
    %155 = vector.broadcast %cst_53 : f32 to vector<4x16xf32>
    %156 = arith.addf %154, %155 : vector<4x16xf32>
    %157 = arith.mulf %156, %130 : vector<4x16xf32>
    %cst_54 = arith.constant -0.00737332925 : f32
    %158 = vector.broadcast %cst_54 : f32 to vector<4x16xf32>
    %159 = arith.addf %157, %158 : vector<4x16xf32>
    %160 = arith.mulf %159, %130 : vector<4x16xf32>
    %cst_55 = arith.constant -0.0142647391 : f32
    %161 = vector.broadcast %cst_55 : f32 to vector<4x16xf32>
    %162 = arith.addf %160, %161 : vector<4x16xf32>
    %163 = arith.mulf %129, %149 : vector<4x16xf32>
    %164 = tpu.reciprocal %162 {approx = true} : vector<4x16xf32> -> vector<4x16xf32>
    %165 = arith.mulf %163, %164 : vector<4x16xf32>
    %cst_56 = arith.constant 1.000000e+00 : f32
    %166 = vector.broadcast %cst_56 : f32 to vector<4x16xf32>
    %167 = arith.addf %166, %165 : vector<4x16xf32>
    %168 = arith.mulf %123, %167 : vector<4x16xf32>
    %169 = arith.truncf %168 : vector<4x16xf32> to vector<4x16xbf16>
    %c0_57 = arith.constant 0 : index
    %c0_58 = arith.constant 0 : index
    %c0_59 = arith.constant 0 : index
    %170 = vector.load %arg8[%c0_57, %c0_58, %c0_59] : memref<1x4x16xbf16, #tpu.memory_space<vmem>>, vector<1x4x16xbf16>
    %171 = vector.shape_cast %170 : vector<1x4x16xbf16> to vector<4x16xbf16>
    %172 = vector.shape_cast %169 : vector<4x16xbf16> to vector<1x4x16xbf16>
    tpu.vector_store %arg8[%c0_57, %c0_58, %c0_59], %172 {strides = array<i32>} : memref<1x4x16xbf16, #tpu.memory_space<vmem>>, vector<1x4x16xbf16>,
    return
  }
  func.func @transform_0(%arg0: i32) -> (i32, i32, i32) {
    %c0_i32 = arith.constant 0 : i32
    %c0_i32_0 = arith.constant 0 : i32
    %c0_i32_1 = arith.constant 0 : i32
    return %arg0, %c0_i32, %c0_i32_0 : i32, i32, i32
  }
  func.func @transform_1(%arg0: i32) -> (i32, i32) {
    %c0_i32 = arith.constant 0 : i32
    %c0_i32_0 = arith.constant 0 : i32
    %c0_i32_1 = arith.constant 0 : i32
    return %c0_i32, %c0_i32_0 : i32, i32
  }
  func.func @transform_2(%arg0: i32) -> (i32, i32) {
    %c0_i32 = arith.constant 0 : i32
    %c0_i32_0 = arith.constant 0 : i32
    %c0_i32_1 = arith.constant 0 : i32
    return %c0_i32, %c0_i32_0 : i32, i32
  }
  func.func @transform_3(%arg0: i32) -> (i32, i32) {
    %c0_i32 = arith.constant 0 : i32
    %c0_i32_0 = arith.constant 0 : i32
    %c0_i32_1 = arith.constant 0 : i32
    return %c0_i32, %c0_i32_0 : i32, i32
  }
  func.func @transform_4(%arg0: i32) -> (i32, i32) {
    %c0_i32 = arith.constant 0 : i32
    %c0_i32_0 = arith.constant 0 : i32
    %c0_i32_1 = arith.constant 0 : i32
    return %c0_i32, %c0_i32_0 : i32, i32
  }
  func.func @transform_5(%arg0: i32) -> (i32, i32) {
    %c0_i32 = arith.constant 0 : i32
    %c0_i32_0 = arith.constant 0 : i32
    %c0_i32_1 = arith.constant 0 : i32
    return %c0_i32, %c0_i32_0 : i32, i32
  }
  func.func @transform_6(%arg0: i32) -> (i32, i32) {
    %c0_i32 = arith.constant 0 : i32
    %c0_i32_0 = arith.constant 0 : i32
    %c0_i32_1 = arith.constant 0 : i32
    return %c0_i32, %c0_i32_0 : i32, i32
  }
  func.func @transform_7(%arg0: i32) -> (i32, i32, i32) {
    %c0_i32 = arith.constant 0 : i32
    %c0_i32_0 = arith.constant 0 : i32
    %c0_i32_1 = arith.constant 0 : i32
    return %arg0, %c0_i32, %c0_i32_0 : i32, i32, i32
  }
}

</mosaic_0001>

<bundles_post_ra>
// kernel: sketch_mlp_forward.7
= control target key start
LH: loop header
LB: loop body
LE: loop exit
PB: predicated region body
PF: predicated region fallthrough
CT: control target
= control target key end

     0   :  { %vm44_vm0 = vcmask 130048   ;;  %vm116_vm1 = vcmask 60416   ;;  %s195_s1 = inlined_call_operand.vmem [shape: bf16[16,8], index: 1, kind: input, shape index: {}]   ;;  %s196_s0 = inlined_call_operand.vmem [shape: bf16[32,16], index: 0, kind: input, shape index: {}]   ;;  %s197_s2 = inlined_call_operand.vmem [shape: f32[1,8], index: 2, kind: input, shape index: {}]   ;;  %s198_s3 = inlined_call_operand.vmem [shape: bf16[32,8], index: 3, kind: output, shape index: {}]  }
   0x1   :  { %v148_v0 = vld [vmem:[%s195_s1] sm:$0xff]   ;;  %v150_v2 = vld [vmem:[%s196_s0 + $0x8] sm:$0xff]  }
   0x2   :  { %v149_v1 = vld [vmem:[%s196_s0] sm:$0xff]   ;;  %142 = vmatprep.subr.bf16.mxu0 %v148_v0 }
   0x3   :  { %143 = vmatpush3.bf16.msra.mxu0 %v148_v0  ;;  %144 = vmatprep.mubr.msk.bf16.mxu0 %vm44_vm0, %v149_v1  ;;  %v125_v3 = vld [vmem:[%s197_s2] ss:$0 sm:$0xff] }
   0x6   :  { %145 = vmatmul.mubr.msk.bf16.vlgmr.msra.gmra.mxu0 %vm44_vm0, %v150_v2 }
  0xc6   :  { %v146_v4 = vpop.f32.mrf.mxu0 }
  0xc7   :  { %v94_v5 = vadd.f32 %v146_v4, %v125_v3 }
  0xc8   :  { %v85_v6 = vpop.f32.mrf.mxu0 }
  0xc9   :  { %v137_v7 = vpack.c.bf16 %v94_v5, %v94_v5  ;;  %v86_v8 = vadd.f32 %v125_v3, %v85_v6 }
  0xca   :  { %v147_v9 = vpop.f32.mrf.mxu0 }
  0xcb   :  { %119 = vst.msk [vmem:[%s198_s3 + $0x8] sm:$0xf] %vm116_vm1, %v137_v7  ;;  %v135_v10 = vpack.c.bf16 %v86_v8, %v86_v8  ;;  %v97_v11 = vadd.f32 %v147_v9, %v125_v3 }
  0xcc   :  { %v88_v12 = vpop.f32.mrf.mxu0 }
  0xcd   :  { %117 = vst.msk [vmem:[%s198_s3] sm:$0xf] %vm116_vm1, %v135_v10  ;;  %v138_v13 = vpack.c.bf16 %v97_v11, %v97_v11  ;;  %v89_v14 = vadd.f32 %v125_v3, %v88_v12 }
  0xcf   :  { %120 = vst.msk [vmem:[%s198_s3 + $0xc] sm:$0xf] %vm116_vm1, %v138_v13  ;;  %v136_v15 = vpack.c.bf16 %v89_v14, %v89_v14 }
  0xd1   :  { %118 = vst.msk [vmem:[%s198_s3 + $0x4] sm:$0xf] %vm116_vm1, %v136_v15 }

// kernel: sketch_mlp_forward.8
= control target key start
LH: loop header
LB: loop body
LE: loop exit
PB: predicated region body
PF: predicated region fallthrough
CT: control target
= control target key end

     0   :  { %s801_s24 = smov 0   ;;  %s883_s0 = inlined_call_operand.vmem [shape: bf16[2,16,8], index: 0, kind: input, shape index: {}]   ;;  %s884_s1 = inlined_call_operand.vmem [shape: bf16[8,16], index: 1, kind: input, shape index: {}]   ;;  %s885_s2 = inlined_call_operand.vmem [shape: f32[1,16], index: 2, kind: input, shape index: {}]   ;;  %s886_s3 = inlined_call_operand.vmem [shape: bf16[16,8], index: 3, kind: input, shape index: {}]   ;;  %s887_s4 = inlined_call_operand.vmem [shape: f32[1,8], index: 4, kind: input, shape index: {}]   ;;  %s888_s5 = inlined_call_operand.vmem [shape: f32[1,8], index: 5, kind: input, shape index: {}]   ;;  %s889_s6 = inlined_call_operand.vmem [shape: f32[1,8], index: 6, kind: input, shape index: {}]   ;;  %s890_s7 = inlined_call_operand.vmem [shape: bf16[2,16,8], index: 7, kind: output, shape index: {}]  }
   0x1 LB: > { %s684_s25 = sadd.s32 4294967295, %s757_s24   ;;  %p688_p0 = scmp.ge.s32.totalorder %s757_s24, 1  ;;  %s757_s24 = sphi %s801_s24, %s17_s24  }
   0x2   : > { %p237_p1 = scmp.lt.s32.totalorder %s757_s24, 3 }
   0x4   : > { %p238_p2 = pnand %p688_p0, %p237_p1 }
   0x5   : > { %p269_p3 = scmp.lt.s32.totalorder (!%p238_p2), %s684_s25, 1 }
   0x6   : > { %241 = sbr.rel (%p238_p2) target bundleno = 522 (0x20a), region = 48 }
   0xb   : > { %vm337_vm0 = vcmask 1043456   ;;  %v363_v0 = vld [vmem:[%s884_s1] sm:$0xf]  ;;  %v284_v1 = vlaneseq  ;;  %v759_v2 = vmov 0.0   ;;  %vm760_vm1 = vmmov 0   ;;  %s900_s25 = smov (!%p269_p3, %s684_s25), 1 }
   0xc   : > { %720 = vmatprep.subr.bf16.mxu0 %v759_v2  ;;  %v376_v3 = vsel %vm337_vm0, %v363_v0, 0  ;;  %722 = vmatprep.mubr.msk.bf16.mxu0 %vm760_vm1, %v759_v2  ;;  %s708_s28 = sshll.u32 %s900_s25, 3  ;;  %vm317_vm2 = vcmask 1040384   ;;  %vm328_vm3 = vcmask 1046528   ;;  %v742_v42 = vld [vmem:[%s886_s3] sm:$0xff]  }
   0xd   : > { %721 = vmatpush3.bf16.msra.mxu0 %v376_v3  ;;  %v285_v4 = vand.u32 127, %v284_v1  ;;  %v287_v5 = vshrl.u32 %v284_v1, 7  ;;  %726 = vmatprep.subr.bf16.mxu1 %v759_v2  ;;  %s273_s8 = scalar_lea.vmem %s883_s0, %s708_s28  ;;  %v693_v43 = vld [vmem:[%s885_s2] ss:$0 sm:$0xff]  ;;  %s278_s21 = scalar_lea.vmem %s890_s7, %s708_s28 }
   0xe   : > { %728 = vmatprep.mubr.msk.bf16.mxu1 %vm760_vm1, %v759_v2  ;;  %v713_v8 = vld [vmem:[%s273_s8] sm:$0xff]   ;;  %727 = vmatpush3.bf16.msra.mxu1 %v742_v42  ;;  %vm495_vm1 = vcmask 130048  }
   0xf   : > { %v288_v6 = vadd.s32 8, %v287_v5  ;;  %v293_v7 = vand.u32 3, %v287_v5  ;;  %vm346_vm4 = vcmp.lt.s32.totalorder %v285_v4, 2  ;;  %vm349_vm5 = vcmp.ge.s32.totalorder %v285_v4, 2 }
  0x10   : > { %v714_v10 = vunpack.c.l.bf16 %v713_v8  ;;  %v715_v11 = vunpack.c.h.bf16 %v713_v8  ;;  %vm350_vm6 = vcmp.lt.s32.totalorder %v285_v4, 4  ;;  %vm354_vm7 = vcmp.ge.s32.totalorder %v285_v4, 4 }
  0x11   : > { %v300_v9 = vand.u32 3, %v288_v6  ;;  %vm821_vm8 = vcmp.eq.s32.totalorder %v293_v7, 0  ;;  %vm355_vm10 = vcmp.lt.s32.totalorder %v285_v4, 6  ;;  %vm359_vm11 = vcmp.ge.s32.totalorder %v285_v4, 6  ;;  %vm351_vm14 = vmand %vm349_vm5, %vm350_vm6 }
  0x12   : > { %v338_v14 = vrot.slane %v714_v10, 4  ;;  %v339_v15 = vrot.slane %v715_v11, 4  ;;  %v318_v16 = vrot.slane %v714_v10, 7  ;;  %v319_v17 = vrot.slane %v715_v11, 7  ;;  %vm356_vm15 = vmand %vm354_vm7, %vm355_vm10 }
  0x13   : > { %vm825_vm9 = vcmp.eq.s32.totalorder %v300_v9, 0  ;;  %vm829_vm12 = vcmp.eq.s32.totalorder %v293_v7, 3  ;;  %vm833_vm13 = vcmp.eq.s32.totalorder %v300_v9, 3  ;;  %v329_v20 = vrot.slane %v714_v10, 1 }
  0x14   : > { %v330_v21 = vrot.slane %v715_v11, 1  ;;  %v340_v22 = vsel %vm337_vm0, %v338_v14, %v339_v15  ;;  %v343_v23 = vsel %vm337_vm0, %v714_v10, %v338_v14  ;;  %v345_v24 = vsel %vm337_vm0, %v339_v15, %v715_v11 }
  0x15   : > { %v320_v25 = vsel %vm317_vm2, %v318_v16, %v319_v17  ;;  %v323_v26 = vsel %vm317_vm2, %v714_v10, %v318_v16  ;;  %vm371_vm0 = vcmask 64512   ;;  %vm626_vm2 = vcmask 60416  }
  0x16   : > { %v325_v27 = vsel %vm825_vm9, %v715_v11, %v320_v25  ;;  %v331_v28 = vsel %vm328_vm3, %v329_v20, %v330_v21  ;;  %v334_v29 = vsel %vm328_vm3, %v330_v21, %v715_v11  ;;  %v324_v30 = vsel %vm821_vm8, %v714_v10, %v323_v26 }
  0x17   : > { %v335_v31 = vsel %vm829_vm12, %v714_v10, %v331_v28  ;;  %v336_v32 = vsel %vm833_vm13, %v715_v11, %v334_v29  ;;  %v348_v33 = vsel %vm346_vm4, %v325_v27, %v715_v11  ;;  %v347_v34 = vsel %vm346_vm4, %v324_v30, %v714_v10 }
  0x18   : > { %v353_v35 = vsel %vm351_vm14, %v336_v32, %v348_v33  ;;  %v352_v36 = vsel %vm351_vm14, %v335_v31, %v347_v34 }
  0x19   : > { %v358_v37 = vsel %vm356_vm15, %v340_v22, %v353_v35  ;;  %v357_v38 = vsel %vm356_vm15, %v343_v23, %v352_v36 }
  0x1a   : > { %v361_v39 = vsel %vm359_vm11, %v345_v24, %v358_v37  ;;  %v360_v40 = vsel %vm359_vm11, %v340_v22, %v357_v38 }
  0x1b   : > { %v362_v41 = vpack.c.bf16 %v361_v39, %v360_v40 }
  0x1d   : > { %723 = vmatmul.mubr.msk.bf16.vlgmr.msra.gmra.mxu0 %vm371_vm0, %v362_v41 }
  0xdd   : > { %v412_v44 = vpop.f32.mrf.mxu0 }
  0xde   : > { %v413_v45 = vadd.f32 %v693_v43, %v412_v44 }
  0xdf   : > { %v724_v46 = vpop.f32.mrf.mxu0 }
  0xe0   : > { %v421_v47 = vmul.f32 0.70710677, %v413_v45  ;;  %v419_v39 = vmul.f32 0.5, %v413_v45  ;;  %v697_v46 = vld [vmem:[%s887_s4] ss:$0 sm:$0xff] }
  0xe1   : > { %v415_v48 = vpop.f32.mrf.mxu0  ;;  %v701_v45 = vld [vmem:[%s889_s6] ss:$0 sm:$0xff] }
  0xe2   : > { %v695_v49 = vclamps-f32 %v421_v47, 4.0  ;;  %v416_v50 = vadd.f32 %v693_v43, %v415_v48  ;;  %v700_v48 = vld [vmem:[%s888_s5] ss:$0 sm:$0xff] }
  0xe3   : > { %v725_v51 = vpop.f32.mrf.mxu0 }
  0xe4   : > { %v427_v52 = vmul.f32 %v695_v49, %v695_v49  ;;  %v422_v53 = vmul.f32 0.70710677, %v416_v50  ;;  %v420_v40 = vmul.f32 0.5, %v416_v50 }
  0xe6   : > { %v429_v54 = vmul.f32 -2.7261424e-10, %v427_v52  ;;  %v453_v55 = vmul.f32 -1.45660715e-05, %v427_v52  ;;  %v696_v56 = vclamps-f32 %v422_v53, 4.0 }
  0xe8   : > { %v431_v57 = vadd.f32 2.7706815e-08, %v429_v54  ;;  %v455_v58 = vadd.f32 -0.00021337405, %v453_v55  ;;  %v428_v59 = vmul.f32 %v696_v56, %v696_v56 }
  0xea   : > { %v433_v60 = vmul.f32 %v431_v57, %v427_v52  ;;  %v457_v61 = vmul.f32 %v455_v58, %v427_v52  ;;  %v430_v62 = vmul.f32 -2.7261424e-10, %v428_v59  ;;  %v454_v63 = vmul.f32 -1.45660715e-05, %v428_v59 }
  0xec   : > { %v435_v0 = vadd.f32 -2.101024e-06, %v433_v60  ;;  %v459_v1 = vadd.f32 -0.001682827, %v457_v61  ;;  %v432_v2 = vadd.f32 2.7706815e-08, %v430_v62 }
  0xed   : > { %v456_v3 = vadd.f32 -0.00021337405, %v454_v63 }
  0xee   : > { %v437_v4 = vmul.f32 %v435_v0, %v427_v52  ;;  %v461_v5 = vmul.f32 %v459_v1, %v427_v52  ;;  %v434_v6 = vmul.f32 %v432_v2, %v428_v59 }
  0xef   : > { %v458_v7 = vmul.f32 %v456_v3, %v428_v59 }
  0xf0   : > { %v439_v8 = vadd.f32 -5.6925062e-05, %v437_v4  ;;  %v463_v9 = vadd.f32 -0.0073733293, %v461_v5  ;;  %v436_v10 = vadd.f32 -2.101024e-06, %v434_v6 }
  0xf1   : > { %v460_v11 = vadd.f32 -0.001682827, %v458_v7 }
  0xf2   : > { %v441_v12 = vmul.f32 %v439_v8, %v427_v52  ;;  %v465_v13 = vmul.f32 %v463_v9, %v427_v52  ;;  %v438_v14 = vmul.f32 %v436_v10, %v428_v59 }
  0xf3   : > { %v462_v15 = vmul.f32 %v460_v11, %v428_v59 }
  0xf4   : > { %v443_v16 = vadd.f32 -0.00073499064, %v441_v12  ;;  %v467_v17 = vadd.f32 -0.014264739, %v465_v13  ;;  %v440_v18 = vadd.f32 -5.6925062e-05, %v438_v14 }
  0xf5   : > { %v464_v19 = vadd.f32 -0.0073733293, %v462_v15 }
  0xf6   : > { %v445_v20 = vmul.f32 %v443_v16, %v427_v52  ;;  %743 = vrcp.f32 %v467_v17  ;;  %v442_v21 = vmul.f32 %v440_v18, %v428_v59 }
  0xf7   : > { %v466_v22 = vmul.f32 %v464_v19, %v428_v59 }
  0xf8   : > { %v447_v23 = vadd.f32 -0.0029546, %v445_v20  ;;  %v444_v24 = vadd.f32 -0.00073499064, %v442_v21 }
  0xf9   : > { %v468_v25 = vadd.f32 -0.014264739, %v466_v22 }
  0xfa   : > { %v446_v26 = vmul.f32 %v444_v24, %v428_v59  ;;  %v449_v27 = vmul.f32 %v447_v23, %v427_v52 }
  0xfb   : > { %745 = vrcp.f32 %v468_v25 }
  0xfc   : > { %v448_v28 = vadd.f32 -0.0029546, %v446_v26  ;;  %v451_v29 = vadd.f32 -0.016096033, %v449_v27 }
  0xfe   : > { %v450_v30 = vmul.f32 %v448_v28, %v428_v59  ;;  %v469_v32 = vmul.f32 %v695_v49, %v451_v29 }
 0x100   : > { %v452_v33 = vadd.f32 -0.016096033, %v450_v30 }
 0x102   : > { %v470_v35 = vmul.f32 %v696_v56, %v452_v33 }
 0x103   : > { %v744_v31 = vpop.eup %743 }
 0x104   : > { %v473_v34 = vmul.f32 %v744_v31, %v469_v32 }
 0x106   : > { %v475_v37 = vadd.f32 1.0, %v473_v34 }
 0x108   : > { %v746_v36 = vpop.eup %745  ;;  %v477_v42 = vmul.f32 %v475_v37, %v419_v39 }
 0x109   : > { %v474_v38 = vmul.f32 %v746_v36, %v470_v35 }
 0x10b   : > { %v476_v41 = vadd.f32 1.0, %v474_v38 }
 0x10d   : > { %v478_v43 = vmul.f32 %v476_v41, %v420_v40 }
 0x10f   : > { %v479_v44 = vpack.c.bf16 %v478_v43, %v477_v42 }
 0x111   : > { %729 = vmatmul.mubr.msk.bf16.vlgmr.msra.gmra.mxu1 %vm495_vm1, %v479_v44 }
 0x1d1   : > { %v533_v47 = vpop.f32.mrf.mxu1 }
 0x1d2   : > { %v534_v49 = vadd.f32 %v697_v46, %v533_v47 }
 0x1d3   : > { %v730_v50 = vpop.f32.mrf.mxu1 }
 0x1d4   : > { %v547_v51 = vmul.f32 %v700_v48, %v534_v49 }
 0x1d5   : > { %v536_v52 = vpop.f32.mrf.mxu1 }
 0x1d6   : > { %v556_v53 = vadd.f32 %v701_v45, %v547_v51  ;;  %v537_v54 = vadd.f32 %v697_v46, %v536_v52 }
 0x1d7   : > { %v731_v55 = vpop.f32.mrf.mxu1 }
 0x1d8   : > { %v560_v56 = vmul.f32 0.70710677, %v556_v53  ;;  %v548_v57 = vmul.f32 %v700_v48, %v537_v54  ;;  %v558_v43 = vmul.f32 0.5, %v556_v53 }
 0x1da   : > { %v702_v58 = vclamps-f32 %v560_v56, 4.0  ;;  %v557_v59 = vadd.f32 %v701_v45, %v548_v57 }
 0x1dc   : > { %v566_v60 = vmul.f32 %v702_v58, %v702_v58  ;;  %v561_v61 = vmul.f32 0.70710677, %v557_v59  ;;  %v559_v50 = vmul.f32 0.5, %v557_v59 }
 0x1de   : > { %v568_v62 = vmul.f32 -2.7261424e-10, %v566_v60  ;;  %v592_v63 = vmul.f32 -1.45660715e-05, %v566_v60  ;;  %v703_v0 = vclamps-f32 %v561_v61, 4.0 }
 0x1e0   : > { %v570_v1 = vadd.f32 2.7706815e-08, %v568_v62  ;;  %v594_v2 = vadd.f32 -0.00021337405, %v592_v63  ;;  %v567_v3 = vmul.f32 %v703_v0, %v703_v0 }
 0x1e2   : > { %v572_v4 = vmul.f32 %v570_v1, %v566_v60  ;;  %v596_v5 = vmul.f32 %v594_v2, %v566_v60  ;;  %v569_v6 = vmul.f32 -2.7261424e-10, %v567_v3  ;;  %v593_v7 = vmul.f32 -1.45660715e-05, %v567_v3 }
 0x1e4   : > { %v574_v8 = vadd.f32 -2.101024e-06, %v572_v4  ;;  %v598_v9 = vadd.f32 -0.001682827, %v596_v5  ;;  %v571_v10 = vadd.f32 2.7706815e-08, %v569_v6 }
 0x1e5   : > { %v595_v11 = vadd.f32 -0.00021337405, %v593_v7 }
 0x1e6   : > { %v576_v12 = vmul.f32 %v574_v8, %v566_v60  ;;  %v600_v13 = vmul.f32 %v598_v9, %v566_v60  ;;  %v573_v14 = vmul.f32 %v571_v10, %v567_v3 }
 0x1e7   : > { %v597_v15 = vmul.f32 %v595_v11, %v567_v3 }
 0x1e8   : > { %v578_v16 = vadd.f32 -5.6925062e-05, %v576_v12  ;;  %v602_v17 = vadd.f32 -0.0073733293, %v600_v13  ;;  %v575_v18 = vadd.f32 -2.101024e-06, %v573_v14 }
 0x1e9   : > { %v599_v19 = vadd.f32 -0.001682827, %v597_v15 }
 0x1ea   : > { %v580_v20 = vmul.f32 %v578_v16, %v566_v60  ;;  %v604_v21 = vmul.f32 %v602_v17, %v566_v60  ;;  %v577_v22 = vmul.f32 %v575_v18, %v567_v3 }
 0x1eb   : > { %v601_v23 = vmul.f32 %v599_v19, %v567_v3 }
 0x1ec   : > { %v582_v24 = vadd.f32 -0.00073499064, %v580_v20  ;;  %v606_v25 = vadd.f32 -0.014264739, %v604_v21  ;;  %v579_v26 = vadd.f32 -5.6925062e-05, %v577_v22 }
 0x1ed   : > { %v603_v27 = vadd.f32 -0.0073733293, %v601_v23 }
 0x1ee   : > { %v584_v28 = vmul.f32 %v582_v24, %v566_v60  ;;  %747 = vrcp.f32 %v606_v25  ;;  %v581_v29 = vmul.f32 %v579_v26, %v567_v3 }
 0x1ef   : > { %v605_v30 = vmul.f32 %v603_v27, %v567_v3 }
 0x1f0   : > { %v586_v31 = vadd.f32 -0.0029546, %v584_v28  ;;  %v583_v32 = vadd.f32 -0.00073499064, %v581_v29 }
 0x1f1   : > { %v607_v33 = vadd.f32 -0.014264739, %v605_v30 }
 0x1f2   : > { %v588_v34 = vmul.f32 %v586_v31, %v566_v60  ;;  %v585_v35 = vmul.f32 %v583_v32, %v567_v3 }
 0x1f3   : > { %749 = vrcp.f32 %v607_v33 }
 0x1f4   : > { %v587_v36 = vadd.f32 -0.0029546, %v585_v35  ;;  %v590_v37 = vadd.f32 -0.016096033, %v588_v34 }
 0x1f6   : > { %v589_v38 = vmul.f32 %v587_v36, %v567_v3  ;;  %v608_v39 = vmul.f32 %v702_v58, %v590_v37 }
 0x1f8   : > { %v591_v41 = vadd.f32 -0.016096033, %v589_v38 }
 0x1fa   : > { %v609_v46 = vmul.f32 %v703_v0, %v591_v41 }
 0x1fb   : > { %v748_v40 = vpop.eup %747 }
 0x1fc   : > { %v612_v42 = vmul.f32 %v748_v40, %v608_v39 }
 0x1fe   : > { %v614_v44 = vadd.f32 1.0, %v612_v42 }
 0x200   : > { %v750_v47 = vpop.eup %749  ;;  %v616_v48 = vmul.f32 %v614_v44, %v558_v43 }
 0x201   : > { %v613_v49 = vmul.f32 %v750_v47, %v609_v46 }
 0x202   : > { %v710_v45 = vpack.c.bf16 %v616_v48, %v616_v48 }
 0x203   : > { %v615_v51 = vadd.f32 1.0, %v613_v49 }
 0x204   : > { %627 = vst.msk [vmem:[%s278_s21] sm:$0xf] %vm626_vm2, %v710_v45 }
 0x205   : > { %v617_v52 = vmul.f32 %v615_v51, %v559_v50 }
 0x207   : > { %v711_v54 = vpack.c.bf16 %v617_v52, %v617_v52 }
 0x209   : > { %628 = vst.msk [vmem:[%s278_s21 + $0x4] sm:$0xf] %vm626_vm2, %v711_v54 }
 0x20a PF: > { %s17_s24 = sadd.s32 1, %s757_s24  }
 0x20b   : > { %p14_p4 = scmp.ge.s32.totalorder %s17_s24, 4  }
 0x20d   :  { %16 = sbr.rel (!%p14_p4) target bundleno = 1 (0x1), region = 78 }

// kernel: sketch_mlp_forward.9
= control target key start
LH: loop header
LB: loop body
LE: loop exit
PB: predicated region body
PF: predicated region fallthrough
CT: control target
= control target key end

     0   :  { %s801_s24 = smov 0   ;;  %s883_s0 = inlined_call_operand.vmem [shape: bf16[2,16,8], index: 0, kind: input, shape index: {}]   ;;  %s884_s1 = inlined_call_operand.vmem [shape: bf16[8,16], index: 1, kind: input, shape index: {}]   ;;  %s885_s2 = inlined_call_operand.vmem [shape: f32[1,16], index: 2, kind: input, shape index: {}]   ;;  %s886_s3 = inlined_call_operand.vmem [shape: bf16[16,16], index: 3, kind: input, shape index: {}]   ;;  %s887_s4 = inlined_call_operand.vmem [shape: f32[1,16], index: 4, kind: input, shape index: {}]   ;;  %s888_s5 = inlined_call_operand.vmem [shape: f32[1,16], index: 5, kind: input, shape index: {}]   ;;  %s889_s6 = inlined_call_operand.vmem [shape: f32[1,16], index: 6, kind: input, shape index: {}]   ;;  %s890_s7 = inlined_call_operand.vmem [shape: bf16[2,16,16], index: 7, kind: output, shape index: {}]  }
   0x1 LB: > { %s684_s25 = sadd.s32 4294967295, %s757_s24   ;;  %p688_p0 = scmp.ge.s32.totalorder %s757_s24, 1  ;;  %s757_s24 = sphi %s801_s24, %s17_s24  }
   0x2   : > { %p237_p1 = scmp.lt.s32.totalorder %s757_s24, 3 }
   0x4   : > { %p238_p2 = pnand %p688_p0, %p237_p1 }
   0x5   : > { %p269_p3 = scmp.lt.s32.totalorder (!%p238_p2), %s684_s25, 1 }
   0x6   : > { %241 = sbr.rel (%p238_p2) target bundleno = 522 (0x20a), region = 48 }
   0xb   : > { %vm337_vm0 = vcmask 1043456   ;;  %v363_v0 = vld [vmem:[%s884_s1] sm:$0xf]  ;;  %v284_v1 = vlaneseq  ;;  %v759_v2 = vmov 0.0   ;;  %vm760_vm1 = vmmov 0   ;;  %s900_s25 = smov (!%p269_p3, %s684_s25), 1 }
   0xc   : > { %720 = vmatprep.subr.bf16.mxu0 %v759_v2  ;;  %v376_v3 = vsel %vm337_vm0, %v363_v0, 0  ;;  %722 = vmatprep.mubr.msk.bf16.mxu0 %vm760_vm1, %v759_v2  ;;  %s708_s28 = sshll.u32 %s900_s25, 3  ;;  %vm317_vm2 = vcmask 1040384   ;;  %vm328_vm3 = vcmask 1046528   ;;  %v742_v42 = vld [vmem:[%s886_s3] sm:$0xff]  }
   0xd   : > { %721 = vmatpush3.bf16.msra.mxu0 %v376_v3  ;;  %v285_v4 = vand.u32 127, %v284_v1  ;;  %v287_v5 = vshrl.u32 %v284_v1, 7  ;;  %726 = vmatprep.subr.bf16.mxu1 %v759_v2  ;;  %s273_s8 = scalar_lea.vmem %s883_s0, %s708_s28  ;;  %v693_v43 = vld [vmem:[%s885_s2] ss:$0 sm:$0xff]  ;;  %s278_s21 = scalar_lea.vmem %s890_s7, %s708_s28 }
   0xe   : > { %728 = vmatprep.mubr.msk.bf16.mxu1 %vm760_vm1, %v759_v2  ;;  %v713_v8 = vld [vmem:[%s273_s8] sm:$0xff]   ;;  %727 = vmatpush3.bf16.msra.mxu1 %v742_v42  ;;  %vm495_vm1 = vcmask 130048  }
   0xf   : > { %v288_v6 = vadd.s32 8, %v287_v5  ;;  %v293_v7 = vand.u32 3, %v287_v5  ;;  %vm346_vm4 = vcmp.lt.s32.totalorder %v285_v4, 2  ;;  %vm349_vm5 = vcmp.ge.s32.totalorder %v285_v4, 2 }
  0x10   : > { %v714_v10 = vunpack.c.l.bf16 %v713_v8  ;;  %v715_v11 = vunpack.c.h.bf16 %v713_v8  ;;  %vm350_vm6 = vcmp.lt.s32.totalorder %v285_v4, 4  ;;  %vm354_vm7 = vcmp.ge.s32.totalorder %v285_v4, 4 }
  0x11   : > { %v300_v9 = vand.u32 3, %v288_v6  ;;  %vm821_vm8 = vcmp.eq.s32.totalorder %v293_v7, 0  ;;  %vm355_vm10 = vcmp.lt.s32.totalorder %v285_v4, 6  ;;  %vm359_vm11 = vcmp.ge.s32.totalorder %v285_v4, 6  ;;  %vm351_vm14 = vmand %vm349_vm5, %vm350_vm6 }
  0x12   : > { %v338_v14 = vrot.slane %v714_v10, 4  ;;  %v339_v15 = vrot.slane %v715_v11, 4  ;;  %v318_v16 = vrot.slane %v714_v10, 7  ;;  %v319_v17 = vrot.slane %v715_v11, 7  ;;  %vm356_vm15 = vmand %vm354_vm7, %vm355_vm10 }
  0x13   : > { %vm825_vm9 = vcmp.eq.s32.totalorder %v300_v9, 0  ;;  %vm829_vm12 = vcmp.eq.s32.totalorder %v293_v7, 3  ;;  %vm833_vm13 = vcmp.eq.s32.totalorder %v300_v9, 3  ;;  %v329_v20 = vrot.slane %v714_v10, 1 }
  0x14   : > { %v330_v21 = vrot.slane %v715_v11, 1  ;;  %v340_v22 = vsel %vm337_vm0, %v338_v14, %v339_v15  ;;  %v343_v23 = vsel %vm337_vm0, %v714_v10, %v338_v14  ;;  %v345_v24 = vsel %vm337_vm0, %v339_v15, %v715_v11 }
  0x15   : > { %v320_v25 = vsel %vm317_vm2, %v318_v16, %v319_v17  ;;  %v323_v26 = vsel %vm317_vm2, %v714_v10, %v318_v16  ;;  %vm371_vm0 = vcmask 64512   ;;  %vm626_vm2 = vcmask 125952  }
  0x16   : > { %v325_v27 = vsel %vm825_vm9, %v715_v11, %v320_v25  ;;  %v331_v28 = vsel %vm328_vm3, %v329_v20, %v330_v21  ;;  %v334_v29 = vsel %vm328_vm3, %v330_v21, %v715_v11  ;;  %v324_v30 = vsel %vm821_vm8, %v714_v10, %v323_v26 }
  0x17   : > { %v335_v31 = vsel %vm829_vm12, %v714_v10, %v331_v28  ;;  %v336_v32 = vsel %vm833_vm13, %v715_v11, %v334_v29  ;;  %v348_v33 = vsel %vm346_vm4, %v325_v27, %v715_v11  ;;  %v347_v34 = vsel %vm346_vm4, %v324_v30, %v714_v10 }
  0x18   : > { %v353_v35 = vsel %vm351_vm14, %v336_v32, %v348_v33  ;;  %v352_v36 = vsel %vm351_vm14, %v335_v31, %v347_v34 }
  0x19   : > { %v358_v37 = vsel %vm356_vm15, %v340_v22, %v353_v35  ;;  %v357_v38 = vsel %vm356_vm15, %v343_v23, %v352_v36 }
  0x1a   : > { %v361_v39 = vsel %vm359_vm11, %v345_v24, %v358_v37  ;;  %v360_v40 = vsel %vm359_vm11, %v340_v22, %v357_v38 }
  0x1b   : > { %v362_v41 = vpack.c.bf16 %v361_v39, %v360_v40 }
  0x1d   : > { %723 = vmatmul.mubr.msk.bf16.vlgmr.msra.gmra.mxu0 %vm371_vm0, %v362_v41 }
  0xdd   : > { %v412_v44 = vpop.f32.mrf.mxu0 }
  0xde   : > { %v413_v45 = vadd.f32 %v693_v43, %v412_v44 }
  0xdf   : > { %v724_v46 = vpop.f32.mrf.mxu0 }
  0xe0   : > { %v421_v47 = vmul.f32 0.70710677, %v413_v45  ;;  %v419_v39 = vmul.f32 0.5, %v413_v45  ;;  %v697_v46 = vld [vmem:[%s887_s4] ss:$0 sm:$0xff] }
  0xe1   : > { %v415_v48 = vpop.f32.mrf.mxu0  ;;  %v701_v45 = vld [vmem:[%s889_s6] ss:$0 sm:$0xff] }
  0xe2   : > { %v695_v49 = vclamps-f32 %v421_v47, 4.0  ;;  %v416_v50 = vadd.f32 %v693_v43, %v415_v48  ;;  %v700_v48 = vld [vmem:[%s888_s5] ss:$0 sm:$0xff] }
  0xe3   : > { %v725_v51 = vpop.f32.mrf.mxu0 }
  0xe4   : > { %v427_v52 = vmul.f32 %v695_v49, %v695_v49  ;;  %v422_v53 = vmul.f32 0.70710677, %v416_v50  ;;  %v420_v40 = vmul.f32 0.5, %v416_v50 }
  0xe6   : > { %v429_v54 = vmul.f32 -2.7261424e-10, %v427_v52  ;;  %v453_v55 = vmul.f32 -1.45660715e-05, %v427_v52  ;;  %v696_v56 = vclamps-f32 %v422_v53, 4.0 }
  0xe8   : > { %v431_v57 = vadd.f32 2.7706815e-08, %v429_v54  ;;  %v455_v58 = vadd.f32 -0.00021337405, %v453_v55  ;;  %v428_v59 = vmul.f32 %v696_v56, %v696_v56 }
  0xea   : > { %v433_v60 = vmul.f32 %v431_v57, %v427_v52  ;;  %v457_v61 = vmul.f32 %v455_v58, %v427_v52  ;;  %v430_v62 = vmul.f32 -2.7261424e-10, %v428_v59  ;;  %v454_v63 = vmul.f32 -1.45660715e-05, %v428_v59 }
  0xec   : > { %v435_v0 = vadd.f32 -2.101024e-06, %v433_v60  ;;  %v459_v1 = vadd.f32 -0.001682827, %v457_v61  ;;  %v432_v2 = vadd.f32 2.7706815e-08, %v430_v62 }
  0xed   : > { %v456_v3 = vadd.f32 -0.00021337405, %v454_v63 }
  0xee   : > { %v437_v4 = vmul.f32 %v435_v0, %v427_v52  ;;  %v461_v5 = vmul.f32 %v459_v1, %v427_v52  ;;  %v434_v6 = vmul.f32 %v432_v2, %v428_v59 }
  0xef   : > { %v458_v7 = vmul.f32 %v456_v3, %v428_v59 }
  0xf0   : > { %v439_v8 = vadd.f32 -5.6925062e-05, %v437_v4  ;;  %v463_v9 = vadd.f32 -0.0073733293, %v461_v5  ;;  %v436_v10 = vadd.f32 -2.101024e-06, %v434_v6 }
  0xf1   : > { %v460_v11 = vadd.f32 -0.001682827, %v458_v7 }
  0xf2   : > { %v441_v12 = vmul.f32 %v439_v8, %v427_v52  ;;  %v465_v13 = vmul.f32 %v463_v9, %v427_v52  ;;  %v438_v14 = vmul.f32 %v436_v10, %v428_v59 }
  0xf3   : > { %v462_v15 = vmul.f32 %v460_v11, %v428_v59 }
  0xf4   : > { %v443_v16 = vadd.f32 -0.00073499064, %v441_v12  ;;  %v467_v17 = vadd.f32 -0.014264739, %v465_v13  ;;  %v440_v18 = vadd.f32 -5.6925062e-05, %v438_v14 }
  0xf5   : > { %v464_v19 = vadd.f32 -0.0073733293, %v462_v15 }
  0xf6   : > { %v445_v20 = vmul.f32 %v443_v16, %v427_v52  ;;  %743 = vrcp.f32 %v467_v17  ;;  %v442_v21 = vmul.f32 %v440_v18, %v428_v59 }
  0xf7   : > { %v466_v22 = vmul.f32 %v464_v19, %v428_v59 }
  0xf8   : > { %v447_v23 = vadd.f32 -0.0029546, %v445_v20  ;;  %v444_v24 = vadd.f32 -0.00073499064, %v442_v21 }
  0xf9   : > { %v468_v25 = vadd.f32 -0.014264739, %v466_v22 }
  0xfa   : > { %v446_v26 = vmul.f32 %v444_v24, %v428_v59  ;;  %v449_v27 = vmul.f32 %v447_v23, %v427_v52 }
  0xfb   : > { %745 = vrcp.f32 %v468_v25 }
  0xfc   : > { %v448_v28 = vadd.f32 -0.0029546, %v446_v26  ;;  %v451_v29 = vadd.f32 -0.016096033, %v449_v27 }
  0xfe   : > { %v450_v30 = vmul.f32 %v448_v28, %v428_v59  ;;  %v469_v32 = vmul.f32 %v695_v49, %v451_v29 }
 0x100   : > { %v452_v33 = vadd.f32 -0.016096033, %v450_v30 }
 0x102   : > { %v470_v35 = vmul.f32 %v696_v56, %v452_v33 }
 0x103   : > { %v744_v31 = vpop.eup %743 }
 0x104   : > { %v473_v34 = vmul.f32 %v744_v31, %v469_v32 }
 0x106   : > { %v475_v37 = vadd.f32 1.0, %v473_v34 }
 0x108   : > { %v746_v36 = vpop.eup %745  ;;  %v477_v42 = vmul.f32 %v475_v37, %v419_v39 }
 0x109   : > { %v474_v38 = vmul.f32 %v746_v36, %v470_v35 }
 0x10b   : > { %v476_v41 = vadd.f32 1.0, %v474_v38 }
 0x10d   : > { %v478_v43 = vmul.f32 %v476_v41, %v420_v40 }
 0x10f   : > { %v479_v44 = vpack.c.bf16 %v478_v43, %v477_v42 }
 0x111   : > { %729 = vmatmul.mubr.msk.bf16.vlgmr.msra.gmra.mxu1 %vm495_vm1, %v479_v44 }
 0x1d1   : > { %v533_v47 = vpop.f32.mrf.mxu1 }
 0x1d2   : > { %v534_v49 = vadd.f32 %v697_v46, %v533_v47 }
 0x1d3   : > { %v730_v50 = vpop.f32.mrf.mxu1 }
 0x1d4   : > { %v547_v51 = vmul.f32 %v700_v48, %v534_v49 }
 0x1d5   : > { %v536_v52 = vpop.f32.mrf.mxu1 }
 0x1d6   : > { %v556_v53 = vadd.f32 %v701_v45, %v547_v51  ;;  %v537_v54 = vadd.f32 %v697_v46, %v536_v52 }
 0x1d7   : > { %v731_v55 = vpop.f32.mrf.mxu1 }
 0x1d8   : > { %v560_v56 = vmul.f32 0.70710677, %v556_v53  ;;  %v548_v57 = vmul.f32 %v700_v48, %v537_v54  ;;  %v558_v43 = vmul.f32 0.5, %v556_v53 }
 0x1da   : > { %v702_v58 = vclamps-f32 %v560_v56, 4.0  ;;  %v557_v59 = vadd.f32 %v701_v45, %v548_v57 }
 0x1dc   : > { %v566_v60 = vmul.f32 %v702_v58, %v702_v58  ;;  %v561_v61 = vmul.f32 0.70710677, %v557_v59  ;;  %v559_v50 = vmul.f32 0.5, %v557_v59 }
 0x1de   : > { %v568_v62 = vmul.f32 -2.7261424e-10, %v566_v60  ;;  %v592_v63 = vmul.f32 -1.45660715e-05, %v566_v60  ;;  %v703_v0 = vclamps-f32 %v561_v61, 4.0 }
 0x1e0   : > { %v570_v1 = vadd.f32 2.7706815e-08, %v568_v62  ;;  %v594_v2 = vadd.f32 -0.00021337405, %v592_v63  ;;  %v567_v3 = vmul.f32 %v703_v0, %v703_v0 }
 0x1e2   : > { %v572_v4 = vmul.f32 %v570_v1, %v566_v60  ;;  %v596_v5 = vmul.f32 %v594_v2, %v566_v60  ;;  %v569_v6 = vmul.f32 -2.7261424e-10, %v567_v3  ;;  %v593_v7 = vmul.f32 -1.45660715e-05, %v567_v3 }
 0x1e4   : > { %v574_v8 = vadd.f32 -2.101024e-06, %v572_v4  ;;  %v598_v9 = vadd.f32 -0.001682827, %v596_v5  ;;  %v571_v10 = vadd.f32 2.7706815e-08, %v569_v6 }
 0x1e5   : > { %v595_v11 = vadd.f32 -0.00021337405, %v593_v7 }
 0x1e6   : > { %v576_v12 = vmul.f32 %v574_v8, %v566_v60  ;;  %v600_v13 = vmul.f32 %v598_v9, %v566_v60  ;;  %v573_v14 = vmul.f32 %v571_v10, %v567_v3 }
 0x1e7   : > { %v597_v15 = vmul.f32 %v595_v11, %v567_v3 }
 0x1e8   : > { %v578_v16 = vadd.f32 -5.6925062e-05, %v576_v12  ;;  %v602_v17 = vadd.f32 -0.0073733293, %v600_v13  ;;  %v575_v18 = vadd.f32 -2.101024e-06, %v573_v14 }
 0x1e9   : > { %v599_v19 = vadd.f32 -0.001682827, %v597_v15 }
 0x1ea   : > { %v580_v20 = vmul.f32 %v578_v16, %v566_v60  ;;  %v604_v21 = vmul.f32 %v602_v17, %v566_v60  ;;  %v577_v22 = vmul.f32 %v575_v18, %v567_v3 }
 0x1eb   : > { %v601_v23 = vmul.f32 %v599_v19, %v567_v3 }
 0x1ec   : > { %v582_v24 = vadd.f32 -0.00073499064, %v580_v20  ;;  %v606_v25 = vadd.f32 -0.014264739, %v604_v21  ;;  %v579_v26 = vadd.f32 -5.6925062e-05, %v577_v22 }
 0x1ed   : > { %v603_v27 = vadd.f32 -0.0073733293, %v601_v23 }
 0x1ee   : > { %v584_v28 = vmul.f32 %v582_v24, %v566_v60  ;;  %747 = vrcp.f32 %v606_v25  ;;  %v581_v29 = vmul.f32 %v579_v26, %v567_v3 }
 0x1ef   : > { %v605_v30 = vmul.f32 %v603_v27, %v567_v3 }
 0x1f0   : > { %v586_v31 = vadd.f32 -0.0029546, %v584_v28  ;;  %v583_v32 = vadd.f32 -0.00073499064, %v581_v29 }
 0x1f1   : > { %v607_v33 = vadd.f32 -0.014264739, %v605_v30 }
 0x1f2   : > { %v588_v34 = vmul.f32 %v586_v31, %v566_v60  ;;  %v585_v35 = vmul.f32 %v583_v32, %v567_v3 }
 0x1f3   : > { %749 = vrcp.f32 %v607_v33 }
 0x1f4   : > { %v587_v36 = vadd.f32 -0.0029546, %v585_v35  ;;  %v590_v37 = vadd.f32 -0.016096033, %v588_v34 }
 0x1f6   : > { %v589_v38 = vmul.f32 %v587_v36, %v567_v3  ;;  %v608_v39 = vmul.f32 %v702_v58, %v590_v37 }
 0x1f8   : > { %v591_v41 = vadd.f32 -0.016096033, %v589_v38 }
 0x1fa   : > { %v609_v46 = vmul.f32 %v703_v0, %v591_v41 }
 0x1fb   : > { %v748_v40 = vpop.eup %747 }
 0x1fc   : > { %v612_v42 = vmul.f32 %v748_v40, %v608_v39 }
 0x1fe   : > { %v614_v44 = vadd.f32 1.0, %v612_v42 }
 0x200   : > { %v750_v47 = vpop.eup %749  ;;  %v616_v48 = vmul.f32 %v614_v44, %v558_v43 }
 0x201   : > { %v613_v49 = vmul.f32 %v750_v47, %v609_v46 }
 0x202   : > { %v710_v45 = vpack.c.bf16 %v616_v48, %v616_v48 }
 0x203   : > { %v615_v51 = vadd.f32 1.0, %v613_v49 }
 0x204   : > { %627 = vst.msk [vmem:[%s278_s21] sm:$0xf] %vm626_vm2, %v710_v45 }
 0x205   : > { %v617_v52 = vmul.f32 %v615_v51, %v559_v50 }
 0x207   : > { %v711_v54 = vpack.c.bf16 %v617_v52, %v617_v52 }
 0x209   : > { %628 = vst.msk [vmem:[%s278_s21 + $0x4] sm:$0xf] %vm626_vm2, %v711_v54 }
 0x20a PF: > { %s17_s24 = sadd.s32 1, %s757_s24  }
 0x20b   : > { %p14_p4 = scmp.ge.s32.totalorder %s17_s24, 4  }
 0x20d   :  { %16 = sbr.rel (!%p14_p4) target bundleno = 1 (0x1), region = 78 }

// kernel: sketch_mlp_forward.13
= control target key start
LH: loop header
LB: loop body
LE: loop exit
PB: predicated region body
PF: predicated region fallthrough
CT: control target
= control target key end

     0   :  { %8 = vsyncpa [#allocation3], 0  ;;  %s571_s0 = inlined_call_operand.vmem [shape: bf16[2,4,16], index: 0, kind: input, shape index: {}]   ;;  %s572_s1 = inlined_call_operand.vmem [shape: f32[16,10], index: 1, kind: input, shape index: {}]   ;;  %s573_s2 = inlined_call_operand.vmem [shape: f32[1,10], index: 2, kind: input, shape index: {}]   ;;  %s574_s3 = inlined_call_operand.hbm [shape: f32[2,1,10], index: 3, kind: output, shape index: {}]  }
   0x1   :  { %10 = vsyncpa [#allocation3 + $0x1], 0  ;;  %s469_s12 = smov 0   ;;  %s471_s13 = smov 0  }
   0x2   :  { %s473_s14 = smov 0   ;;  %s475_s15 = smov 0  }
   0x3 LB: > { %s490_s16 = sadd.s32 4294967295, %s444_s15   ;;  %s324_s17 = sadd.s32 4294967294, %s444_s15   ;;  %s444_s15 = sphi %s475_s15, %s580_s15   ;;  %s440_s14 = sphi %s473_s14, %s579_s14   ;;  %s436_s13 = sphi %s471_s13, %s578_s13   ;;  %s432_s12 = sphi %s469_s12, %s577_s12  }
   0x4   : > { %s494_s18 = sadd.s32 1, %s444_s15   ;;  %s91_s19 = sadd.s32 1, %s440_s14 }
   0x5   : > { %s88_s20 = ssub.s32 %s444_s15, %s494_s18  ;;  %p101_p0 = scmp.ne.s32.totalorder %s440_s14, %s436_s13 }
   0x6   : > { %p89_p1 = scmp.eq.s32.totalorder %s88_s20, 0  ;;  %p102_p2 = scmp.eq.s32.totalorder %s490_s16, 1 }
   0x7   : > { %p107_p3 = scmp.ne.s32.totalorder %s436_s13, %s432_s12  ;;  %p108_p4 = scmp.eq.s32.totalorder %s324_s17, 1 }
   0x8   : > { %s505_s21 = scalar_select %p89_p1, %s440_s14, %s91_s19  }
   0x9   : > { %p507_p5 = por %p102_p2, %p101_p0  ;;  %p511_p6 = por %p108_p4, %p107_p3 }
   0xa   : > { %p327_p7 = scmp.ge.s32.totalorder %s444_s15, 1  ;;  %p139_p8 = scmp.lt.s32.totalorder %s444_s15, 3 }
   0xc   : > { %p140_p9 = pnand %p327_p7, %p139_p8 }
   0xd   : > { %p161_p10 = scmp.lt.s32.totalorder (!%p140_p9), %s490_s16, 1  ;;  %s159_s6 = sand.u32 (!%p140_p9), 1, %s436_s13  }
   0xe   : > { %143 = sbr.rel (%p140_p9) target bundleno = 249 (0xf9), region = 32  ;;  %s330_s9 = sshll.u32 (!%p140_p9), %s490_s16, 4 }
   0xf   : > { %s160_s10 = scalar_lea.vmem (!%p140_p9), [#allocation2], %s159_s6  ;;  %s536_s20 = scalar_lea.hbm (!%p140_p9), %s574_s3, %s330_s9 }
  0x10   : > { %s269_s11 = sshll.u32 (!%p140_p9), %s160_s10, 4  ;;  %s257_s24 = scalar_lea.sflag (!%p140_p9), [#allocation3], %s159_s6  ;;  %s270_s11 = int_to_ptr.vmem [resolvable:$true] %s269_s11 }
  0x11   : > { %s384_s25 = scalar_lea.vmem (!%p140_p9), %s270_s11, 16 }
  0x12   : > { %p385_p11 = scmp.ne.s32.totalorder (!%p140_p9), %s270_s11, %s384_s25 }
  0x13   : > { %v178_v0 = vld [vmem:[%s572_s1 + $0x8] sm:$0xff]  ;;  %v446_v1 = vmov 0.0   ;;  %v177_v2 = vld [vmem:[%s572_s1] sm:$0xff]  ;;  %vm447_vm0 = vmmov 0   ;;  %s162_s28 = scalar_select %p161_p10, %s490_s16, 1  ;;  %vm167_vm1 = vcmask 125952  }
  0x14   : > { %336 = vmatprep.subr.mxu0 %v446_v1  ;;  %340 = vmatprep.mubr.msk.f32.mxu0 %vm447_vm0, %v446_v1  ;;  %vm180_vm2 = vcmask 130048   ;;  %v179_v13 = vld [vmem:[%s573_s2] sm:$0x1]  ;;  %vm254_vm3 = vcmask 73728   ;;  %p386_p12 = pnand %p385_p11, %p507_p5  ;;  %s448_s16 = smov [#allocation2]  }
  0x15   : > { %337 = vmatpush3.msra.mxu0 %v178_v0  ;;  %s328_s29 = sshll.u32 %s162_s28, 1  ;;  %s388_s26 = sshll.u32 %s448_s16, 4  ;;  %s389_s26 = int_to_ptr.vmem [resolvable:$false] %s388_s26 }
  0x16   : > { %338 = vmatprep.subr.mxu0 %v446_v1  ;;  %s164_s5 = scalar_lea.vmem %s571_s0, %s328_s29  ;;  %p387_p13 = pneg %p386_p12 }
  0x17   : > { %339 = vmatpush3.msra.mxu0 %v177_v2  ;;  %v165_v3 = vld [vmem:[%s164_s5] sm:$0x3]  ;;  %s390_s27 = scalar_lea.vmem %s389_s26, 32  ;;  %p391_p0 = scmp.lt.s32.totalorder %s270_s11, %s389_s26 }
  0x18   : > { %v166_v4 = vunpack.c.l.bf16 %v165_v3  ;;  %p392_p1 = scmp.lt.s32.totalorder %s390_s27, %s384_s25 }
  0x1a   : > { %v168_v5 = vsel %vm167_vm1, %v166_v4, 0.0  ;;  %p393_p2 = por %p392_p1, %p391_p0 }
  0x1b   : > { %v169_v6 = vrot.slane %v168_v5, 4 }
  0x1c   : > { %p394_p3 = pnand %p393_p2, %p387_p13 }
  0x1d   : > { %v170_v7 = vadd.f32 %v169_v6, %v168_v5 }
  0x1f   : > { %v171_v8 = vrot.slane %v170_v7, 2 }
  0x21   : > { %v172_v9 = vadd.f32 %v171_v8, %v170_v7 }
  0x23   : > { %v173_v10 = vrot.slane %v172_v9, 1 }
  0x25   : > { %v174_v11 = vadd.f32 %v173_v10, %v172_v9 }
  0x27   : > { %v176_v12 = vmul.f32 0.25, %v174_v11 }
  0x29   : > { %341 = vmatmul.mubr.msk.f32.vlgmr.msra.gmra.mxu0 %vm180_vm2, %v176_v12 }
  0xe9   : > { %v250_v14 = vpop.f32.mrf.mxu0 }
  0xea   : > { %v251_v15 = vadd.f32 %v250_v14, %v179_v13 }
  0xeb   : > { %v342_v16 = vpop.f32.mrf.mxu0 }
  0xec   : > { %255 = vst.msk [vmem:[%s160_s10] sm:$0x1] %vm254_vm3, %v251_v15 }
  0xed   : > { %397 = shalt.err (!%p394_p3)
}
  0xee   : > { %s398_s28 = scalar_lea.hbm %s536_s20, 16  ;;  %s402_s4 = scalar_lea.hbm %s574_s3, 32 }
  0xef   : > { %p399_p4 = scmp.ne.s32.totalorder %s536_s20, %s398_s28  ;;  %p403_p9 = scmp.lt.s32.totalorder %s536_s20, %s574_s3 }
  0xf0   : > { %p404_p10 = scmp.lt.s32.totalorder %s402_s4, %s398_s28 }
  0xf1   : > { %p400_p7 = pnand %p399_p4, %p507_p5 }
  0xf2   : > { %p405_p11 = por %p404_p10, %p403_p9 }
  0xf3   : > { %p401_p8 = pneg %p400_p7 }
  0xf5   : > { %p406_p12 = pnand %p405_p11, %p401_p8 }
  0xf7   : > { %409 = shalt.err (!%p406_p12)
}
  0xf8   : > { %343 = dma.vmem_to_hbm [thread:$0]  (%p507_p5), %s270_s11, 16, %s536_s20, %s257_s24  }
  0xf9 PF: > { %p349_p13 = scmp.ge.s32.totalorder %s444_s15, 2  ;;  %s281_s7 = sand.u32 1, %s432_s12  }
  0xfa   : > { %s282_s8 = scalar_lea.sflag [#allocation3], %s281_s7 }
  0xfb   : > { %p346_p0 = pnand %p349_p13, %p511_p6 }
  0xfd   : > { %p347_p1 = pneg %p346_p0 }
  0xff   : > { %427 = dma.done.wait (%p347_p1), %s282_s8, 16  }
 0x100   : > { %429 = vsyncadd (%p347_p1), %s282_s8, 4294967280  ;;  %p13_p2 = scmp.ge.s32.totalorder %s494_s18, 4   ;;  %s577_s12 = smov %s436_s13 }
 0x101   : > { %s578_s13 = smov %s440_s14  ;;  %s579_s14 = smov %s505_s21 }
 0x102   : > { %s580_s15 = smov %s494_s18  ;;  %15 = sbr.rel (!%p13_p2) target bundleno = 3 (0x3), region = 67 }
 0x107   :  { %286 = vsyncpa [#allocation3], 1 }
 0x108   :  { %288 = vsyncpa [#allocation3 + $0x1], 1 }

// kernel: sketch_mlp_forward.11
= control target key start
LH: loop header
LB: loop body
LE: loop exit
PB: predicated region body
PF: predicated region fallthrough
CT: control target
= control target key end

     0   :  { %s691_s24 = smov 0   ;;  %s750_s0 = inlined_call_operand.vmem [shape: bf16[2,4,16], index: 0, kind: input, shape index: {}]   ;;  %s751_s1 = inlined_call_operand.vmem [shape: bf16[16,32], index: 1, kind: input, shape index: {}]   ;;  %s752_s2 = inlined_call_operand.vmem [shape: f32[1,32], index: 2, kind: input, shape index: {}]   ;;  %s753_s3 = inlined_call_operand.vmem [shape: bf16[32,16], index: 3, kind: input, shape index: {}]   ;;  %s754_s4 = inlined_call_operand.vmem [shape: f32[1,16], index: 4, kind: input, shape index: {}]   ;;  %s755_s5 = inlined_call_operand.vmem [shape: f32[1,16], index: 5, kind: input, shape index: {}]   ;;  %s756_s6 = inlined_call_operand.vmem [shape: f32[1,16], index: 6, kind: input, shape index: {}]   ;;  %s757_s7 = inlined_call_operand.vmem [shape: bf16[2,4,16], index: 7, kind: output, shape index: {}]  }
   0x1 LB: > { %s585_s25 = sadd.s32 4294967295, %s647_s24   ;;  %p589_p0 = scmp.ge.s32.totalorder %s647_s24, 1  ;;  %s647_s24 = sphi %s691_s24, %s17_s24  }
   0x2   : > { %p236_p1 = scmp.lt.s32.totalorder %s647_s24, 3 }
   0x4   : > { %p237_p2 = pnand %p589_p0, %p236_p1 }
   0x5   : > { %p266_p3 = scmp.lt.s32.totalorder (!%p237_p2), %s585_s25, 1 }
   0x6   : > { %240 = sbr.rel (%p237_p2) target bundleno = 510 (0x1fe), region = 48 }
   0xb   : > { %v634_v0 = vld [vmem:[%s751_s1] sm:$0xff]   ;;  %v277_v1 = vlaneseq  ;;  %v649_v2 = vmov 0.0   ;;  %vm650_vm0 = vmmov 0   ;;  %s763_s25 = smov (!%p266_p3, %s585_s25), 1  ;;  %vm297_vm1 = vcmask 1040384   ;;  %v635_v25 = vld [vmem:[%s753_s3 + $0x8] sm:$0xff]  }
   0xc   : > { %610 = vmatprep.subr.bf16.mxu0 %v649_v2  ;;  %616 = vmatprep.subr.bf16.mxu1 %v649_v2  ;;  %s590_s28 = sshll.u32 %s763_s25, 1  ;;  %vm303_vm2 = vcmask 1042432   ;;  %vm308_vm3 = vcmask 1041408   ;;  %vm341_vm14 = vcmask 130048   ;;  %v636_v26 = vld [vmem:[%s753_s3] sm:$0xff]   ;;  %vm439_vm15 = vcmask 261120  }
   0xd   : > { %611 = vmatpush3.bf16.msra.mxu0 %v634_v0  ;;  %612 = vmatprep.mubr.msk.bf16.mxu0 %vm650_vm0, %v649_v2  ;;  %v280_v3 = vshrl.u32 %v277_v1, 7  ;;  %v278_v4 = vand.u32 127, %v277_v1  ;;  %s269_s8 = scalar_lea.vmem %s750_s0, %s590_s28  ;;  %v592_v27 = vld [vmem:[%s752_s2] ss:$0 sm:$0xff]  ;;  %s273_s23 = scalar_lea.vmem %s757_s7, %s590_s28 }
   0xe   : > { %620 = vmatprep.mubr.msk.bf16.mxu1 %vm650_vm0, %v649_v2  ;;  %v275_v6 = vld [vmem:[%s269_s8] sm:$0x3]  ;;  %617 = vmatpush3.bf16.msra.mxu1 %v635_v25  ;;  %vm530_vm0 = vcmask 123904  }
   0xf   : > { %v285_v5 = vand.u32 1, %v280_v3  ;;  %v276_v7 = vunpack.c.l.bf16 %v275_v6  ;;  %vm315_vm4 = vcmp.ge.s32.totalorder %v278_v4, 4  ;;  %vm316_vm5 = vcmp.lt.s32.totalorder %v278_v4, 8  ;;  %618 = vmatprep.subr.bf16.mxu1 %v649_v2  ;;  %v596_v63 = vld [vmem:[%s754_s4] ss:$0 sm:$0xff] }
  0x10   : > { %vm319_vm8 = vcmp.ge.s32.totalorder %v278_v4, 8  ;;  %vm320_vm9 = vcmp.lt.s32.totalorder %v278_v4, 12  ;;  %vm313_vm10 = vcmp.lt.s32.totalorder %v278_v4, 4  ;;  %vm317_vm11 = vmand %vm315_vm4, %vm316_vm5  ;;  %vm323_vm13 = vcmp.ge.s32.totalorder %v278_v4, 12  ;;  %v600_v1 = vld [vmem:[%s755_s5] ss:$0 sm:$0xff] }
  0x11   : > { %vm710_vm6 = vcmp.eq.s32.totalorder %v285_v5, 0  ;;  %vm714_vm7 = vcmp.eq.s32.totalorder %v285_v5, 1  ;;  %v295_v10 = vrot.slane %v276_v7, 7  ;;  %v301_v11 = vrot.slane %v276_v7, 1  ;;  %vm321_vm12 = vmand %vm319_vm8, %vm320_vm9  ;;  %v601_v3 = vld [vmem:[%s756_s6] ss:$0 sm:$0xff] }
  0x12   : > { %v306_v12 = vrot.slane %v276_v7, 6  ;;  %v310_v13 = vrot.slane %v276_v7, 2  ;;  %619 = vmatpush3.bf16.msra.mxu1 %v636_v26 }
  0x13   : > { %v298_v14 = vsel %vm297_vm1, %v276_v7, %v295_v10  ;;  %v304_v15 = vsel %vm303_vm2, %v301_v11, %v276_v7 }
  0x14   : > { %v299_v16 = vsel %vm710_vm6, %v276_v7, %v298_v14  ;;  %v305_v17 = vsel %vm714_vm7, %v276_v7, %v304_v15  ;;  %v309_v18 = vsel %vm308_vm3, %v276_v7, %v306_v12  ;;  %v312_v19 = vsel %vm308_vm3, %v310_v13, %v276_v7 }
  0x15   : > { %v314_v20 = vsel %vm313_vm10, %v299_v16, %v276_v7 }
  0x16   : > { %v318_v21 = vsel %vm317_vm11, %v305_v17, %v314_v20 }
  0x17   : > { %v322_v22 = vsel %vm321_vm12, %v309_v18, %v318_v21 }
  0x18   : > { %v324_v23 = vsel %vm323_vm13, %v312_v19, %v322_v22 }
  0x19   : > { %v325_v24 = vpack.c.bf16 %v324_v23, %v324_v23 }
  0x1b   : > { %613 = vmatmul.mubr.msk.bf16.vlgmr.msra.gmra.mxu0 %vm341_vm14, %v325_v24 }
  0xdb   : > { %v379_v28 = vpop.f32.mrf.mxu0 }
  0xdc   : > { %v380_v29 = vadd.f32 %v592_v27, %v379_v28 }
  0xdd   : > { %v614_v30 = vpop.f32.mrf.mxu0 }
  0xde   : > { %v386_v31 = vmul.f32 0.70710677, %v380_v29  ;;  %v385_v59 = vmul.f32 0.5, %v380_v29 }
  0xdf   : > { %v382_v32 = vpop.f32.mrf.mxu0 }
  0xe0   : > { %v595_v33 = vclamps-f32 %v386_v31, 4.0 }
  0xe1   : > { %v615_v34 = vpop.f32.mrf.mxu0 }
  0xe2   : > { %v389_v35 = vmul.f32 %v595_v33, %v595_v33 }
  0xe4   : > { %v390_v36 = vmul.f32 -2.7261424e-10, %v389_v35  ;;  %v402_v37 = vmul.f32 -1.45660715e-05, %v389_v35 }
  0xe6   : > { %v391_v38 = vadd.f32 2.7706815e-08, %v390_v36  ;;  %v403_v39 = vadd.f32 -0.00021337405, %v402_v37 }
  0xe8   : > { %v392_v40 = vmul.f32 %v391_v38, %v389_v35  ;;  %v404_v41 = vmul.f32 %v403_v39, %v389_v35 }
  0xea   : > { %v393_v42 = vadd.f32 -2.101024e-06, %v392_v40  ;;  %v405_v43 = vadd.f32 -0.001682827, %v404_v41 }
  0xec   : > { %v394_v44 = vmul.f32 %v393_v42, %v389_v35  ;;  %v406_v45 = vmul.f32 %v405_v43, %v389_v35 }
  0xee   : > { %v395_v46 = vadd.f32 -5.6925062e-05, %v394_v44  ;;  %v407_v47 = vadd.f32 -0.0073733293, %v406_v45 }
  0xf0   : > { %v396_v48 = vmul.f32 %v395_v46, %v389_v35  ;;  %v408_v49 = vmul.f32 %v407_v47, %v389_v35 }
  0xf2   : > { %v397_v50 = vadd.f32 -0.00073499064, %v396_v48  ;;  %v409_v51 = vadd.f32 -0.014264739, %v408_v49 }
  0xf4   : > { %v398_v52 = vmul.f32 %v397_v50, %v389_v35  ;;  %637 = vrcp.f32 %v409_v51 }
  0xf6   : > { %v399_v53 = vadd.f32 -0.0029546, %v398_v52 }
  0xf8   : > { %v400_v54 = vmul.f32 %v399_v53, %v389_v35 }
  0xfa   : > { %v401_v55 = vadd.f32 -0.016096033, %v400_v54 }
  0xfc   : > { %v410_v56 = vmul.f32 %v595_v33, %v401_v55 }
 0x101   : > { %v638_v57 = vpop.eup %637 }
 0x102   : > { %v412_v58 = vmul.f32 %v638_v57, %v410_v56 }
 0x104   : > { %v413_v60 = vadd.f32 1.0, %v412_v58 }
 0x106   : > { %v414_v61 = vmul.f32 %v413_v60, %v385_v59 }
 0x108   : > { %v415_v62 = vpack.c.bf16 %v414_v61, %v414_v61 }
 0x10a   : > { %621 = vmatmul.mubr.msk.bf16.vlgmr.msra.gmra.mxu1 %vm439_vm15, %v415_v62 }
 0x1ca   : > { %v477_v0 = vpop.f32.mrf.mxu1 }
 0x1cb   : > { %v478_v2 = vadd.f32 %v596_v63, %v477_v0 }
 0x1cc   : > { %v622_v4 = vpop.f32.mrf.mxu1 }
 0x1cd   : > { %v490_v5 = vmul.f32 %v600_v1, %v478_v2 }
 0x1ce   : > { %v480_v6 = vpop.f32.mrf.mxu1 }
 0x1cf   : > { %v498_v7 = vadd.f32 %v601_v3, %v490_v5 }
 0x1d0   : > { %v623_v8 = vpop.f32.mrf.mxu1 }
 0x1d1   : > { %v500_v9 = vmul.f32 0.70710677, %v498_v7  ;;  %v499_v35 = vmul.f32 0.5, %v498_v7 }
 0x1d3   : > { %v602_v10 = vclamps-f32 %v500_v9, 4.0 }
 0x1d5   : > { %v503_v11 = vmul.f32 %v602_v10, %v602_v10 }
 0x1d7   : > { %v504_v12 = vmul.f32 -2.7261424e-10, %v503_v11  ;;  %v516_v13 = vmul.f32 -1.45660715e-05, %v503_v11 }
 0x1d9   : > { %v505_v14 = vadd.f32 2.7706815e-08, %v504_v12  ;;  %v517_v15 = vadd.f32 -0.00021337405, %v516_v13 }
 0x1db   : > { %v506_v16 = vmul.f32 %v505_v14, %v503_v11  ;;  %v518_v17 = vmul.f32 %v517_v15, %v503_v11 }
 0x1dd   : > { %v507_v18 = vadd.f32 -2.101024e-06, %v506_v16  ;;  %v519_v19 = vadd.f32 -0.001682827, %v518_v17 }
 0x1df   : > { %v508_v20 = vmul.f32 %v507_v18, %v503_v11  ;;  %v520_v21 = vmul.f32 %v519_v19, %v503_v11 }
 0x1e1   : > { %v509_v22 = vadd.f32 -5.6925062e-05, %v508_v20  ;;  %v521_v23 = vadd.f32 -0.0073733293, %v520_v21 }
 0x1e3   : > { %v510_v24 = vmul.f32 %v509_v22, %v503_v11  ;;  %v522_v25 = vmul.f32 %v521_v23, %v503_v11 }
 0x1e5   : > { %v511_v26 = vadd.f32 -0.00073499064, %v510_v24  ;;  %v523_v27 = vadd.f32 -0.014264739, %v522_v25 }
 0x1e7   : > { %v512_v28 = vmul.f32 %v511_v26, %v503_v11  ;;  %639 = vrcp.f32 %v523_v27 }
 0x1e9   : > { %v513_v29 = vadd.f32 -0.0029546, %v512_v28 }
 0x1eb   : > { %v514_v30 = vmul.f32 %v513_v29, %v503_v11 }
 0x1ed   : > { %v515_v31 = vadd.f32 -0.016096033, %v514_v30 }
 0x1ef   : > { %v524_v32 = vmul.f32 %v602_v10, %v515_v31 }
 0x1f4   : > { %v640_v33 = vpop.eup %639 }
 0x1f5   : > { %v526_v34 = vmul.f32 %v640_v33, %v524_v32 }
 0x1f7   : > { %v527_v36 = vadd.f32 1.0, %v526_v34 }
 0x1f9   : > { %v528_v37 = vmul.f32 %v527_v36, %v499_v35 }
 0x1fb   : > { %v529_v38 = vpack.c.bf16 %v528_v37, %v528_v37 }
 0x1fd   : > { %531 = vst.msk [vmem:[%s273_s23] sm:$0x3] %vm530_vm0, %v529_v38 }
 0x1fe PF: > { %s17_s24 = sadd.s32 1, %s647_s24  }
 0x1ff   : > { %p14_p4 = scmp.ge.s32.totalorder %s17_s24, 4  }
 0x201   :  { %16 = sbr.rel (!%p14_p4) target bundleno = 1 (0x1), region = 78 }

// kernel: sketch_mlp_forward.10
= control target key start
LH: loop header
LB: loop body
LE: loop exit
PB: predicated region body
PF: predicated region fallthrough
CT: control target
= control target key end

     0   :  { %s1379_s27 = smov 0   ;;  %s1540_s0 = inlined_call_operand.vmem [shape: bf16[2,3,3,16], index: 0, kind: input, shape index: {}]   ;;  %s1541_s1 = inlined_call_operand.vmem [shape: bf16[2,3,3,16], index: 1, kind: input, shape index: {}]   ;;  %s1542_s2 = inlined_call_operand.vmem [shape: bf16[2,3,3,16], index: 2, kind: input, shape index: {}]   ;;  %s1543_s3 = inlined_call_operand.vmem [shape: bf16[2,3,3,16], index: 3, kind: input, shape index: {}]   ;;  %s1544_s4 = inlined_call_operand.vmem [shape: bf16[9,16,16], index: 4, kind: input, shape index: {}]   ;;  %s1545_s5 = inlined_call_operand.vmem [shape: f32[1,16], index: 5, kind: input, shape index: {}]   ;;  %s1546_s6 = inlined_call_operand.vmem [shape: f32[1,16], index: 6, kind: input, shape index: {}]   ;;  %s1547_s7 = inlined_call_operand.vmem [shape: f32[1,16], index: 7, kind: input, shape index: {}]   ;;  %s1548_s8 = inlined_call_operand.vmem [shape: bf16[2,4,16], index: 8, kind: output, shape index: {}]  }
   0x1 LB: > { %s1173_s28 = sadd.s32 4294967295, %s1329_s27   ;;  %p1177_p0 = scmp.ge.s32.totalorder %s1329_s27, 1  ;;  %s1329_s27 = sphi %s1379_s27, %s18_s27  }
   0x2   : > { %p292_p1 = scmp.lt.s32.totalorder %s1329_s27, 3 }
   0x4   : > { %p293_p2 = pnand %p1177_p0, %p292_p1 }
   0x5   : > { %p340_p3 = scmp.lt.s32.totalorder (!%p293_p2), %s1173_s28, 1 }
   0x6   : > { %296 = sbr.rel (%p293_p2) target bundleno = 303 (0x12f), region = 52 }
   0xb   : > { %v1312_v0 = vld [vmem:[%s1544_s4 + $0x8] sm:$0xff]   ;;  %v1331_v1 = vmov 0.0   ;;  %v1313_v2 = vld [vmem:[%s1544_s4] sm:$0xff]   ;;  %v391_v3 = vlaneseq  ;;  %vm1332_vm0 = vmmov 0   ;;  %v1333_v4 = vmov 1983009808  }
   0xc   : > { %1246 = vmatprep.subr.bf16.mxu0 %v1331_v1  ;;  %1252 = vmatprep.subr.bf16.mxu1 %v1331_v1  ;;  %v389_v5 = vunpack.c.l.s4 %v1333_v4  ;;  %s1554_s28 = smov (!%p340_p3, %s1173_s28), 1  ;;  %vm529_vm1 = vcmask 1040384   ;;  %vm530_vm2 = vcmask 1042434   ;;  %vm532_vm4 = vcmask 1044484   ;;  %v1314_v34 = vld [vmem:[%s1544_s4 + $0x10] sm:$0xff]   ;;  %v1315_v38 = vld [vmem:[%s1544_s4 + $0x18] sm:$0xff]  }
   0xd   : > { %1247 = vmatpush3.bf16.msra.mxu0 %v1312_v0  ;;  %1248 = vmatprep.mubr.msk.bf16.mxu0 %vm1332_vm0, %v1331_v1  ;;  %v392_v7 = vshrl.u32 %v391_v3, 7  ;;  %s1300_s11 = smul.u32 6, %s1554_s28  ;;  %vm531_vm3 = vmor %vm529_vm1, %vm530_vm2  ;;  %vm534_vm6 = vcmask 1046534   ;;  %vm420_vm7 = vcmask 130048   ;;  %v1316_v63 = vld [vmem:[%s1544_s4 + $0x20] sm:$0xff]   ;;  %v1319_v21 = vld [vmem:[%s1544_s4 + $0x38] sm:$0xff]  }
   0xe   : > { %1253 = vmatpush3.bf16.msra.mxu1 %v1313_v2  ;;  %1254 = vmatprep.mubr.msk.bf16.mxu1 %vm1332_vm0, %v1331_v1  ;;  %v390_v6 = vunpack.c.0.s8 %v389_v5  ;;  %vm1433_vm5 = vmor %vm531_vm3, %vm532_vm4  ;;  %v1317_v5 = vld [vmem:[%s1544_s4 + $0x28] sm:$0xff]   ;;  %s1182_s24 = sshll.u32 %s1554_s28, 1  ;;  %vm1082_vm9 = vcmask 123904  }
   0xf   : > { %1258 = vmatprep.subr.bf16.mxu0 %v1331_v1  ;;  %1264 = vmatprep.subr.bf16.mxu1 %v1331_v1  ;;  %s1407_s14 = scalar_lea.vmem %s1541_s1, %s1300_s11  ;;  %s1412_s17 = scalar_lea.vmem %s1540_s0, %s1300_s11  ;;  %vm1454_vm8 = vmor %vm1433_vm5, %vm534_vm6 }
  0x10   : > { %v371_v8 = vld [vmem:[%s1407_s14] sm:$0x3]  ;;  %v1416_v9 = vld [vmem:[%s1407_s14 + $0x2] sm:$0x3]  ;;  %v1418_v10 = vsub.s32 %v390_v6, %v392_v7  ;;  %s354_s20 = scalar_lea.vmem %s1542_s2, %s1300_s11  ;;  %s359_s23 = scalar_lea.vmem %s1543_s3, %s1300_s11  ;;  %v367_v46 = vld [vmem:[%s1412_s17 + $0x4] sm:$0x3] }
  0x11   : > { %v374_v11 = vunpack.c.l.bf16 %v371_v8  ;;  %v375_v12 = vunpack.c.l.bf16 %v1416_v9  ;;  %v365_v13 = vld [vmem:[%s1412_s17] sm:$0x3]  ;;  %v366_v14 = vld [vmem:[%s1412_s17 + $0x2] sm:$0x3]  ;;  %v370_v57 = vunpack.c.l.bf16 %v367_v46  ;;  %v373_v3 = vld [vmem:[%s1407_s14 + $0x4] sm:$0x3]  ;;  %s363_s29 = scalar_lea.vmem %s1548_s8, %s1182_s24 }
  0x12   : > { %v377_v15 = vld [vmem:[%s354_s20] sm:$0x3]  ;;  %v368_v16 = vunpack.c.l.bf16 %v365_v13  ;;  %v1429_v17 = vunpack.c.l.bf16 %v366_v14  ;;  %v378_v18 = vld [vmem:[%s354_s20 + $0x2] sm:$0x3]  ;;  %v376_v7 = vunpack.c.l.bf16 %v373_v3 }
  0x13   : > { %v379_v19 = vunpack.c.l.bf16 %v377_v15  ;;  %v401_v20 = vcombine.low %v374_v11, %v375_v12  ;;  %v380_v22 = vunpack.c.l.bf16 %v378_v18  ;;  %v381_v27 = vld [vmem:[%s359_s23] sm:$0x3]  ;;  %v382_v36 = vld [vmem:[%s359_s23 + $0x2] sm:$0x3]  ;;  %v958_v2 = vrot.slane %v370_v57, %v1418_v10  ;;  %v1318_v18 = vld [vmem:[%s1544_s4 + $0x30] sm:$0xff]  }
  0x14   : > { %v387_v23 = vcombine.low %v368_v16, %v1429_v17  ;;  %v519_v24 = vrot.slane %v368_v16, %v1418_v10  ;;  %v527_v25 = vrot.slane %v1429_v17, %v1418_v10  ;;  %v383_v41 = vunpack.c.l.bf16 %v381_v27  ;;  %v1222_v3 = vld [vmem:[%s1545_s5] ss:$0 sm:$0xff] }
  0x15   : > { %v743_v26 = vrot.slane %v379_v19, %v1418_v10  ;;  %v408_v28 = vrot.slane %v401_v20, %v1418_v10  ;;  %v609_v29 = vcombine.low %v379_v19, %v380_v22  ;;  %v751_v30 = vrot.slane %v380_v22, %v1418_v10 }
  0x16   : > { %v394_v31 = vrot.slane %v387_v23, %v1418_v10  ;;  %v520_v32 = vcombine.high %v519_v24, %v519_v24  ;;  %v1189_v33 = vrot.slane %v519_v24, 9  ;;  %v528_v35 = vcombine.high %v527_v25, %v527_v25 }
  0x17   : > { %v410_v37 = vpack.c.bf16 %v408_v28, %v408_v28  ;;  %v1190_v40 = vrot.slane %v527_v25, 9  ;;  %v744_v45 = vcombine.high %v743_v26, %v743_v26  ;;  %v616_v47 = vrot.slane %v609_v29, %v1418_v10  ;;  %v1320_v25 = vld [vmem:[%s1544_s4 + $0x40] sm:$0xff]  }
  0x18   : > { %v396_v42 = vpack.c.bf16 %v394_v31, %v394_v31  ;;  %v538_v43 = vrot.slane %v520_v32, 7  ;;  %v542_v44 = vrot.slane %v528_v35, 7  ;;  %v384_v48 = vunpack.c.l.bf16 %v382_v36 }
  0x19   : > { %1249 = vmatmul.mubr.msk.bf16.vlgmr.msra.gmra.mxu0 %vm420_vm7, %v410_v37  ;;  %v752_v49 = vcombine.high %v751_v30, %v751_v30  ;;  %v1203_v50 = vrot.slane %v743_v26, 9  ;;  %v755_v53 = vrot.slane %v744_v45, 7  ;;  %v1204_v54 = vrot.slane %v751_v30, 9 }
  0x1a   : > { %1255 = vmatmul.mubr.msk.bf16.vlgmr.msra.gmra.mxu1 %vm420_vm7, %v396_v42  ;;  %1259 = vmatpush3.bf16.msra.mxu0 %v1314_v34  ;;  %v539_v51 = vsel %vm1454_vm8, %v1189_v33, %v538_v43  ;;  %v543_v52 = vsel %vm1454_vm8, %v1190_v40, %v542_v44  ;;  %v674_v60 = vcombine.low %v383_v41, %v384_v48  ;;  %v1217_v19 = vrot.slane %v958_v2, 9 }
  0x1b   : > { %1265 = vmatpush3.bf16.msra.mxu1 %v1315_v38  ;;  %1260 = vmatprep.mubr.msk.bf16.mxu0 %vm1332_vm0, %v1331_v1  ;;  %v544_v55 = vcombine.low %v539_v51, %v543_v52  ;;  %v759_v56 = vrot.slane %v752_v49, 7  ;;  %v756_v58 = vsel %vm1454_vm8, %v1203_v50, %v755_v53  ;;  %v618_v62 = vpack.c.bf16 %v616_v47, %v616_v47 }
  0x1c   : > { %1266 = vmatprep.mubr.msk.bf16.mxu1 %vm1332_vm0, %v1331_v1  ;;  %1270 = vmatprep.subr.bf16.mxu0 %v1331_v1  ;;  %v681_v6 = vrot.slane %v674_v60, %v1418_v10  ;;  %v959_v11 = vcombine.high %v958_v2, %v958_v2  ;;  %v825_v14 = vcombine.low %v1429_v17, %v370_v57 }
  0x1d   : > { %v551_v59 = vrot.slane %v544_v55, %v1418_v10  ;;  %1276 = vmatprep.subr.bf16.mxu1 %v1331_v1  ;;  %v760_v61 = vsel %vm1454_vm8, %v1204_v54, %v759_v56  ;;  %v889_v15 = vcombine.low %v375_v12, %v376_v7 }
  0x1e   : > { %v761_v0 = vcombine.low %v756_v58, %v760_v61  ;;  %v683_v13 = vpack.c.bf16 %v681_v6, %v681_v6  ;;  %v962_v20 = vrot.slane %v959_v11, 7  ;;  %v832_v22 = vrot.slane %v825_v14, %v1418_v10 }
  0x1f   : > { %v553_v4 = vpack.c.bf16 %v551_v59, %v551_v59  ;;  %v896_v9 = vrot.slane %v889_v15, %v1418_v10 }
  0x20   : > { %v768_v8 = vrot.slane %v761_v0, %v1418_v10  ;;  %v963_v12 = vsel %vm1454_vm8, %v1217_v19, %v962_v20  ;;  %v834_v17 = vpack.c.bf16 %v832_v22, %v832_v22 }
  0x21   : > { %1261 = vmatmul.mubr.msk.bf16.vlgmr.msra.gmra.mxu0 %vm420_vm7, %v553_v4  ;;  %v964_v23 = vcombine.low %v543_v52, %v963_v12  ;;  %v898_v24 = vpack.c.bf16 %v896_v9, %v896_v9 }
  0x22   : > { %1267 = vmatmul.mubr.msk.bf16.vlgmr.msra.gmra.mxu1 %vm420_vm7, %v618_v62  ;;  %1271 = vmatpush3.bf16.msra.mxu0 %v1316_v63  ;;  %v770_v16 = vpack.c.bf16 %v768_v8, %v768_v8  ;;  %v1224_v8 = vld [vmem:[%s1547_s7] ss:$0 sm:$0xff] }
  0x23   : > { %1277 = vmatpush3.bf16.msra.mxu1 %v1317_v5  ;;  %1272 = vmatprep.mubr.msk.bf16.mxu0 %vm1332_vm0, %v1331_v1  ;;  %v971_v26 = vrot.slane %v964_v23, %v1418_v10  ;;  %v1223_v5 = vld [vmem:[%s1546_s6] ss:$0 sm:$0xff] }
  0x24   : > { %1278 = vmatprep.mubr.msk.bf16.mxu1 %vm1332_vm0, %v1331_v1  ;;  %1282 = vmatprep.subr.bf16.mxu0 %v1331_v1 }
  0x25   : > { %1288 = vmatprep.subr.bf16.mxu1 %v1331_v1  ;;  %v973_v27 = vpack.c.bf16 %v971_v26, %v971_v26 }
  0x29   : > { %1273 = vmatmul.mubr.msk.bf16.vlgmr.msra.gmra.mxu0 %vm420_vm7, %v683_v13 }
  0x2a   : > { %1279 = vmatmul.mubr.msk.bf16.vlgmr.msra.gmra.mxu1 %vm420_vm7, %v770_v16  ;;  %1283 = vmatpush3.bf16.msra.mxu0 %v1318_v18 }
  0x2b   : > { %1289 = vmatpush3.bf16.msra.mxu1 %v1319_v21  ;;  %1284 = vmatprep.mubr.msk.bf16.mxu0 %vm1332_vm0, %v1331_v1 }
  0x2c   : > { %1290 = vmatprep.mubr.msk.bf16.mxu1 %vm1332_vm0, %v1331_v1  ;;  %1294 = vmatprep.subr.bf16.mxu0 %v1331_v1 }
  0x31   : > { %1285 = vmatmul.mubr.msk.bf16.vlgmr.msra.gmra.mxu0 %vm420_vm7, %v834_v17 }
  0x32   : > { %1291 = vmatmul.mubr.msk.bf16.vlgmr.msra.gmra.mxu1 %vm420_vm7, %v898_v24  ;;  %1295 = vmatpush3.bf16.msra.mxu0 %v1320_v25 }
  0x33   : > { %1296 = vmatprep.mubr.msk.bf16.mxu0 %vm1332_vm0, %v1331_v1 }
  0x39   : > { %1297 = vmatmul.mubr.msk.bf16.vlgmr.msra.gmra.mxu0 %vm420_vm7, %v973_v27 }
  0xd9   : > { %v458_v28 = vpop.f32.mrf.mxu0 }
  0xda   : > { %v507_v29 = vpop.f32.mrf.mxu1 }
  0xdb   : > { %v1250_v30 = vpop.f32.mrf.mxu0  ;;  %v508_v40 = vadd.f32 %v507_v29, %v458_v28 }
  0xdc   : > { %v1256_v31 = vpop.f32.mrf.mxu1 }
  0xdd   : > { %v461_v32 = vpop.f32.mrf.mxu0 }
  0xde   : > { %v510_v33 = vpop.f32.mrf.mxu1 }
  0xdf   : > { %v1251_v34 = vpop.f32.mrf.mxu0 }
  0xe0   : > { %v1257_v35 = vpop.f32.mrf.mxu1 }
  0xe1   : > { %v600_v36 = vpop.f32.mrf.mxu0 }
  0xe2   : > { %v665_v37 = vpop.f32.mrf.mxu1  ;;  %v606_v1 = vadd.f32 %v600_v36, %v508_v40 }
  0xe3   : > { %v1262_v10 = vpop.f32.mrf.mxu0 }
  0xe4   : > { %v1268_v38 = vpop.f32.mrf.mxu1  ;;  %v671_v47 = vadd.f32 %v665_v37, %v606_v1 }
  0xe5   : > { %v603_v39 = vpop.f32.mrf.mxu0 }
  0xe6   : > { %v668_v41 = vpop.f32.mrf.mxu1 }
  0xe7   : > { %v1263_v42 = vpop.f32.mrf.mxu0 }
  0xe8   : > { %v1269_v43 = vpop.f32.mrf.mxu1 }
  0xe9   : > { %v730_v44 = vpop.f32.mrf.mxu0 }
  0xea   : > { %v817_v45 = vpop.f32.mrf.mxu1  ;;  %v736_v50 = vadd.f32 %v730_v44, %v671_v47 }
  0xeb   : > { %v1274_v46 = vpop.f32.mrf.mxu0 }
  0xec   : > { %v1280_v48 = vpop.f32.mrf.mxu1  ;;  %v823_v55 = vadd.f32 %v817_v45, %v736_v50 }
  0xed   : > { %v733_v49 = vpop.f32.mrf.mxu0 }
  0xee   : > { %v820_v51 = vpop.f32.mrf.mxu1 }
  0xef   : > { %v1275_v52 = vpop.f32.mrf.mxu0 }
  0xf0   : > { %v1281_v53 = vpop.f32.mrf.mxu1 }
  0xf1   : > { %v881_v54 = vpop.f32.mrf.mxu0 }
  0xf2   : > { %v945_v56 = vpop.f32.mrf.mxu1  ;;  %v887_v58 = vadd.f32 %v881_v54, %v823_v55 }
  0xf3   : > { %v1286_v57 = vpop.f32.mrf.mxu0 }
  0xf4   : > { %v1292_v59 = vpop.f32.mrf.mxu1  ;;  %v951_v63 = vadd.f32 %v945_v56, %v887_v58 }
  0xf5   : > { %v884_v60 = vpop.f32.mrf.mxu0 }
  0xf6   : > { %v948_v61 = vpop.f32.mrf.mxu1 }
  0xf7   : > { %v1287_v62 = vpop.f32.mrf.mxu0 }
  0xf8   : > { %v1293_v0 = vpop.f32.mrf.mxu1 }
  0xf9   : > { %v1020_v2 = vpop.f32.mrf.mxu0 }
  0xfa   : > { %v1026_v4 = vadd.f32 %v1020_v2, %v951_v63 }
  0xfb   : > { %v1298_v6 = vpop.f32.mrf.mxu0 }
  0xfc   : > { %v1034_v7 = vadd.f32 %v1222_v3, %v1026_v4 }
  0xfd   : > { %v1023_v11 = vpop.f32.mrf.mxu0 }
  0xfe   : > { %v1042_v13 = vmul.f32 %v1223_v5, %v1034_v7 }
  0xff   : > { %v1299_v14 = vpop.f32.mrf.mxu0 }
 0x100   : > { %v1050_v15 = vadd.f32 %v1224_v8, %v1042_v13 }
 0x102   : > { %v1052_v16 = vmul.f32 0.70710677, %v1050_v15  ;;  %v1051_v39 = vmul.f32 0.5, %v1050_v15 }
 0x104   : > { %v1225_v18 = vclamps-f32 %v1052_v16, 4.0 }
 0x106   : > { %v1055_v19 = vmul.f32 %v1225_v18, %v1225_v18 }
 0x108   : > { %v1056_v20 = vmul.f32 -2.7261424e-10, %v1055_v19  ;;  %v1068_v21 = vmul.f32 -1.45660715e-05, %v1055_v19 }
 0x10a   : > { %v1057_v22 = vadd.f32 2.7706815e-08, %v1056_v20  ;;  %v1069_v9 = vadd.f32 -0.00021337405, %v1068_v21 }
 0x10c   : > { %v1058_v12 = vmul.f32 %v1057_v22, %v1055_v19  ;;  %v1070_v17 = vmul.f32 %v1069_v9, %v1055_v19 }
 0x10e   : > { %v1059_v23 = vadd.f32 -2.101024e-06, %v1058_v12  ;;  %v1071_v24 = vadd.f32 -0.001682827, %v1070_v17 }
 0x110   : > { %v1060_v25 = vmul.f32 %v1059_v23, %v1055_v19  ;;  %v1072_v26 = vmul.f32 %v1071_v24, %v1055_v19 }
 0x112   : > { %v1061_v27 = vadd.f32 -5.6925062e-05, %v1060_v25  ;;  %v1073_v28 = vadd.f32 -0.0073733293, %v1072_v26 }
 0x114   : > { %v1062_v29 = vmul.f32 %v1061_v27, %v1055_v19  ;;  %v1074_v30 = vmul.f32 %v1073_v28, %v1055_v19 }
 0x116   : > { %v1063_v31 = vadd.f32 -0.00073499064, %v1062_v29  ;;  %v1075_v32 = vadd.f32 -0.014264739, %v1074_v30 }
 0x118   : > { %v1064_v33 = vmul.f32 %v1063_v31, %v1055_v19  ;;  %1321 = vrcp.f32 %v1075_v32 }
 0x11a   : > { %v1065_v34 = vadd.f32 -0.0029546, %v1064_v33 }
 0x11c   : > { %v1066_v35 = vmul.f32 %v1065_v34, %v1055_v19 }
 0x11e   : > { %v1067_v36 = vadd.f32 -0.016096033, %v1066_v35 }
 0x120   : > { %v1076_v37 = vmul.f32 %v1225_v18, %v1067_v36 }
 0x125   : > { %v1322_v10 = vpop.eup %1321 }
 0x126   : > { %v1078_v38 = vmul.f32 %v1322_v10, %v1076_v37 }
 0x128   : > { %v1079_v40 = vadd.f32 1.0, %v1078_v38 }
 0x12a   : > { %v1080_v41 = vmul.f32 %v1079_v40, %v1051_v39 }
 0x12c   : > { %v1081_v42 = vpack.c.bf16 %v1080_v41, %v1080_v41 }
 0x12e   : > { %1083 = vst.msk [vmem:[%s363_s29] sm:$0x3] %vm1082_vm9, %v1081_v42 }
 0x12f PF: > { %s18_s27 = sadd.s32 1, %s1329_s27  }
 0x130   : > { %p15_p4 = scmp.ge.s32.totalorder %s18_s27, 4  }
 0x132   :  { %17 = sbr.rel (!%p15_p4) target bundleno = 1 (0x1), region = 99 }

</bundles_post_ra>
